<compile_context>
chip_gen: v5e
topology: v5e:2x2
jax: 0.10.0
libtpu: 0.0.40
codegen_flags: <defaults>
</compile_context>

<pallas_src>
import functools

import jax
import jax.numpy as jnp
from jax.experimental import pallas as pl
from jax.experimental.pallas import tpu as pltpu

LANE = 128
KH = KW = 3  # 3x3 convolution


def _round_up(x, m):
    return (x + m - 1) // m * m


def _pick_band_rows(H, Wp, max_rows):
    """Largest divisor TH of H with TH*Wp <= max_rows rows per tile.

    The (sublane) block size TH*Wp must be a multiple of 8 unless it equals the full
    flattened extent H*Wp, so only aligned divisors (or TH == H) are considered.
    """
    aligned = [th for th in range(1, H + 1)
               if H % th == 0 and ((th * Wp) % 8 == 0 or th == H)]
    under = [th for th in aligned if th * Wp <= max_rows]
    return max(under) if under else min(aligned)


# ------------------------------ Pallas kernel --------------------------------
def _conv3x3_silu_kernel(x_ref, w_ref, b_ref, o_ref, *, valid_rows):
    """Fused 3x3 conv + bias + SiLU on one row band.

    x_ref: (3, band_rows*Wp, Cin)  bf16 -- 3 vertically shifted (kh) views of the
                                           zero-padded activation, W flattened into rows.
    w_ref: (9, Cin, Cout_pad)      bf16 -- tap-major weight slices (resident).
    b_ref: (1, Cout_pad)           f32
    o_ref: (valid_rows, Cout_pad)  f32  -- valid_rows = band_rows*Wp - 2
    """
    L = valid_rows
    acc = jnp.zeros((L, w_ref.shape[-1]), jnp.float32)
    for kh in range(KH):
        xk = x_ref[kh]                                   # (band_rows*Wp, Cin)
        for kw in range(KW):
            # Horizontal tap == flat shift by kw; the 2 zero-pad columns per row
            # guarantee no cross-row contamination for the W valid output columns.
            acc = acc + jnp.dot(xk[kw:kw + L, :], w_ref[KW * kh + kw],
                                preferred_element_type=jnp.float32)
    acc = acc + b_ref[...]
    o_ref[...] = acc * jax.nn.sigmoid(acc)               # SiLU epilogue in f32


def conv3x3_bias_silu_nhwc(x_nhwc, weight_oihw, bias, *, max_rows=1024):
    """3x3 / stride 1 / SAME conv + bias + SiLU.  x_nhwc: (N,H,W,Cin), weight: (Cout,Cin,3,3)."""
    N, H, W, C = x_nhwc.shape
    Cout = weight_oihw.shape[0]
    Cout_p = _round_up(Cout, LANE)
    Wp = W + 2

    # ---- glue: pad, build the 3 kh-shifted views, flatten W into the row axis ----
    # TODO(synk): the 3x shifted-view duplication could be removed entirely with a
    # manual halo DMA (memory_space=pl.ANY + make_async_copy) at the cost of losing
    # BlockSpec auto double-buffering of the input.
    xb = x_nhwc.astype(jnp.bfloat16)
    xp = jnp.pad(xb, ((0, 0), (1, 1), (1, 1), (0, 0)))            # (N, H+2, Wp, C)
    x3 = jnp.stack([xp[:, kh:kh + H] for kh in range(KH)], 0)      # (3, N, H, Wp, C)
    x3 = x3.reshape(3, N, H * Wp, C)

    # tap-major weights (kh, kw, Cin, Cout) -> (9, Cin, Cout_pad) bf16, bias -> (1, Cout_pad) f32
    w_t = jnp.transpose(weight_oihw, (2, 3, 1, 0)).reshape(KH * KW, C, Cout)
    w_t = jnp.pad(w_t, ((0, 0), (0, 0), (0, Cout_p - Cout))).astype(jnp.bfloat16)
    b_p = jnp.pad(bias.astype(jnp.float32), (0, Cout_p - Cout)).reshape(1, Cout_p)

    band_rows = _pick_band_rows(H, Wp, max_rows)
    n_bands = H // band_rows
    tile_rows = band_rows * Wp          # sublane extent of the input tile
    L = tile_rows - 2                   # rows actually written per tile

    # VMEM budget: blocks are double-buffered by the pipeline; stay well inside the
    # v7x 64 MiB pool (v5e/v6e have 128 MiB).
    block_in = 3 * tile_rows * C * 2
    block_out = L * Cout_p * 4
    resident = KH * KW * C * Cout_p * 2 + Cout_p * 4
    est = 2 * (block_in + block_out) + resident + block_out       # + f32 accumulator
    vmem_limit = int(max(32 * 1024 * 1024, min(4 * est, 48 * 1024 * 1024)))

    out = pl.pallas_call(
        functools.partial(_conv3x3_silu_kernel, valid_rows=L),
        out_shape=jax.ShapeDtypeStruct((N, n_bands, L, Cout_p), jnp.float32),
        grid=(N, n_bands),
        in_specs=[
            pl.BlockSpec((3, None, tile_rows, C), lambda n, b: (0, n, b, 0)),
            pl.BlockSpec((KH * KW, C, Cout_p), lambda n, b: (0, 0, 0)),
            pl.BlockSpec((1, Cout_p), lambda n, b: (0, 0)),
        ],
        out_specs=pl.BlockSpec((None, None, L, Cout_p), lambda n, b: (n, b, 0, 0)),
        compiler_params=pltpu.CompilerParams(
            dimension_semantics=("parallel", "parallel"),
            vmem_limit_bytes=vmem_limit,
        ),
        cost_estimate=pl.CostEstimate(
            flops=2 * N * H * W * (KH * KW * C) * Cout_p,
            transcendentals=N * H * W * Cout_p,
            bytes_accessed=(x3.size * 2 + w_t.size * 2 + b_p.size * 4
                            + N * n_bands * L * Cout_p * 4),
        ),
    )(x3, w_t, b_p)

    # ---- glue: un-flatten rows, drop padded columns / channels -> NHWC ----
    out = jnp.pad(out, ((0, 0), (0, 0), (0, 2), (0, 0)))          # L -> band_rows*Wp
    out = out.reshape(N, n_bands, band_rows, Wp, Cout_p)[:, :, :, :W, :Cout]
    return out.reshape(N, H, W, Cout)


@functools.partial(jax.jit, static_argnames=("max_rows",))
def fused_conv_silu_nchw(im_nchw, weight, bias, *, max_rows=1024):
    x = jnp.transpose(im_nchw, (0, 2, 3, 1))                      # NCHW -> NHWC
    y = conv3x3_bias_silu_nhwc(x, weight, bias, max_rows=max_rows)
    return jnp.transpose(y, (0, 3, 1, 2))                         # back to NCHW


# --------------------------- synthetic YOLO "model" ---------------------------
class SyntheticFusedConvModel:
    """Stands in for the weight-loaded model inside AutoBackend (fused Conv+BN -> conv+bias, SiLU)."""

    def __init__(self, c_in, c_out, key):
        kw_, kb_ = jax.random.split(key)
        # PyTorch conv weight layout: (Cout, Cin, KH, KW)
        self.weight = jax.random.normal(kw_, (c_out, c_in, 3, 3), jnp.float32) * 0.1
        self.bias = jax.random.normal(kb_, (c_out,), jnp.float32) * 0.1
        self.c_in, self.c_out = c_in, c_out
        self.max_rows = 1024   # target M rows per kernel tile (band_rows * padded width)

    def __call__(self, im_nchw):
        N, C, H, W = im_nchw.shape
        assert C == self.c_in
        return fused_conv_silu_nchw(im_nchw, self.weight, self.bias,
                                    max_rows=self.max_rows)


# -------------------------------- AutoBackend ---------------------------------
class AutoBackendJAX:
    """JAX mirror of AutoBackend.forward semantics (pt backend, fuse=True)."""

    def __init__(self, c_in=4, c_out=32, fp16=False, seed=0):
        self.fp16 = fp16
        self.pt = True
        self.nn_module = False
        self.task = None
        self.names = {i: f"class{i}" for i in range(999)}   # default_class_names()
        self.stride = 32
        self.model = SyntheticFusedConvModel(c_in, c_out, jax.random.PRNGKey(seed))

    def forward(self, im, augment=False, visualize=False, embed=None):
        # Half-precision fast path: bfloat16 is TPU's native half precision
        # (fp16 has no native compute path and would just add a lossy cast).
        if self.fp16 and im.dtype != jnp.bfloat16:
            im = im.astype(jnp.bfloat16)
        y = self.model(im)
        if isinstance(y, (list, tuple)):
            return y[0] if len(y) == 1 else list(y)
        return y   # from_numpy is identity for device arrays

    __call__ = forward


# ----------------------------------- main --------------------------------------
if __name__ == "__main__":
    key = jax.random.PRNGKey(0)
    N, C, H, W = 2, 4, 16, 16
    COUT = 32
    im = jax.random.normal(key, (N, C, H, W), jnp.float32)

    backend = AutoBackendJAX(c_in=C, c_out=COUT, fp16=False, seed=0)
    y = jax.block_until_ready(backend(im))
    assert y.shape == (N, COUT, H, W), y.shape

    # Reference: same bf16 input/weight quantization as the kernel path, f32 accumulation.
    imq = im.astype(jnp.bfloat16).astype(jnp.float32)
    wq = backend.model.weight.astype(jnp.bfloat16).astype(jnp.float32)
    ref = jax.lax.conv_general_dilated(
        imq, wq, window_strides=(1, 1), padding="SAME",
        dimension_numbers=("NCHW", "OIHW", "NCHW"))
    ref = ref + backend.model.bias.reshape(1, COUT, 1, 1)
    ref = ref * jax.nn.sigmoid(ref)
    assert jnp.allclose(y, ref, atol=2e-3, rtol=2e-3), float(jnp.max(jnp.abs(y - ref)))

    # Second run with a small row budget to exercise multi-band M tiling (grid=(2, 4)).
    backend.model.max_rows = 80
    y2 = jax.block_until_ready(backend(im))
    assert jnp.allclose(y2, ref, atol=2e-3, rtol=2e-3), float(jnp.max(jnp.abs(y2 - ref)))

    # TODO(synk): real AutoBackend loads arbitrary *.pt YOLO checkpoints and dispatches
    # across backends; only a synthetic single fused-Conv PyTorch-style model is wrapped here.
    print("KERNEL_OK")
</pallas_src>

<mosaic_0001>
module attributes {stable_mosaic.version = 11 : i64} {
  func.func @_conv3x3_silu_kernel(%arg0: i32, %arg1: i32, %arg2: memref<3x1x288x4xbf16, #tpu.memory_space<vmem>>, %arg3: memref<9x4x128xbf16, #tpu.memory_space<vmem>>, %arg4: memref<1x128xf32, #tpu.memory_space<vmem>>, %arg5: memref<1x1x286x128xf32, #tpu.memory_space<vmem>>) attributes {dimension_semantics = [#tpu.dimension_semantics<parallel>, #tpu.dimension_semantics<parallel>], iteration_bounds = array<i64: 2, 1>, scalar_prefetch = 0 : i64, scratch_operands = 0 : i64, tpu.core_type = #tpu.core_type<tc>, window_params = [{transform_indices = @transform_0, window_bounds = array<i64: 3, 1, 288, 4>}, {pipeline_mode = #tpu.pipeline_mode<synchronous>, transform_indices = @transform_1, window_bounds = array<i64: 9, 4, 128>}, {pipeline_mode = #tpu.pipeline_mode<synchronous>, transform_indices = @transform_2, window_bounds = array<i64: 1, 128>}, {transform_indices = @transform_3, window_bounds = array<i64: 1, 1, 286, 128>}]} {
    %cst = arith.constant 0.000000e+00 : f32
    %0 = vector.broadcast %cst : f32 to vector<286x128xf32>
    %c0 = arith.constant 0 : index
    %c0_0 = arith.constant 0 : index
    %c0_1 = arith.constant 0 : index
    %c0_2 = arith.constant 0 : index
    %1 = vector.load %arg2[%c0, %c0_0, %c0_1, %c0_2] : memref<3x1x288x4xbf16, #tpu.memory_space<vmem>>, vector<1x1x288x4xbf16>
    %2 = vector.shape_cast %1 : vector<1x1x288x4xbf16> to vector<288x4xbf16>
    %3 = vector.extract_strided_slice %2 {offsets = [0, 0], sizes = [286, 4], strides = [1, 1]} : vector<288x4xbf16> to vector<286x4xbf16>
    %c0_3 = arith.constant 0 : index
    %c0_4 = arith.constant 0 : index
    %c0_5 = arith.constant 0 : index
    %4 = vector.load %arg3[%c0_3, %c0_4, %c0_5] : memref<9x4x128xbf16, #tpu.memory_space<vmem>>, vector<1x4x128xbf16>
    %5 = vector.shape_cast %4 : vector<1x4x128xbf16> to vector<4x128xbf16>
    %cst_6 = arith.constant dense<0.000000e+00> : vector<286x128xf32>
    %6 = tpu.matmul %3, %5, %cst_6 {dimension_numbers = #tpu.dot_dimension_numbers<[1], [0], [0], [1], [0, 0, 1, 1], [], []>} : vector<286x4xbf16>, vector<4x128xbf16>, vector<286x128xf32> -> vector<286x128xf32>
    %7 = arith.addf %0, %6 : vector<286x128xf32>
    %8 = vector.extract_strided_slice %2 {offsets = [1, 0], sizes = [286, 4], strides = [1, 1]} : vector<288x4xbf16> to vector<286x4xbf16>
    %c1 = arith.constant 1 : index
    %c0_7 = arith.constant 0 : index
    %c0_8 = arith.constant 0 : index
    %9 = vector.load %arg3[%c1, %c0_7, %c0_8] : memref<9x4x128xbf16, #tpu.memory_space<vmem>>, vector<1x4x128xbf16>
    %10 = vector.shape_cast %9 : vector<1x4x128xbf16> to vector<4x128xbf16>
    %cst_9 = arith.constant dense<0.000000e+00> : vector<286x128xf32>
    %11 = tpu.matmul %8, %10, %cst_9 {dimension_numbers = #tpu.dot_dimension_numbers<[1], [0], [0], [1], [0, 0, 1, 1], [], []>} : vector<286x4xbf16>, vector<4x128xbf16>, vector<286x128xf32> -> vector<286x128xf32>
    %12 = arith.addf %7, %11 : vector<286x128xf32>
    %13 = vector.extract_strided_slice %2 {offsets = [2, 0], sizes = [286, 4], strides = [1, 1]} : vector<288x4xbf16> to vector<286x4xbf16>
    %c2 = arith.constant 2 : index
    %c0_10 = arith.constant 0 : index
    %c0_11 = arith.constant 0 : index
    %14 = vector.load %arg3[%c2, %c0_10, %c0_11] : memref<9x4x128xbf16, #tpu.memory_space<vmem>>, vector<1x4x128xbf16>
    %15 = vector.shape_cast %14 : vector<1x4x128xbf16> to vector<4x128xbf16>
    %cst_12 = arith.constant dense<0.000000e+00> : vector<286x128xf32>
    %16 = tpu.matmul %13, %15, %cst_12 {dimension_numbers = #tpu.dot_dimension_numbers<[1], [0], [0], [1], [0, 0, 1, 1], [], []>} : vector<286x4xbf16>, vector<4x128xbf16>, vector<286x128xf32> -> vector<286x128xf32>
    %17 = arith.addf %12, %16 : vector<286x128xf32>
    %c1_13 = arith.constant 1 : index
    %c0_14 = arith.constant 0 : index
    %c0_15 = arith.constant 0 : index
    %c0_16 = arith.constant 0 : index
    %18 = vector.load %arg2[%c1_13, %c0_14, %c0_15, %c0_16] : memref<3x1x288x4xbf16, #tpu.memory_space<vmem>>, vector<1x1x288x4xbf16>
    %19 = vector.shape_cast %18 : vector<1x1x288x4xbf16> to vector<288x4xbf16>
    %20 = vector.extract_strided_slice %19 {offsets = [0, 0], sizes = [286, 4], strides = [1, 1]} : vector<288x4xbf16> to vector<286x4xbf16>
    %c3 = arith.constant 3 : index
    %c0_17 = arith.constant 0 : index
    %c0_18 = arith.constant 0 : index
    %21 = vector.load %arg3[%c3, %c0_17, %c0_18] : memref<9x4x128xbf16, #tpu.memory_space<vmem>>, vector<1x4x128xbf16>
    %22 = vector.shape_cast %21 : vector<1x4x128xbf16> to vector<4x128xbf16>
    %cst_19 = arith.constant dense<0.000000e+00> : vector<286x128xf32>
    %23 = tpu.matmul %20, %22, %cst_19 {dimension_numbers = #tpu.dot_dimension_numbers<[1], [0], [0], [1], [0, 0, 1, 1], [], []>} : vector<286x4xbf16>, vector<4x128xbf16>, vector<286x128xf32> -> vector<286x128xf32>
    %24 = arith.addf %17, %23 : vector<286x128xf32>
    %25 = vector.extract_strided_slice %19 {offsets = [1, 0], sizes = [286, 4], strides = [1, 1]} : vector<288x4xbf16> to vector<286x4xbf16>
    %c4 = arith.constant 4 : index
    %c0_20 = arith.constant 0 : index
    %c0_21 = arith.constant 0 : index
    %26 = vector.load %arg3[%c4, %c0_20, %c0_21] : memref<9x4x128xbf16, #tpu.memory_space<vmem>>, vector<1x4x128xbf16>
    %27 = vector.shape_cast %26 : vector<1x4x128xbf16> to vector<4x128xbf16>
    %cst_22 = arith.constant dense<0.000000e+00> : vector<286x128xf32>
    %28 = tpu.matmul %25, %27, %cst_22 {dimension_numbers = #tpu.dot_dimension_numbers<[1], [0], [0], [1], [0, 0, 1, 1], [], []>} : vector<286x4xbf16>, vector<4x128xbf16>, vector<286x128xf32> -> vector<286x128xf32>
    %29 = arith.addf %24, %28 : vector<286x128xf32>
    %30 = vector.extract_strided_slice %19 {offsets = [2, 0], sizes = [286, 4], strides = [1, 1]} : vector<288x4xbf16> to vector<286x4xbf16>
    %c5 = arith.constant 5 : index
    %c0_23 = arith.constant 0 : index
    %c0_24 = arith.constant 0 : index
    %31 = vector.load %arg3[%c5, %c0_23, %c0_24] : memref<9x4x128xbf16, #tpu.memory_space<vmem>>, vector<1x4x128xbf16>
    %32 = vector.shape_cast %31 : vector<1x4x128xbf16> to vector<4x128xbf16>
    %cst_25 = arith.constant dense<0.000000e+00> : vector<286x128xf32>
    %33 = tpu.matmul %30, %32, %cst_25 {dimension_numbers = #tpu.dot_dimension_numbers<[1], [0], [0], [1], [0, 0, 1, 1], [], []>} : vector<286x4xbf16>, vector<4x128xbf16>, vector<286x128xf32> -> vector<286x128xf32>
    %34 = arith.addf %29, %33 : vector<286x128xf32>
    %c2_26 = arith.constant 2 : index
    %c0_27 = arith.constant 0 : index
    %c0_28 = arith.constant 0 : index
    %c0_29 = arith.constant 0 : index
    %35 = vector.load %arg2[%c2_26, %c0_27, %c0_28, %c0_29] : memref<3x1x288x4xbf16, #tpu.memory_space<vmem>>, vector<1x1x288x4xbf16>
    %36 = vector.shape_cast %35 : vector<1x1x288x4xbf16> to vector<288x4xbf16>
    %37 = vector.extract_strided_slice %36 {offsets = [0, 0], sizes = [286, 4], strides = [1, 1]} : vector<288x4xbf16> to vector<286x4xbf16>
    %c6 = arith.constant 6 : index
    %c0_30 = arith.constant 0 : index
    %c0_31 = arith.constant 0 : index
    %38 = vector.load %arg3[%c6, %c0_30, %c0_31] : memref<9x4x128xbf16, #tpu.memory_space<vmem>>, vector<1x4x128xbf16>
    %39 = vector.shape_cast %38 : vector<1x4x128xbf16> to vector<4x128xbf16>
    %cst_32 = arith.constant dense<0.000000e+00> : vector<286x128xf32>
    %40 = tpu.matmul %37, %39, %cst_32 {dimension_numbers = #tpu.dot_dimension_numbers<[1], [0], [0], [1], [0, 0, 1, 1], [], []>} : vector<286x4xbf16>, vector<4x128xbf16>, vector<286x128xf32> -> vector<286x128xf32>
    %41 = arith.addf %34, %40 : vector<286x128xf32>
    %42 = vector.extract_strided_slice %36 {offsets = [1, 0], sizes = [286, 4], strides = [1, 1]} : vector<288x4xbf16> to vector<286x4xbf16>
    %c7 = arith.constant 7 : index
    %c0_33 = arith.constant 0 : index
    %c0_34 = arith.constant 0 : index
    %43 = vector.load %arg3[%c7, %c0_33, %c0_34] : memref<9x4x128xbf16, #tpu.memory_space<vmem>>, vector<1x4x128xbf16>
    %44 = vector.shape_cast %43 : vector<1x4x128xbf16> to vector<4x128xbf16>
    %cst_35 = arith.constant dense<0.000000e+00> : vector<286x128xf32>
    %45 = tpu.matmul %42, %44, %cst_35 {dimension_numbers = #tpu.dot_dimension_numbers<[1], [0], [0], [1], [0, 0, 1, 1], [], []>} : vector<286x4xbf16>, vector<4x128xbf16>, vector<286x128xf32> -> vector<286x128xf32>
    %46 = arith.addf %41, %45 : vector<286x128xf32>
    %47 = vector.extract_strided_slice %36 {offsets = [2, 0], sizes = [286, 4], strides = [1, 1]} : vector<288x4xbf16> to vector<286x4xbf16>
    %c8 = arith.constant 8 : index
    %c0_36 = arith.constant 0 : index
    %c0_37 = arith.constant 0 : index
    %48 = vector.load %arg3[%c8, %c0_36, %c0_37] : memref<9x4x128xbf16, #tpu.memory_space<vmem>>, vector<1x4x128xbf16>
    %49 = vector.shape_cast %48 : vector<1x4x128xbf16> to vector<4x128xbf16>
    %cst_38 = arith.constant dense<0.000000e+00> : vector<286x128xf32>
    %50 = tpu.matmul %47, %49, %cst_38 {dimension_numbers = #tpu.dot_dimension_numbers<[1], [0], [0], [1], [0, 0, 1, 1], [], []>} : vector<286x4xbf16>, vector<4x128xbf16>, vector<286x128xf32> -> vector<286x128xf32>
    %51 = arith.addf %46, %50 : vector<286x128xf32>
    %c0_39 = arith.constant 0 : index
    %c0_40 = arith.constant 0 : index
    %52 = vector.load %arg4[%c0_39, %c0_40] : memref<1x128xf32, #tpu.memory_space<vmem>>, vector<1x128xf32>
    %53 = vector.broadcast %52 : vector<1x128xf32> to vector<286x128xf32>
    %54 = arith.addf %51, %53 : vector<286x128xf32>
    %55 = arith.negf %54 : vector<286x128xf32>
    %56 = math.exp %55 : vector<286x128xf32>
    %cst_41 = arith.constant 1.000000e+00 : f32
    %57 = vector.broadcast %cst_41 : f32 to vector<286x128xf32>
    %58 = arith.addf %57, %56 : vector<286x128xf32>
    %59 = arith.divf %57, %58 : vector<286x128xf32>
    %60 = arith.mulf %54, %59 : vector<286x128xf32>
    %c0_42 = arith.constant 0 : index
    %c0_43 = arith.constant 0 : index
    %c0_44 = arith.constant 0 : index
    %c0_45 = arith.constant 0 : index
    %61 = vector.load %arg5[%c0_42, %c0_43, %c0_44, %c0_45] : memref<1x1x286x128xf32, #tpu.memory_space<vmem>>, vector<1x1x286x128xf32>
    %62 = vector.shape_cast %61 : vector<1x1x286x128xf32> to vector<286x128xf32>
    %63 = vector.shape_cast %60 : vector<286x128xf32> to vector<1x1x286x128xf32>
    tpu.vector_store %arg5[%c0_42, %c0_43, %c0_44, %c0_45], %63 {strides = array<i32>} : memref<1x1x286x128xf32, #tpu.memory_space<vmem>>, vector<1x1x286x128xf32>,
    return
  }
  func.func @transform_0(%arg0: i32, %arg1: i32) -> (i32, i32, i32, i32) {
    %c0_i32 = arith.constant 0 : i32
    %c0_i32_0 = arith.constant 0 : i32
    %c0_i32_1 = arith.constant 0 : i32
    return %c0_i32, %arg0, %arg1, %c0_i32_0 : i32, i32, i32, i32
  }
  func.func @transform_1(%arg0: i32, %arg1: i32) -> (i32, i32, i32) {
    %c0_i32 = arith.constant 0 : i32
    %c0_i32_0 = arith.constant 0 : i32
    %c0_i32_1 = arith.constant 0 : i32
    %c0_i32_2 = arith.constant 0 : i32
    return %c0_i32, %c0_i32_0, %c0_i32_1 : i32, i32, i32
  }
  func.func @transform_2(%arg0: i32, %arg1: i32) -> (i32, i32) {
    %c0_i32 = arith.constant 0 : i32
    %c0_i32_0 = arith.constant 0 : i32
    %c0_i32_1 = arith.constant 0 : i32
    return %c0_i32, %c0_i32_0 : i32, i32
  }
  func.func @transform_3(%arg0: i32, %arg1: i32) -> (i32, i32, i32, i32) {
    %c0_i32 = arith.constant 0 : i32
    %c0_i32_0 = arith.constant 0 : i32
    %c0_i32_1 = arith.constant 0 : i32
    return %arg0, %arg1, %c0_i32, %c0_i32_0 : i32, i32, i32, i32
  }
}

</mosaic_0001>

<bundles_post_ra>
// kernel: fused_conv_silu_nchw.1
= control target key start
LH: loop header
LB: loop body
LE: loop exit
PB: predicated region body
PF: predicated region fallthrough
CT: control target
= control target key end

     0   :  { %s4918_s12 = smov 0   ;;  %s4920_s13 = smov 0   ;;  %s6543_s0 = inlined_call_operand.vmem [shape: bf16[3,2,288,4], index: 0, kind: input, shape index: {}]   ;;  %s6544_s1 = inlined_call_operand.vmem [shape: bf16[9,4,128], index: 1, kind: input, shape index: {}]   ;;  %s6545_s2 = inlined_call_operand.vmem [shape: f32[1,128], index: 2, kind: input, shape index: {}]   ;;  %s6546_s3 = inlined_call_operand.vmem [shape: f32[2,1,286,128], index: 3, kind: output, shape index: {}]  }
   0x1   :  { %s4922_s14 = smov 0   ;;  %s4924_s15 = smov 0  }
   0x2   :  { %s4926_s16 = smov 0  }
   0x3 LB: > { %s25_s17 = sadd.s32 1, %s4892_s15  ;;  %p41_p1 = scmp.ne.s32.totalorder %s4884_s13, %s4880_s12  ;;  %s4896_s16 = sphi %s4926_s16, %s13_s16   ;;  %s4892_s15 = sphi %s4924_s15, %s6596_s15   ;;  %s4888_s14 = sphi %s4922_s14, %s6595_s14   ;;  %s4884_s13 = sphi %s4920_s13, %s6594_s13   ;;  %s4880_s12 = sphi %s4918_s12, %s6593_s12  }
   0x4   : > { %p27_p0 = scmp.ge.s32.totalorder %s25_s17, 2  ;;  %p42_p2 = scmp.eq.s32.totalorder %s4896_s16, 0 }
   0x5   : > { %s34_s19 = sadd.s32 1, %s4884_s13  ;;  %p4099_p5 = scmp.ge.s32.totalorder %s4896_s16, 2 }
   0x6   : > { %s6598_s17 = smov (%p27_p0, %s25_s17), 0  ;;  %p43_p3 = por %p42_p2, %p41_p1 }
   0x7   : > { %s29_s18 = ssub.s32 %s4892_s15, %s6598_s17  ;;  %143 = sbr.rel (%p4099_p5) target bundleno = 71 (0x47), region = 24 }
   0x8   : > { %p32_p4 = scmp.eq.s32.totalorder %s29_s18, 0 }
   0xa   : > { %s4953_s20 = scalar_select %p32_p4, %s4884_s13, %s34_s19  }
   0xc   : > { %146 = sbr.rel (!%p43_p3) target bundleno = 71 (0x47), region = 28  ;;  %s148_s21 = sand.u32 (%p43_p3), 1, %s4884_s13  }
   0xd   : > { %s4657_s22 = smul.u32 (%p43_p3), 144, %s4892_s15 }
   0xe   : > { %s4656_s23 = smul.u32 (%p43_p3), 432, %s148_s21 }
   0xf   : > { %s4961_s26 = scalar_lea.vmem (%p43_p3), %s6543_s0, %s4657_s22 }
  0x10   : > { %v172_v0 = vld [vmem:[%s4961_s26] sm:$0xff] (%p43_p3)   ;;  %v176_v1 = vld [vmem:[%s4961_s26 + $0x8] sm:$0xff] (%p43_p3)   ;;  %v180_v2 = vld [vmem:[%s4961_s26 + $0x10] sm:$0xff] (%p43_p3)   ;;  %s4966_s27 = scalar_lea.vmem (%p43_p3), [#allocation2], %s4656_s23 }
  0x11   : > { %173 = vst [vmem:[%s4966_s27] sm:$0xff] %v172_v0   ;;  %v184_v3 = vld [vmem:[%s4961_s26 + $0x18] sm:$0xff]   ;;  %v188_v4 = vld [vmem:[%s4961_s26 + $0x20] sm:$0xff]   ;;  %v192_v5 = vld [vmem:[%s4961_s26 + $0x28] sm:$0xff]  }
  0x12   : > { %177 = vst [vmem:[%s4966_s27 + $0x8] sm:$0xff] %v176_v1   ;;  %v196_v6 = vld [vmem:[%s4961_s26 + $0x30] sm:$0xff]   ;;  %v200_v7 = vld [vmem:[%s4961_s26 + $0x38] sm:$0xff]   ;;  %v204_v8 = vld [vmem:[%s4961_s26 + $0x40] sm:$0xff]  }
  0x13   : > { %181 = vst [vmem:[%s4966_s27 + $0x10] sm:$0xff] %v180_v2   ;;  %v208_v9 = vld [vmem:[%s4961_s26 + $0x48] sm:$0xff]   ;;  %v212_v10 = vld [vmem:[%s4961_s26 + $0x50] sm:$0xff]   ;;  %v216_v11 = vld [vmem:[%s4961_s26 + $0x58] sm:$0xff]  }
  0x14   : > { %185 = vst [vmem:[%s4966_s27 + $0x18] sm:$0xff] %v184_v3   ;;  %v220_v12 = vld [vmem:[%s4961_s26 + $0x60] sm:$0xff]   ;;  %v224_v13 = vld [vmem:[%s4961_s26 + $0x68] sm:$0xff]   ;;  %v228_v14 = vld [vmem:[%s4961_s26 + $0x70] sm:$0xff]  }
  0x15   : > { %189 = vst [vmem:[%s4966_s27 + $0x20] sm:$0xff] %v188_v4   ;;  %v232_v15 = vld [vmem:[%s4961_s26 + $0x78] sm:$0xff]   ;;  %v236_v16 = vld [vmem:[%s4961_s26 + $0x80] sm:$0xff]   ;;  %v240_v17 = vld [vmem:[%s4961_s26 + $0x88] sm:$0xff]  }
  0x16   : > { %193 = vst [vmem:[%s4966_s27 + $0x28] sm:$0xff] %v192_v5   ;;  %v244_v18 = vld [vmem:[%s4961_s26 + $0x120] sm:$0xff]   ;;  %v248_v19 = vld [vmem:[%s4961_s26 + $0x128] sm:$0xff]   ;;  %v252_v20 = vld [vmem:[%s4961_s26 + $0x130] sm:$0xff]  }
  0x17   : > { %197 = vst [vmem:[%s4966_s27 + $0x30] sm:$0xff] %v196_v6   ;;  %v256_v21 = vld [vmem:[%s4961_s26 + $0x138] sm:$0xff]   ;;  %v260_v22 = vld [vmem:[%s4961_s26 + $0x140] sm:$0xff]   ;;  %v264_v23 = vld [vmem:[%s4961_s26 + $0x148] sm:$0xff]  }
  0x18   : > { %201 = vst [vmem:[%s4966_s27 + $0x38] sm:$0xff] %v200_v7   ;;  %v268_v24 = vld [vmem:[%s4961_s26 + $0x150] sm:$0xff]   ;;  %v272_v25 = vld [vmem:[%s4961_s26 + $0x158] sm:$0xff]   ;;  %v276_v26 = vld [vmem:[%s4961_s26 + $0x160] sm:$0xff]  }
  0x19   : > { %205 = vst [vmem:[%s4966_s27 + $0x40] sm:$0xff] %v204_v8   ;;  %v280_v27 = vld [vmem:[%s4961_s26 + $0x168] sm:$0xff]   ;;  %v284_v28 = vld [vmem:[%s4961_s26 + $0x170] sm:$0xff]   ;;  %v288_v29 = vld [vmem:[%s4961_s26 + $0x178] sm:$0xff]  }
  0x1a   : > { %209 = vst [vmem:[%s4966_s27 + $0x48] sm:$0xff] %v208_v9   ;;  %v292_v30 = vld [vmem:[%s4961_s26 + $0x180] sm:$0xff]   ;;  %v296_v31 = vld [vmem:[%s4961_s26 + $0x188] sm:$0xff]   ;;  %v300_v32 = vld [vmem:[%s4961_s26 + $0x190] sm:$0xff]  }
  0x1b   : > { %213 = vst [vmem:[%s4966_s27 + $0x50] sm:$0xff] %v212_v10   ;;  %v304_v33 = vld [vmem:[%s4961_s26 + $0x198] sm:$0xff]   ;;  %v308_v34 = vld [vmem:[%s4961_s26 + $0x1a0] sm:$0xff]   ;;  %v312_v35 = vld [vmem:[%s4961_s26 + $0x1a8] sm:$0xff]  }
  0x1c   : > { %217 = vst [vmem:[%s4966_s27 + $0x58] sm:$0xff] %v216_v11   ;;  %v316_v36 = vld [vmem:[%s4961_s26 + $0x240] sm:$0xff]   ;;  %v320_v37 = vld [vmem:[%s4961_s26 + $0x248] sm:$0xff]   ;;  %v324_v38 = vld [vmem:[%s4961_s26 + $0x250] sm:$0xff]  }
  0x1d   : > { %221 = vst [vmem:[%s4966_s27 + $0x60] sm:$0xff] %v220_v12   ;;  %v328_v39 = vld [vmem:[%s4961_s26 + $0x258] sm:$0xff]   ;;  %v332_v40 = vld [vmem:[%s4961_s26 + $0x260] sm:$0xff]   ;;  %v336_v41 = vld [vmem:[%s4961_s26 + $0x268] sm:$0xff]  }
  0x1e   : > { %225 = vst [vmem:[%s4966_s27 + $0x68] sm:$0xff] %v224_v13   ;;  %v340_v42 = vld [vmem:[%s4961_s26 + $0x270] sm:$0xff]   ;;  %v344_v43 = vld [vmem:[%s4961_s26 + $0x278] sm:$0xff]   ;;  %v348_v44 = vld [vmem:[%s4961_s26 + $0x280] sm:$0xff]  }
  0x1f   : > { %229 = vst [vmem:[%s4966_s27 + $0x70] sm:$0xff] %v228_v14   ;;  %v352_v45 = vld [vmem:[%s4961_s26 + $0x288] sm:$0xff]   ;;  %v356_v46 = vld [vmem:[%s4961_s26 + $0x290] sm:$0xff]   ;;  %v360_v47 = vld [vmem:[%s4961_s26 + $0x298] sm:$0xff]  }
  0x20   : > { %233 = vst [vmem:[%s4966_s27 + $0x78] sm:$0xff] %v232_v15   ;;  %v364_v48 = vld [vmem:[%s4961_s26 + $0x2a0] sm:$0xff]   ;;  %v368_v49 = vld [vmem:[%s4961_s26 + $0x2a8] sm:$0xff]   ;;  %v372_v50 = vld [vmem:[%s4961_s26 + $0x2b0] sm:$0xff]  }
  0x21   : > { %237 = vst [vmem:[%s4966_s27 + $0x80] sm:$0xff] %v236_v16   ;;  %v376_v51 = vld [vmem:[%s4961_s26 + $0x2b8] sm:$0xff]   ;;  %v380_v52 = vld [vmem:[%s4961_s26 + $0x2c0] sm:$0xff]   ;;  %v384_v53 = vld [vmem:[%s4961_s26 + $0x2c8] sm:$0xff]  }
  0x22   : > { %241 = vst [vmem:[%s4966_s27 + $0x88] sm:$0xff] %v240_v17  }
  0x23   : > { %245 = vst [vmem:[%s4966_s27 + $0x90] sm:$0xff] %v244_v18  }
  0x24   : > { %249 = vst [vmem:[%s4966_s27 + $0x98] sm:$0xff] %v248_v19  }
  0x25   : > { %253 = vst [vmem:[%s4966_s27 + $0xa0] sm:$0xff] %v252_v20  }
  0x26   : > { %257 = vst [vmem:[%s4966_s27 + $0xa8] sm:$0xff] %v256_v21  }
  0x27   : > { %261 = vst [vmem:[%s4966_s27 + $0xb0] sm:$0xff] %v260_v22  }
  0x28   : > { %265 = vst [vmem:[%s4966_s27 + $0xb8] sm:$0xff] %v264_v23  }
  0x29   : > { %269 = vst [vmem:[%s4966_s27 + $0xc0] sm:$0xff] %v268_v24  }
  0x2a   : > { %273 = vst [vmem:[%s4966_s27 + $0xc8] sm:$0xff] %v272_v25  }
  0x2b   : > { %277 = vst [vmem:[%s4966_s27 + $0xd0] sm:$0xff] %v276_v26  }
  0x2c   : > { %281 = vst [vmem:[%s4966_s27 + $0xd8] sm:$0xff] %v280_v27  }
  0x2d   : > { %285 = vst [vmem:[%s4966_s27 + $0xe0] sm:$0xff] %v284_v28  }
  0x2e   : > { %289 = vst [vmem:[%s4966_s27 + $0xe8] sm:$0xff] %v288_v29  }
  0x2f   : > { %293 = vst [vmem:[%s4966_s27 + $0xf0] sm:$0xff] %v292_v30  }
  0x30   : > { %297 = vst [vmem:[%s4966_s27 + $0xf8] sm:$0xff] %v296_v31  }
  0x31   : > { %301 = vst [vmem:[%s4966_s27 + $0x100] sm:$0xff] %v300_v32  }
  0x32   : > { %305 = vst [vmem:[%s4966_s27 + $0x108] sm:$0xff] %v304_v33  }
  0x33   : > { %309 = vst [vmem:[%s4966_s27 + $0x110] sm:$0xff] %v308_v34  }
  0x34   : > { %313 = vst [vmem:[%s4966_s27 + $0x118] sm:$0xff] %v312_v35  }
  0x35   : > { %317 = vst [vmem:[%s4966_s27 + $0x120] sm:$0xff] %v316_v36  }
  0x36   : > { %321 = vst [vmem:[%s4966_s27 + $0x128] sm:$0xff] %v320_v37  }
  0x37   : > { %325 = vst [vmem:[%s4966_s27 + $0x130] sm:$0xff] %v324_v38  }
  0x38   : > { %329 = vst [vmem:[%s4966_s27 + $0x138] sm:$0xff] %v328_v39  }
  0x39   : > { %333 = vst [vmem:[%s4966_s27 + $0x140] sm:$0xff] %v332_v40  }
  0x3a   : > { %337 = vst [vmem:[%s4966_s27 + $0x148] sm:$0xff] %v336_v41  }
  0x3b   : > { %341 = vst [vmem:[%s4966_s27 + $0x150] sm:$0xff] %v340_v42  }
  0x3c   : > { %345 = vst [vmem:[%s4966_s27 + $0x158] sm:$0xff] %v344_v43  }
  0x3d   : > { %349 = vst [vmem:[%s4966_s27 + $0x160] sm:$0xff] %v348_v44  }
  0x3e   : > { %353 = vst [vmem:[%s4966_s27 + $0x168] sm:$0xff] %v352_v45  }
  0x3f   : > { %357 = vst [vmem:[%s4966_s27 + $0x170] sm:$0xff] %v356_v46  }
  0x40   : > { %361 = vst [vmem:[%s4966_s27 + $0x178] sm:$0xff] %v360_v47  }
  0x41   : > { %365 = vst [vmem:[%s4966_s27 + $0x180] sm:$0xff] %v364_v48  }
  0x42   : > { %369 = vst [vmem:[%s4966_s27 + $0x188] sm:$0xff] %v368_v49  }
  0x43   : > { %373 = vst [vmem:[%s4966_s27 + $0x190] sm:$0xff] %v372_v50  }
  0x44   : > { %377 = vst [vmem:[%s4966_s27 + $0x198] sm:$0xff] %v376_v51  }
  0x45   : > { %381 = vst [vmem:[%s4966_s27 + $0x1a0] sm:$0xff] %v380_v52  }
  0x46   : > { %385 = vst [vmem:[%s4966_s27 + $0x1a8] sm:$0xff] %v384_v53  }
  0x47 PF: > { %p4101_p6 = scmp.ge.s32.totalorder %s4896_s16, 1  ;;  %p626_p7 = scmp.lt.s32.totalorder %s4896_s16, 3 }
  0x49   : > { %p627_p8 = pnand %p4101_p6, %p626_p7 }
  0x4b   : > { %630 = sbr.rel (%p627_p8) target bundleno = 916 (0x394), region = 69 }
  0x50   : > { %v4103_v54 = vld [vmem:[%s6544_s1 + $0x2] sm:$0x3]  ;;  %vm999_vm0 = vcmask 1041408   ;;  %s633_s30 = sand.u32 1, %s4880_s12   ;;  %v4212_v56 = vld [vmem:[%s6544_s1 + $0x4] sm:$0x3] }
  0x51   : > { %v1001_v55 = vsel %vm999_vm0, %v4103_v54, 0  ;;  %s4658_s4 = smul.u32 432, %s633_s30  ;;  %v1333_v57 = vsel %vm999_vm0, %v4212_v56, 0  ;;  %v707_v58 = vld [vmem:[%s6544_s1] sm:$0x3]  ;;  %vm944_vm2 = vcmask 31744  }
  0x52   : > { %4653 = vmatpush.bf16.msra.mxu1 %v1001_v55  ;;  %4654 = vmatpush.bf16.msra.mxu2 %v1001_v55  ;;  %v4358_v59 = vld [vmem:[%s6544_s1 + $0x8] sm:$0x3]  ;;  %v1139_v60 = vsel %vm999_vm0, %v707_v58, 0  ;;  %vm800_vm1 = vsmask.f32 7424  ;;  %vm1242_vm3 = vcmask 1046528  }
  0x53   : > { %1010 = vmatpush.bf16.msra.mxu0 %v1001_v55  ;;  %v1973_v61 = vsel %vm999_vm0, %v4358_v59, 0  ;;  %s5092_s11 = scalar_lea.vmem [#allocation2], %s4658_s4  ;;  %4655 = vmatpush.bf16.msra.mxu3 %v1001_v55  ;;  %v4267_v35 = vld [vmem:[%s6544_s1 + $0x6] sm:$0x3]  ;;  %p661_p9 = scmp.lt.s32.totalorder %s4888_s14, 1 }
  0x54   : > { %v5095_v62 = vld [vmem:[%s5092_s11 + $0x28] sm:$0xff]  ;;  %v5098_v63 = vld [vmem:[%s5092_s11 + $0x30] sm:$0xff]  ;;  %v5104_v1 = vld [vmem:[%s5092_s11 + $0x58] sm:$0xff]  ;;  %v1654_v43 = vsel %vm999_vm0, %v4267_v35, 0 }
  0x55   : > { %v5101_v0 = vld [vmem:[%s5092_s11 + $0x50] sm:$0xff]  ;;  %v5107_v2 = vld [vmem:[%s5092_s11] sm:$0xff]  ;;  %v5110_v3 = vld [vmem:[%s5092_s11 + $0x8] sm:$0xff]  ;;  %v841_v4 = vshll.u32 %v5095_v62, 16  ;;  %v845_v5 = vshrl.u32 %v5095_v62, 16  ;;  %v849_v6 = vshll.u32 %v5098_v63, 16 }
  0x56   : > { %1342 = vmatpush.bf16.msrb.mxu2 %v1333_v57  ;;  %1148 = vmatpush.bf16.msrb.mxu1 %v1139_v60  ;;  %v881_v7 = vshll.u32 %v5101_v0, 16  ;;  %v885_v8 = vshrl.u32 %v5101_v0, 16  ;;  %v889_v9 = vshll.u32 %v5104_v1, 16  ;;  %v802_v10 = vshrl.u32 %v5107_v2, 16  ;;  %v5128_v21 = vld [vmem:[%s5092_s11 + $0x78] sm:$0xff]  ;;  %v5131_v22 = vld [vmem:[%s5092_s11 + $0x80] sm:$0xff] }
  0x57   : > { %1982 = vmatpush.bf16.msrb.mxu0 %v1973_v61  ;;  %v804_v11 = vshll.u32 %v5107_v2, 16  ;;  %v5120_v12 = vrot.slane %v841_v4, 1  ;;  %v851_v13 = vrot.slane %v849_v6, 1  ;;  %v809_v15 = vshll.u32 %v5110_v3, 16  ;;  %v5140_v27 = vld [vmem:[%s5092_s11 + $0x38] sm:$0xff]  ;;  %v5143_v28 = vld [vmem:[%s5092_s11 + $0x60] sm:$0xff]  ;;  %1663 = vmatpush.bf16.msrb.mxu3 %v1654_v43 }
  0x58   : > { %v5122_v14 = vrot.slane %v881_v7, 1  ;;  %v891_v16 = vrot.slane %v889_v9, 1  ;;  %v921_v29 = vshll.u32 %v5128_v21, 16  ;;  %v925_v30 = vshrl.u32 %v5128_v21, 16  ;;  %v5149_v32 = vld [vmem:[%s5092_s11 + $0x10] sm:$0xff]  ;;  %v5167_v49 = vld [vmem:[%s5092_s11 + $0x88] sm:$0xff] }
  0x59   : > { %v806_v17 = vrot.slane %v804_v11, 1  ;;  %v847_v18 = vor.u32 %v845_v5, %v5120_v12  ;;  %v811_v20 = vrot.slane %v809_v15, 1  ;;  %v929_v31 = vshll.u32 %v5131_v22, 16  ;;  %v5178_v57 = vld [vmem:[%s5092_s11 + $0x40] sm:$0xff]  ;;  %v5181_v58 = vld [vmem:[%s5092_s11 + $0x68] sm:$0xff]  ;;  %v5184_v61 = vld [vmem:[%s5092_s11 + $0x18] sm:$0xff] }
  0x5a   : > { %v887_v19 = vor.u32 %v885_v8, %v5122_v14  ;;  %v5151_v33 = vrot.slane %v921_v29, 1  ;;  %v853_v36 = vshrl.u32 %v5098_v63, 16  ;;  %v857_v37 = vshll.u32 %v5140_v27, 16  ;;  %v5208_v29 = vld [vmem:[%s5092_s11 + $0x20] sm:$0xff]  ;;  %s6600_s14 = smov (!%p661_p9, %s4888_s14), 1 }
  0x5b   : > { %v807_v23 = vor.u32 %v806_v17, %v802_v10  ;;  %v852_v24 = vsel %vm800_vm1, %v847_v18, %v851_v13  ;;  %v931_v34 = vrot.slane %v929_v31, 1  ;;  %v893_v38 = vshrl.u32 %v5104_v1, 16  ;;  %s4659_s30 = smul.u32 288, %s6600_s14 }
  0x5c   : > { %v892_v25 = vsel %vm800_vm1, %v887_v19, %v891_v16  ;;  %4181 = vmatmul.msk.bf16.vlgmr.msra.gmra.mxu1 %vm944_vm2, %v852_v24  ;;  %v897_v39 = vshll.u32 %v5143_v28, 16  ;;  %v927_v40 = vor.u32 %v925_v30, %v5151_v33  ;;  %v813_v41 = vshrl.u32 %v5110_v3, 16 }
  0x5d   : > { %4186 = vmatmul.msk.bf16.vlgmr.msra.gmra.mxu2 %vm944_vm2, %v892_v25  ;;  %v812_v26 = vsel %vm800_vm1, %v807_v23, %v811_v20  ;;  %v817_v42 = vshll.u32 %v5149_v32, 16  ;;  %v855_v45 = vor.u32 %v853_v36, %v851_v13  ;;  %v859_v46 = vrot.slane %v857_v37, 1  ;;  %v5202_v25 = vld [vmem:[%s5092_s11 + $0x48] sm:$0xff]  ;;  %s5880_s5 = scalar_lea.vmem %s6546_s3, %s4659_s30 }
  0x5e   : > { %4176 = vmatmul.msk.bf16.vlgmr.msra.gmra.mxu0 %vm944_vm2, %v812_v26  ;;  %v932_v44 = vsel %vm800_vm1, %v927_v40, %v931_v34  ;;  %v895_v47 = vor.u32 %v893_v38, %v891_v16  ;;  %v899_v48 = vrot.slane %v897_v39, 1  ;;  %v815_v50 = vor.u32 %v813_v41, %v811_v20  ;;  %v5205_v26 = vld [vmem:[%s5092_s11 + $0x70] sm:$0xff] }
  0x5f   : > { %4191 = vmatmul.msk.bf16.vlgmr.msra.gmra.mxu3 %vm944_vm2, %v932_v44  ;;  %v819_v51 = vrot.slane %v817_v42, 1  ;;  %v860_v52 = vsel %vm800_vm1, %v855_v45, %v859_v46  ;;  %v933_v54 = vshrl.u32 %v5131_v22, 16  ;;  %v937_v55 = vshll.u32 %v5167_v49, 16 }
  0x60   : > { %v900_v53 = vsel %vm800_vm1, %v895_v47, %v899_v48  ;;  %v861_v4 = vshrl.u32 %v5140_v27, 16  ;;  %v865_v5 = vshll.u32 %v5178_v57, 16  ;;  %v901_v6 = vshrl.u32 %v5143_v28, 16 }
  0x61   : > { %v820_v56 = vsel %vm800_vm1, %v815_v50, %v819_v51  ;;  %v935_v59 = vor.u32 %v933_v54, %v931_v34  ;;  %v939_v60 = vrot.slane %v937_v55, 1  ;;  %v905_v7 = vshll.u32 %v5181_v58, 16  ;;  %v4542_v55 = vld [vmem:[%s6544_s1 + $0x10] sm:$0x3] }
  0x62   : > { %v821_v9 = vshrl.u32 %v5149_v32, 16  ;;  %v825_v10 = vshll.u32 %v5184_v61, 16  ;;  %v863_v11 = vor.u32 %v861_v4, %v859_v46  ;;  %v867_v13 = vrot.slane %v865_v5, 1 }
  0x63   : > { %v940_v8 = vsel %vm800_vm1, %v935_v59, %v939_v60  ;;  %v903_v15 = vor.u32 %v901_v6, %v899_v48  ;;  %v907_v16 = vrot.slane %v905_v7, 1  ;;  %v941_v24 = vshrl.u32 %v5167_v49, 16  ;;  %v4432_v48 = vld [vmem:[%s6544_s1 + $0xc] sm:$0x3]  ;;  %v5240_v59 = vld [vmem:[%s5092_s11 + $0x90] sm:$0xff] }
  0x64   : > { %v823_v17 = vor.u32 %v821_v9, %v819_v51  ;;  %v827_v18 = vrot.slane %v825_v10, 1  ;;  %v868_v19 = vsel %vm800_vm1, %v863_v11, %v867_v13  ;;  %v869_v31 = vshrl.u32 %v5178_v57, 16  ;;  %v4523_v51 = vld [vmem:[%s6544_s1 + $0xe] sm:$0x3] }
  0x65   : > { %v908_v20 = vsel %vm800_vm1, %v903_v15, %v907_v16  ;;  %v943_v30 = vor.u32 %v941_v24, %v939_v60  ;;  %v873_v34 = vshll.u32 %v5202_v25, 16  ;;  %v909_v35 = vshrl.u32 %v5181_v58, 16  ;;  %v5273_v24 = vld [vmem:[%s5092_s11 + $0xa0] sm:$0xff] }
  0x66   : > { %v828_v23 = vsel %vm800_vm1, %v823_v17, %v827_v18  ;;  %v913_v36 = vshll.u32 %v5205_v26, 16  ;;  %v829_v37 = vshrl.u32 %v5184_v61, 16  ;;  %v833_v38 = vshll.u32 %v5208_v29, 16 }
  0x67   : > { %v871_v39 = vor.u32 %v869_v31, %v867_v13  ;;  %v875_v40 = vrot.slane %v873_v34, 1  ;;  %v911_v41 = vor.u32 %v909_v35, %v907_v16  ;;  %v2523_v50 = vsel %vm999_vm0, %v4432_v48, 0  ;;  %v5257_v13 = vld [vmem:[%s5092_s11 + $0x98] sm:$0xff] }
  0x68   : > { %v915_v42 = vrot.slane %v913_v36, 1  ;;  %v831_v43 = vor.u32 %v829_v37, %v827_v18  ;;  %v835_v44 = vrot.slane %v833_v38, 1  ;;  %2532 = vmatpush.bf16.msra.mxu2 %v2523_v50  ;;  %v877_v60 = vshrl.u32 %v5202_v25, 16  ;;  %v5287_v38 = vld [vmem:[%s5092_s11 + $0xa8] sm:$0xff] }
  0x69   : > { %v876_v45 = vsel %vm800_vm1, %v871_v39, %v875_v40  ;;  %v917_v4 = vshrl.u32 %v5205_v26, 16  ;;  %v837_v5 = vshrl.u32 %v5208_v29, 16  ;;  %v1795_v15 = vshll.u32 %v5240_v59, 16 }
  0x6a   : > { %v916_v46 = vsel %vm800_vm1, %v911_v41, %v915_v42  ;;  %v836_v47 = vsel %vm800_vm1, %v831_v43, %v835_v44  ;;  %v879_v6 = vor.u32 %v877_v60, %v875_v40  ;;  %v1793_v16 = vshrl.u32 %v5240_v59, 16 }
  0x6b   : > { %v919_v7 = vor.u32 %v917_v4, %v915_v42  ;;  %v1799_v17 = vshll.u32 %v5257_v13, 16  ;;  %v1806_v31 = vshll.u32 %v5273_v24, 16  ;;  %v1246_v34 = vrot.slane %v5149_v32, 1 }
  0x6c   : > { %4182 = vmatmul.msk.bf16.gmra.mxu1 %vm944_vm2, %v860_v52  ;;  %v4377_v52 = vld [vmem:[%s6544_s1 + $0xa] sm:$0x3]  ;;  %v884_v9 = vsel %vm800_vm1, %v879_v6, %v5122_v14  ;;  %v1797_v14 = vrot.slane %v1795_v15, 1  ;;  %v1810_v39 = vshrl.u32 %v5273_v24, 16  ;;  %v1813_v40 = vshll.u32 %v5287_v38, 16 }
  0x6d   : > { %4187 = vmatmul.msk.bf16.gmra.mxu2 %vm944_vm2, %v900_v53  ;;  %v2842_v53 = vsel %vm999_vm0, %v4523_v51, 0  ;;  %v2202_v54 = vsel %vm999_vm0, %v4377_v52, 0  ;;  %v924_v10 = vsel %vm800_vm1, %v919_v7, %v5151_v33  ;;  %v1244_v33 = vrot.slane %v5110_v3, 1 }
  0x6e   : > { %4177 = vmatmul.msk.bf16.gmra.mxu0 %vm944_vm2, %v820_v56  ;;  %2851 = vmatpush.bf16.msra.mxu3 %v2842_v53  ;;  %v3071_v56 = vsel %vm999_vm0, %v4542_v55, 0  ;;  %v1798_v18 = vor.u32 %v1797_v14, %v1793_v16  ;;  %v1808_v36 = vrot.slane %v1806_v31, 1  ;;  %v1248_v41 = vrot.slane %v5184_v61, 1  ;;  %v5319_v55 = vld [vmem:[%s5092_s11 + $0xb8] sm:$0xff] }
  0x6f   : > { %4192 = vmatmul.msk.bf16.gmra.mxu3 %vm944_vm2, %v940_v8  ;;  %2211 = vmatpush.bf16.msra.mxu1 %v2202_v54  ;;  %v839_v8 = vor.u32 %v837_v5, %v835_v44  ;;  %v1247_v37 = vsel %vm1242_vm3, %v1244_v33, %v1246_v34  ;;  %v1815_v43 = vrot.slane %v1813_v40, 1  ;;  %v1250_v48 = vrot.slane %v5208_v29, 1  ;;  %6551 = vst [vmem:[#allocation3_spill] sm:$0xff] %v5319_v55  ;;  %v4624_v40 = vld [vmem:[%s5092_s11 + $0xc8] sm:$0xff] }
  0x70   : > { %3080 = vmatpush.bf16.msra.mxu0 %v3071_v56  ;;  %v1812_v42 = vor.u32 %v1810_v39, %v1808_v36  ;;  %v1249_v44 = vsel %vm1242_vm3, %v1246_v34, %v1248_v41  ;;  %v1827_v6 = vshll.u32 %v5319_v55, 16 }
  0x71   : > { %v844_v11 = vsel %vm800_vm1, %v839_v8, %v5120_v12  ;;  %v1243_v12 = vrot.slane %v5107_v2, 1 }
  0x72   : > { %v1829_v8 = vrot.slane %v1827_v6, 1 }
  0x7c   : > { %4183 = vmatmul.msk.bf16.gmra.mxu1 %vm944_vm2, %v868_v19  ;;  %v1801_v19 = vrot.slane %v1799_v17, 1  ;;  %v5347_v17 = vld [vmem:[%s5092_s11 + $0xc0] sm:$0xff] }
  0x7d   : > { %4188 = vmatmul.msk.bf16.gmra.mxu2 %vm944_vm2, %v908_v20  ;;  %v1245_v20 = vsel %vm1242_vm3, %v1243_v12, %v1244_v33  ;;  %6553 = vst [vmem:[#allocation5_spill] sm:$0xff] %v5347_v17 }
  0x7e   : > { %4178 = vmatmul.msk.bf16.gmra.mxu0 %vm944_vm2, %v828_v23  ;;  %v1802_v23 = vsel %vm800_vm1, %v1798_v18, %v1801_v19 }
  0x7f   : > { %4193 = vmatmul.msk.bf16.gmra.mxu3 %vm944_vm2, %v943_v30  ;;  %v1803_v30 = vshrl.u32 %v5257_v13, 16 }
  0x81   : > { %v1805_v35 = vor.u32 %v1803_v30, %v1801_v19 }
  0x8c   : > { %4184 = vmatmul.msk.bf16.gmra.mxu1 %vm944_vm2, %v876_v45  ;;  %v5301_v45 = vld [vmem:[%s5092_s11 + $0xb0] sm:$0xff] }
  0x8d   : > { %4189 = vmatmul.msk.bf16.gmra.mxu2 %vm944_vm2, %v916_v46  ;;  %v1817_v46 = vshrl.u32 %v5287_v38, 16  ;;  %v1824_v5 = vshrl.u32 %v5301_v45, 16 }
  0x8e   : > { %4179 = vmatmul.msk.bf16.gmra.mxu0 %vm944_vm2, %v836_v47  ;;  %v1820_v47 = vshll.u32 %v5301_v45, 16 }
  0x8f   : > { %4340 = vmatmul.msk.bf16.vlgmr.msrb.gmra.mxu3 %vm944_vm2, %v5240_v59  ;;  %v1819_v50 = vor.u32 %v1817_v46, %v1815_v43  ;;  %v1841_v46 = vshll.u32 %v4624_v40, 16 }
  0x90   : > { %v1822_v51 = vrot.slane %v1820_v47, 1 }
  0x92   : > { %v1823_v54 = vsel %vm800_vm1, %v1819_v50, %v1822_v51  ;;  %v1826_v7 = vor.u32 %v1824_v5, %v1822_v51 }
  0x94   : > { %v1830_v14 = vsel %vm800_vm1, %v1826_v7, %v1829_v8 }
  0x9c   : > { %4185 = vmatmul.msk.bf16.gmra.mxu1 %vm944_vm2, %v884_v9 }
  0x9d   : > { %4190 = vmatmul.msk.bf16.gmra.mxu2 %vm944_vm2, %v924_v10 }
  0x9e   : > { %4180 = vmatmul.msk.bf16.gmra.mxu0 %vm944_vm2, %v844_v11 }
  0x9f   : > { %4341 = vmatmul.msk.bf16.gmra.mxu3 %vm944_vm2, %v5257_v13 }
  0xac   : > { %4194 = vmatmul.msk.bf16.vlgmr.msrb.gmra.mxu1 %vm944_vm2, %v5107_v2  ;;  %v1809_v2 = vsel %vm800_vm1, %v1805_v35, %v1808_v36 }
  0xad   : > { %4213 = vmatmul.msk.bf16.vlgmr.msrb.gmra.mxu2 %vm944_vm2, %v1245_v20  ;;  %v1831_v20 = vshrl.u32 %v5319_v55, 16 }
  0xae   : > { %4359 = vmatmul.msk.bf16.vlgmr.msrb.gmra.mxu0 %vm944_vm2, %v1802_v23  ;;  %v1834_v23 = vshll.u32 %v5347_v17, 16 }
  0xaf   : > { %4342 = vmatmul.msk.bf16.gmra.mxu3 %vm944_vm2, %v5273_v24  ;;  %v1833_v30 = vor.u32 %v1831_v20, %v1829_v8  ;;  %v1845_v20 = vshrl.u32 %v4624_v40, 16 }
  0xb0   : > { %v1836_v31 = vrot.slane %v1834_v23, 1 }
  0xb2   : > { %v1837_v39 = vsel %vm800_vm1, %v1833_v30, %v1836_v31 }
  0xbc   : > { %4195 = vmatmul.msk.bf16.gmra.mxu1 %vm944_vm2, %v5110_v3  ;;  %v1816_v3 = vsel %vm800_vm1, %v1812_v42, %v1815_v43 }
  0xbd   : > { %4214 = vmatmul.msk.bf16.gmra.mxu2 %vm944_vm2, %v1247_v37 }
  0xbe   : > { %4360 = vmatmul.msk.bf16.gmra.mxu0 %vm944_vm2, %v1809_v2 }
  0xbf   : > { %4343 = vmatmul.msk.bf16.gmra.mxu3 %vm944_vm2, %v5287_v38 }
  0xcc   : > { %4196 = vmatmul.msk.bf16.gmra.mxu1 %vm944_vm2, %v5149_v32  ;;  %v1251_v32 = vsel %vm1242_vm3, %v1248_v41, %v1250_v48 }
  0xcd   : > { %4215 = vmatmul.msk.bf16.gmra.mxu2 %vm944_vm2, %v1249_v44 }
  0xce   : > { %4361 = vmatmul.msk.bf16.gmra.mxu0 %vm944_vm2, %v1816_v3  ;;  %v1838_v3 = vshrl.u32 %v5347_v17, 16 }
  0xcf   : > { %4344 = vmatmul.msk.bf16.gmra.mxu3 %vm944_vm2, %v5301_v45 }
  0xd0   : > { %v1840_v47 = vor.u32 %v1838_v3, %v1836_v31 }
  0xd9   : > { %v5308_v52 = vpop.f32.mrf.mxu1 }
  0xdb   : > { %v5311_v53 = vpop.f32.mrf.mxu0 }
  0xdc   : > { %4197 = vmatmul.msk.bf16.gmra.mxu1 %vm944_vm2, %v5184_v61  ;;  %v1252_v61 = vrot.slane %v5095_v62, 1 }
  0xdd   : > { %4216 = vmatmul.msk.bf16.gmra.mxu2 %vm944_vm2, %v1251_v32 }
  0xde   : > { %4362 = vmatmul.msk.bf16.gmra.mxu0 %vm944_vm2, %v1823_v54  ;;  %v1253_v15 = vsel %vm1242_vm3, %v1250_v48, %v1252_v61  ;;  %v1843_v48 = vrot.slane %v1841_v46, 1 }
  0xdf   : > { %4345 = vmatmul.msk.bf16.gmra.mxu3 %vm944_vm2, %v5319_v55 }
  0xe0   : > { %v5321_v56 = vpop.f32.mrf.mxu2  ;;  %v1844_v6 = vsel %vm800_vm1, %v1840_v47, %v1843_v48 }
  0xe1   : > { %v5323_v60 = vpop.f32.mrf.mxu1 }
  0xe2   : > { %v5334_v10 = vpop.f32.mrf.mxu3 }
  0xe3   : > { %v5325_v4 = vpop.f32.mrf.mxu0  ;;  %6552 = vst [vmem:[#allocation4_spill] sm:$0xff] %v5334_v10 }
  0xe8   : > { %v5332_v9 = vpop.f32.mrf.mxu2 }
  0xe9   : > { %v5336_v11 = vpop.f32.mrf.mxu1 }
  0xea   : > { %v5351_v33 = vpop.f32.mrf.mxu3 }
  0xeb   : > { %v5339_v16 = vpop.f32.mrf.mxu0  ;;  %6554 = vst [vmem:[#allocation6_spill] sm:$0xff] %v5351_v33 }
  0xec   : > { %4198 = vmatmul.msk.bf16.gmra.mxu1 %vm944_vm2, %v5208_v29  ;;  %v1254_v29 = vrot.slane %v5098_v63, 1 }
  0xed   : > { %4217 = vmatmul.msk.bf16.gmra.mxu2 %vm944_vm2, %v1253_v15 }
  0xee   : > { %4363 = vmatmul.msk.bf16.gmra.mxu0 %vm944_vm2, %v1830_v14  ;;  %v1255_v37 = vsel %vm1242_vm3, %v1252_v61, %v1254_v29  ;;  %v4625_v61 = vld [vmem:[%s5092_s11 + $0xd0] sm:$0xff] }
  0xef   : > { %4346 = vmatmul.msk.bf16.gmra.mxu3 %vm944_vm2, %v5347_v17  ;;  %v1848_v23 = vshll.u32 %v4625_v61, 16 }
  0xf0   : > { %v5349_v12 = vpop.f32.mrf.mxu2 }
  0xf1   : > { %v5353_v18 = vpop.f32.mrf.mxu1  ;;  %v1850_v30 = vrot.slane %v1848_v23, 1 }
  0xf2   : > { %v5364_v35 = vpop.f32.mrf.mxu3 }
  0xf3   : > { %v5355_v19 = vpop.f32.mrf.mxu0  ;;  %6555 = vst [vmem:[#allocation7_spill] sm:$0xff] %v5364_v35 }
  0xf8   : > { %v5362_v34 = vpop.f32.mrf.mxu2 }
  0xf9   : > { %v5366_v36 = vpop.f32.mrf.mxu1 }
  0xfa   : > { %v5379_v42 = vpop.f32.mrf.mxu3 }
  0xfb   : > { %v5369_v2 = vpop.f32.mrf.mxu0  ;;  %6556 = vst [vmem:[#allocation8_spill] sm:$0xff] %v5379_v42 }
  0xfc   : > { %4199 = vmatmul.msk.bf16.gmra.mxu1 %vm944_vm2, %v5095_v62  ;;  %v1256_v62 = vrot.slane %v5140_v27, 1 }
  0xfd   : > { %4218 = vmatmul.msk.bf16.gmra.mxu2 %vm944_vm2, %v1255_v37 }
  0xfe   : > { %4364 = vmatmul.msk.bf16.gmra.mxu0 %vm944_vm2, %v1837_v39  ;;  %v1257_v54 = vsel %vm1242_vm3, %v1254_v29, %v1256_v62  ;;  %v1847_v29 = vor.u32 %v1845_v20, %v1843_v48 }
  0xff   : > { %4347 = vmatmul.msk.bf16.gmra.mxu3 %vm944_vm2, %v4624_v40  ;;  %v4626_v40 = vld [vmem:[%s5092_s11 + $0xd8] sm:$0xff] }
 0x100   : > { %v5377_v41 = vpop.f32.mrf.mxu2  ;;  %v1851_v47 = vsel %vm800_vm1, %v1847_v29, %v1850_v30  ;;  %v1855_v23 = vshll.u32 %v4626_v40, 16  ;;  %v1260_v29 = vrot.slane %v5202_v25, 1 }
 0x101   : > { %v5381_v43 = vpop.f32.mrf.mxu1 }
 0x102   : > { %v5390_v51 = vpop.f32.mrf.mxu3 }
 0x103   : > { %v5383_v44 = vpop.f32.mrf.mxu0  ;;  %6557 = vst [vmem:[#allocation9_spill] sm:$0xff] %v5390_v51 }
 0x108   : > { %v5388_v50 = vpop.f32.mrf.mxu2 }
 0x109   : > { %v5392_v32 = vpop.f32.mrf.mxu1 }
 0x10a   : > { %v5405_v8 = vpop.f32.mrf.mxu3 }
 0x10b   : > { %v5395_v5 = vpop.f32.mrf.mxu0  ;;  %6559 = vst [vmem:[#allocation11_spill] sm:$0xff] %v5405_v8  ;;  %v1857_v8 = vrot.slane %v1855_v23, 1 }
 0x10c   : > { %4200 = vmatmul.msk.bf16.gmra.mxu1 %vm944_vm2, %v5098_v63  ;;  %v1258_v63 = vrot.slane %v5178_v57, 1 }
 0x10d   : > { %4219 = vmatmul.msk.bf16.gmra.mxu2 %vm944_vm2, %v1257_v54 }
 0x10e   : > { %4365 = vmatmul.msk.bf16.gmra.mxu0 %vm944_vm2, %v1844_v6  ;;  %v1259_v3 = vsel %vm1242_vm3, %v1256_v62, %v1258_v63  ;;  %v1852_v62 = vshrl.u32 %v4625_v61, 16  ;;  %v1261_v42 = vsel %vm1242_vm3, %v1258_v63, %v1260_v29  ;;  %v1859_v63 = vshrl.u32 %v4626_v40, 16 }
 0x10f   : > { %4348 = vmatmul.msk.bf16.gmra.mxu3 %vm944_vm2, %v4625_v61 }
 0x110   : > { %v5403_v7 = vpop.f32.mrf.mxu2 }
 0x111   : > { %6558 = vst [vmem:[#allocation10_spill] sm:$0xff] %v5403_v7  ;;  %v5407_v15 = vpop.f32.mrf.mxu1 }
 0x112   : > { %v1665_v37 = vpop.f32.mrf.mxu3 }
 0x113   : > { %v5409_v14 = vpop.f32.mrf.mxu0 }
 0x118   : > { %v5413_v31 = vpop.f32.mrf.mxu2 }
 0x119   : > { %6560 = vst [vmem:[#allocation12_spill] sm:$0xff] %v5413_v31  ;;  %v5415_v39 = vpop.f32.mrf.mxu1 }
 0x11a   : > { %v1667_v54 = vpop.f32.mrf.mxu3 }
 0x11b   : > { %v5418_v46 = vpop.f32.mrf.mxu0 }
 0x11c   : > { %4201 = vmatmul.msk.bf16.gmra.mxu1 %vm944_vm2, %v5140_v27  ;;  %v1854_v27 = vor.u32 %v1852_v62, %v1850_v30  ;;  %v4627_v30 = vld [vmem:[%s5092_s11 + $0xe0] sm:$0xff] }
 0x11d   : > { %4220 = vmatmul.msk.bf16.gmra.mxu2 %vm944_vm2, %v1259_v3  ;;  %v1862_v31 = vshll.u32 %v4627_v30, 16 }
 0x11e   : > { %4366 = vmatmul.msk.bf16.gmra.mxu0 %vm944_vm2, %v1851_v47  ;;  %v1858_v33 = vsel %vm800_vm1, %v1854_v27, %v1857_v8 }
 0x11f   : > { %4349 = vmatmul.msk.bf16.gmra.mxu3 %vm944_vm2, %v4626_v40 }
 0x120   : > { %v5426_v48 = vpop.f32.mrf.mxu2 }
 0x121   : > { %6561 = vst [vmem:[#allocation13_spill] sm:$0xff] %v5426_v48  ;;  %v5428_v6 = vpop.f32.mrf.mxu1 }
 0x122   : > { %v1670_v47 = vpop.f32.mrf.mxu3 }
 0x123   : > { %v5430_v20 = vpop.f32.mrf.mxu0 }
 0x128   : > { %v5434_v3 = vpop.f32.mrf.mxu2 }
 0x129   : > { %6562 = vst [vmem:[#allocation14_spill] sm:$0xff] %v5434_v3  ;;  %v1150_v51 = vpop.f32.mrf.mxu1 }
 0x12a   : > { %v1151_v61 = vadd.f32 %v1150_v51, %v5311_v53  ;;  %v1672_v23 = vpop.f32.mrf.mxu3  ;;  %v1864_v53 = vrot.slane %v1862_v31, 1 }
 0x12b   : > { %v1984_v35 = vpop.f32.mrf.mxu0 }
 0x12c   : > { %4202 = vmatmul.msk.bf16.gmra.mxu1 %vm944_vm2, %v5178_v57  ;;  %v1262_v57 = vrot.slane %v5101_v0, 1 }
 0x12d   : > { %4221 = vmatmul.msk.bf16.gmra.mxu2 %vm944_vm2, %v1261_v42 }
 0x12e   : > { %4367 = vmatmul.msk.bf16.gmra.mxu0 %vm944_vm2, %v1858_v33  ;;  %v1861_v33 = vor.u32 %v1859_v63, %v1857_v8  ;;  %v1866_v63 = vshrl.u32 %v4627_v30, 16 }
 0x12f   : > { %4350 = vmatmul.msk.bf16.gmra.mxu3 %vm944_vm2, %v4627_v30 }
 0x130   : > { %v1344_v62 = vpop.f32.mrf.mxu2 }
 0x131   : > { %v1434_v10 = vadd.f32 %v1344_v62, %v1151_v61  ;;  %v1152_v3 = vpop.f32.mrf.mxu1  ;;  %v1865_v62 = vsel %vm800_vm1, %v1861_v33, %v1864_v53 }
 0x132   : > { %v1153_v42 = vadd.f32 %v1152_v3, %v5325_v4  ;;  %v1675_v55 = vpop.f32.mrf.mxu3 }
 0x133   : > { %v1755_v17 = vadd.f32 %v1665_v37, %v1434_v10  ;;  %v1986_v48 = vpop.f32.mrf.mxu0  ;;  %v1263_v10 = vsel %vm1242_vm3, %v1260_v29, %v1262_v57 }
 0x135   : > { %v5445_v27 = vadd.f32 %v1984_v35, %v1755_v17  ;;  %v4628_v35 = vld [vmem:[%s5092_s11 + $0xe8] sm:$0xff] }
 0x138   : > { %v1346_v51 = vpop.f32.mrf.mxu2 }
 0x139   : > { %v1435_v7 = vadd.f32 %v1346_v51, %v1153_v42  ;;  %v1155_v61 = vpop.f32.mrf.mxu1  ;;  %v1869_v42 = vshll.u32 %v4628_v35, 16  ;;  %v1868_v51 = vor.u32 %v1866_v63, %v1864_v53  ;;  %v4629_v53 = vld [vmem:[%s5092_s11 + $0xf0] sm:$0xff] }
 0x13a   : > { %v1156_v4 = vadd.f32 %v1155_v61, %v5339_v16  ;;  %v1677_v31 = vpop.f32.mrf.mxu3 }
 0x13b   : > { %v1756_v37 = vadd.f32 %v1667_v54, %v1435_v7  ;;  %v1989_v40 = vpop.f32.mrf.mxu0  ;;  %v1871_v16 = vrot.slane %v1869_v42, 1  ;;  %v1873_v42 = vshrl.u32 %v4628_v35, 16 }
 0x13c   : > { %4203 = vmatmul.msk.bf16.gmra.mxu1 %vm944_vm2, %v5202_v25 }
 0x13d   : > { %4222 = vmatmul.msk.bf16.gmra.mxu2 %vm944_vm2, %v1263_v10  ;;  %v5454_v17 = vadd.f32 %v1986_v48, %v1756_v37  ;;  %v1264_v48 = vrot.slane %v5104_v1, 1 }
 0x13e   : > { %4368 = vmatmul.msk.bf16.gmra.mxu0 %vm944_vm2, %v1865_v62 }
 0x13f   : > { %4351 = vmatmul.msk.bf16.gmra.mxu3 %vm944_vm2, %v4628_v35 }
 0x140   : > { %v1349_v8 = vpop.f32.mrf.mxu2 }
 0x141   : > { %v1436_v3 = vadd.f32 %v1349_v8, %v1156_v4  ;;  %v1157_v29 = vpop.f32.mrf.mxu1  ;;  %v1872_v8 = vsel %vm800_vm1, %v1868_v51, %v1871_v16 }
 0x142   : > { %v1158_v33 = vadd.f32 %v1157_v29, %v5355_v19  ;;  %v1680_v10 = vpop.f32.mrf.mxu3 }
 0x143   : > { %v1757_v7 = vadd.f32 %v1670_v47, %v1436_v3  ;;  %v1991_v54 = vpop.f32.mrf.mxu0  ;;  %v1265_v47 = vsel %vm1242_vm3, %v1262_v57, %v1264_v48 }
 0x145   : > { %v5460_v25 = vadd.f32 %v1989_v40, %v1757_v7 }
 0x148   : > { %v1351_v61 = vpop.f32.mrf.mxu2 }
 0x149   : > { %v1437_v37 = vadd.f32 %v1351_v61, %v1158_v33  ;;  %v1160_v62 = vpop.f32.mrf.mxu1  ;;  %v1876_v33 = vshll.u32 %v4629_v53, 16  ;;  %v1875_v61 = vor.u32 %v1873_v42, %v1871_v16  ;;  %v4630_v16 = vld [vmem:[%s5092_s11 + $0xf8] sm:$0xff]  ;;  %v1880_v42 = vshrl.u32 %v4629_v53, 16 }
 0x14a   : > { %v1161_v19 = vadd.f32 %v1160_v62, %v5369_v2  ;;  %v1682_v29 = vpop.f32.mrf.mxu3 }
 0x14b   : > { %v1758_v4 = vadd.f32 %v1672_v23, %v1437_v37  ;;  %v1994_v30 = vpop.f32.mrf.mxu0  ;;  %v1878_v2 = vrot.slane %v1876_v33, 1  ;;  %v1883_v33 = vshll.u32 %v4630_v16, 16 }
 0x14c   : > { %4204 = vmatmul.msk.bf16.gmra.mxu1 %vm944_vm2, %v5101_v0 }
 0x14d   : > { %4223 = vmatmul.msk.bf16.gmra.mxu2 %vm944_vm2, %v1265_v47  ;;  %v5469_v40 = vadd.f32 %v1991_v54, %v1758_v4  ;;  %v1266_v54 = vrot.slane %v5143_v28, 1 }
 0x14e   : > { %4369 = vmatmul.msk.bf16.gmra.mxu0 %vm944_vm2, %v1872_v8 }
 0x14f   : > { %4352 = vmatmul.msk.bf16.gmra.mxu3 %vm944_vm2, %v4629_v53 }
 0x150   : > { %v1354_v3 = vpop.f32.mrf.mxu2 }
 0x151   : > { %v1438_v7 = vadd.f32 %v1354_v3, %v1161_v19  ;;  %v1162_v57 = vpop.f32.mrf.mxu1  ;;  %v1879_v19 = vsel %vm800_vm1, %v1875_v61, %v1878_v2  ;;  %v1882_v61 = vor.u32 %v1880_v42, %v1878_v2  ;;  %v4631_v2 = vld [vmem:[%s5092_s11 + $0x100] sm:$0xff] }
 0x152   : > { %v1163_v51 = vadd.f32 %v1162_v57, %v5383_v44  ;;  %v1685_v62 = vpop.f32.mrf.mxu3  ;;  %v1890_v42 = vshll.u32 %v4631_v2, 16 }
 0x153   : > { %v1759_v23 = vadd.f32 %v1675_v55, %v1438_v7  ;;  %v1996_v63 = vpop.f32.mrf.mxu0  ;;  %v1267_v55 = vsel %vm1242_vm3, %v1264_v48, %v1266_v54 }
 0x155   : > { %v5475_v0 = vadd.f32 %v1994_v30, %v1759_v23 }
 0x158   : > { %v1356_v37 = vpop.f32.mrf.mxu2 }
 0x159   : > { %v1439_v47 = vadd.f32 %v1356_v37, %v1163_v51  ;;  %v1165_v4 = vpop.f32.mrf.mxu1 }
 0x15a   : > { %v1166_v44 = vadd.f32 %v1165_v4, %v5395_v5  ;;  %v1687_v7 = vpop.f32.mrf.mxu3  ;;  %v1885_v5 = vrot.slane %v1883_v33, 1 }
 0x15b   : > { %v1760_v8 = vadd.f32 %v1677_v31, %v1439_v47  ;;  %v1999_v35 = vpop.f32.mrf.mxu0 }
 0x15c   : > { %4205 = vmatmul.msk.bf16.gmra.mxu1 %vm944_vm2, %v5104_v1 }
 0x15d   : > { %4224 = vmatmul.msk.bf16.gmra.mxu2 %vm944_vm2, %v1267_v55  ;;  %v5484_v30 = vadd.f32 %v1996_v63, %v1760_v8  ;;  %v1268_v63 = vrot.slane %v5181_v58, 1 }
 0x15e   : > { %4370 = vmatmul.msk.bf16.gmra.mxu0 %vm944_vm2, %v1879_v19  ;;  %v1886_v19 = vsel %vm800_vm1, %v1882_v61, %v1885_v5 }
 0x15f   : > { %4353 = vmatmul.msk.bf16.gmra.mxu3 %vm944_vm2, %v4630_v16 }
 0x160   : > { %v1359_v3 = vpop.f32.mrf.mxu2 }
 0x161   : > { %v1440_v57 = vadd.f32 %v1359_v3, %v1166_v44  ;;  %v1167_v48 = vpop.f32.mrf.mxu1 }
 0x162   : > { %v1168_v51 = vadd.f32 %v1167_v48, %v5409_v14  ;;  %v1690_v47 = vpop.f32.mrf.mxu3 }
 0x163   : > { %v1761_v31 = vadd.f32 %v1680_v10, %v1440_v57  ;;  %v2001_v23 = vpop.f32.mrf.mxu0  ;;  %v1269_v10 = vsel %vm1242_vm3, %v1266_v54, %v1268_v63 }
 0x165   : > { %v5490_v1 = vadd.f32 %v1999_v35, %v1761_v31  ;;  %v1887_v31 = vshrl.u32 %v4630_v16, 16 }
 0x168   : > { %v1361_v37 = vpop.f32.mrf.mxu2 }
 0x169   : > { %v1441_v4 = vadd.f32 %v1361_v37, %v1168_v51  ;;  %v1170_v55 = vpop.f32.mrf.mxu1  ;;  %v1889_v51 = vor.u32 %v1887_v31, %v1885_v5  ;;  %v4632_v5 = vld [vmem:[%s5092_s11 + $0x108] sm:$0xff] }
 0x16a   : > { %v1171_v14 = vadd.f32 %v1170_v55, %v5418_v46  ;;  %v1692_v3 = vpop.f32.mrf.mxu3  ;;  %v1892_v46 = vrot.slane %v1890_v42, 1 }
 0x16b   : > { %v1762_v8 = vadd.f32 %v1682_v29, %v1441_v4  ;;  %v2004_v53 = vpop.f32.mrf.mxu0 }
 0x16c   : > { %4206 = vmatmul.msk.bf16.gmra.mxu1 %vm944_vm2, %v5143_v28 }
 0x16d   : > { %4225 = vmatmul.msk.bf16.gmra.mxu2 %vm944_vm2, %v1269_v10  ;;  %v5499_v35 = vadd.f32 %v2001_v23, %v1762_v8  ;;  %v1270_v23 = vrot.slane %v5205_v26, 1  ;;  %v1893_v8 = vsel %vm800_vm1, %v1889_v51, %v1892_v46 }
 0x16e   : > { %4371 = vmatmul.msk.bf16.gmra.mxu0 %vm944_vm2, %v1886_v19 }
 0x16f   : > { %4354 = vmatmul.msk.bf16.gmra.mxu3 %vm944_vm2, %v4631_v2 }
 0x170   : > { %v1364_v44 = vpop.f32.mrf.mxu2 }
 0x171   : > { %v1442_v57 = vadd.f32 %v1364_v44, %v1171_v14  ;;  %v1172_v54 = vpop.f32.mrf.mxu1 }
 0x172   : > { %v1173_v33 = vadd.f32 %v1172_v54, %v5430_v20  ;;  %v1695_v37 = vpop.f32.mrf.mxu3  ;;  %v1894_v54 = vshrl.u32 %v4631_v2, 16 }
 0x173   : > { %v1763_v29 = vadd.f32 %v1685_v62, %v1442_v57  ;;  %v2006_v48 = vpop.f32.mrf.mxu0  ;;  %v1271_v62 = vsel %vm1242_vm3, %v1268_v63, %v1270_v23 }
 0x174   : > { %v1896_v42 = vor.u32 %v1894_v54, %v1892_v46  ;;  %v4633_v46 = vld [vmem:[%s5092_s11 + $0x110] sm:$0xff] }
 0x175   : > { %v5505_v28 = vadd.f32 %v2004_v53, %v1763_v29  ;;  %v1897_v29 = vshll.u32 %v4632_v5, 16 }
 0x178   : > { %v1366_v61 = vpop.f32.mrf.mxu2 }
 0x179   : > { %v1443_v4 = vadd.f32 %v1366_v61, %v1173_v33  ;;  %v1175_v55 = vpop.f32.mrf.mxu1 }
 0x17a   : > { %v1176_v20 = vadd.f32 %v1175_v55, %v5308_v52  ;;  %v1697_v14 = vpop.f32.mrf.mxu3  ;;  %v1899_v52 = vrot.slane %v1897_v29, 1 }
 0x17b   : > { %v1764_v10 = vadd.f32 %v1687_v7, %v1443_v4  ;;  %v2009_v16 = vpop.f32.mrf.mxu0 }
 0x17c   : > { %4207 = vmatmul.msk.bf16.gmra.mxu1 %vm944_vm2, %v5181_v58 }
 0x17d   : > { %4226 = vmatmul.msk.bf16.gmra.mxu2 %vm944_vm2, %v1271_v62  ;;  %v5514_v53 = vadd.f32 %v2006_v48, %v1764_v10  ;;  %v1272_v48 = vrot.slane %v5128_v21, 1  ;;  %v1900_v62 = vsel %vm800_vm1, %v1896_v42, %v1899_v52 }
 0x17e   : > { %4372 = vmatmul.msk.bf16.gmra.mxu0 %vm944_vm2, %v1893_v8 }
 0x17f   : > { %4355 = vmatmul.msk.bf16.gmra.mxu3 %vm944_vm2, %v4632_v5 }
 0x180   : > { %v1369_v19 = vpop.f32.mrf.mxu2 }
 0x181   : > { %v1444_v44 = vadd.f32 %v1369_v19, %v1176_v20  ;;  %v1177_v63 = vpop.f32.mrf.mxu1 }
 0x182   : > { %v1178_v31 = vadd.f32 %v1177_v63, %v5323_v60  ;;  %v1700_v51 = vpop.f32.mrf.mxu3  ;;  %v1904_v63 = vshll.u32 %v4633_v46, 16 }
 0x183   : > { %v1765_v7 = vadd.f32 %v1690_v47, %v1444_v44  ;;  %v2011_v57 = vpop.f32.mrf.mxu0  ;;  %v1273_v47 = vsel %vm1242_vm3, %v1270_v23, %v1272_v48  ;;  %v1901_v44 = vshrl.u32 %v4632_v5, 16 }
 0x185   : > { %v5520_v58 = vadd.f32 %v2009_v16, %v1765_v7  ;;  %v1274_v7 = vrot.slane %v5131_v22, 1  ;;  %v1903_v54 = vor.u32 %v1901_v44, %v1899_v52 }
 0x188   : > { %v1371_v33 = vpop.f32.mrf.mxu2 }
 0x189   : > { %v1445_v61 = vadd.f32 %v1371_v33, %v1178_v31  ;;  %v1180_v4 = vpop.f32.mrf.mxu1 }
 0x18a   : > { %v1181_v60 = vadd.f32 %v1180_v4, %v5336_v11  ;;  %v1702_v8 = vpop.f32.mrf.mxu3  ;;  %v1906_v11 = vrot.slane %v1904_v63, 1 }
 0x18b   : > { %v1766_v55 = vadd.f32 %v1692_v3, %v1445_v61  ;;  %v2014_v2 = vpop.f32.mrf.mxu0 }
 0x18c   : > { %4208 = vmatmul.msk.bf16.gmra.mxu1 %vm944_vm2, %v5205_v26  ;;  %v1907_v4 = vsel %vm800_vm1, %v1903_v54, %v1906_v11 }
 0x18d   : > { %4227 = vmatmul.msk.bf16.gmra.mxu2 %vm944_vm2, %v1273_v47  ;;  %v5529_v10 = vadd.f32 %v2011_v57, %v1766_v55  ;;  %v4634_v47 = vld [vmem:[%s5092_s11 + $0x118] sm:$0xff] }
 0x18e   : > { %4373 = vmatmul.msk.bf16.gmra.mxu0 %vm944_vm2, %v1900_v62  ;;  %v5550_v62 = vld [vmem:[%s5092_s11 + $0x120] sm:$0xff] }
 0x18f   : > { %4356 = vmatmul.msk.bf16.gmra.mxu3 %vm944_vm2, %v4633_v46 }
 0x190   : > { %v1374_v16 = vpop.f32.mrf.mxu2 }
 0x191   : > { %v1446_v20 = vadd.f32 %v1374_v16, %v1181_v60  ;;  %v1182_v23 = vpop.f32.mrf.mxu1 }
 0x192   : > { %v1183_v57 = vadd.f32 %v1182_v23, %v5353_v18  ;;  %v1705_v31 = vpop.f32.mrf.mxu3 }
 0x193   : > { %v1767_v3 = vadd.f32 %v1695_v37, %v1446_v20  ;;  %v2016_v19 = vpop.f32.mrf.mxu0  ;;  %v1275_v37 = vsel %vm1242_vm3, %v1272_v48, %v1274_v7  ;;  %v1908_v20 = vshrl.u32 %v4633_v46, 16 }
 0x195   : > { %v5535_v26 = vadd.f32 %v2014_v2, %v1767_v3  ;;  %v1276_v3 = vrot.slane %v5167_v49, 1  ;;  %v1910_v63 = vor.u32 %v1908_v20, %v1906_v11 }
 0x197   : > { %v1277_v46 = vsel %vm1242_vm3, %v1274_v7, %v1276_v3 }
 0x198   : > { %v1376_v29 = vpop.f32.mrf.mxu2 }
 0x199   : > { %v1447_v42 = vadd.f32 %v1376_v29, %v1183_v57  ;;  %v1185_v33 = vpop.f32.mrf.mxu1 }
 0x19a   : > { %v1186_v52 = vadd.f32 %v1185_v33, %v5366_v36  ;;  %v1707_v2 = vpop.f32.mrf.mxu3  ;;  %v2664_v36 = vshll.u32 %v5550_v62, 16  ;;  %v2662_v33 = vshrl.u32 %v5550_v62, 16 }
 0x19b   : > { %v1768_v5 = vadd.f32 %v1697_v14, %v1447_v42  ;;  %v2019_v61 = vpop.f32.mrf.mxu0 }
 0x19c   : > { %4209 = vmatmul.msk.bf16.gmra.mxu1 %vm944_vm2, %v5128_v21  ;;  %v1911_v21 = vshll.u32 %v4634_v47, 16 }
 0x19d   : > { %4228 = vmatmul.msk.bf16.gmra.mxu2 %vm944_vm2, %v1275_v37  ;;  %v5544_v18 = vadd.f32 %v2016_v19, %v1768_v5  ;;  %v5557_v19 = vld [vmem:[%s5092_s11 + $0x128] sm:$0xff]  ;;  %v2666_v37 = vrot.slane %v2664_v36, 1 }
 0x19e   : > { %4374 = vmatmul.msk.bf16.gmra.mxu0 %vm944_vm2, %v1907_v4  ;;  %v1913_v57 = vrot.slane %v1911_v21, 1  ;;  %v2668_v5 = vshll.u32 %v5557_v19, 16 }
 0x19f   : > { %4357 = vmatmul.msk.bf16.gmra.mxu3 %vm944_vm2, %v4634_v47  ;;  %v2667_v7 = vor.u32 %v2666_v37, %v2662_v33  ;;  %v2672_v33 = vshrl.u32 %v5557_v19, 16 }
 0x1a0   : > { %v1379_v55 = vpop.f32.mrf.mxu2  ;;  %v2670_v11 = vrot.slane %v2668_v5, 1 }
 0x1a1   : > { %v1448_v48 = vadd.f32 %v1379_v55, %v1186_v52  ;;  %v1187_v14 = vpop.f32.mrf.mxu1  ;;  %v1914_v52 = vsel %vm800_vm1, %v1910_v63, %v1913_v57 }
 0x1a2   : > { %v1188_v44 = vadd.f32 %v1187_v14, %v5381_v43  ;;  %v1710_v29 = vpop.f32.mrf.mxu3  ;;  %v2671_v20 = vsel %vm800_vm1, %v2667_v7, %v2670_v11 }
 0x1a3   : > { %v1769_v60 = vadd.f32 %v1700_v51, %v1448_v48  ;;  %v2021_v16 = vpop.f32.mrf.mxu0 }
 0x1a5   : > { %v5553_v23 = vadd.f32 %v2019_v61, %v1769_v60 }
 0x1a8   : > { %v1381_v54 = vpop.f32.mrf.mxu2 }
 0x1a9   : > { %v1449_v51 = vadd.f32 %v1381_v54, %v1188_v44  ;;  %v1190_v42 = vpop.f32.mrf.mxu1  ;;  %v5577_v44 = vld [vmem:[%s5092_s11 + $0x130] sm:$0xff] }
 0x1aa   : > { %v1191_v55 = vadd.f32 %v1190_v42, %v5392_v32  ;;  %v1712_v14 = vpop.f32.mrf.mxu3  ;;  %v2675_v37 = vshll.u32 %v5577_v44, 16 }
 0x1ab   : > { %v1770_v61 = vadd.f32 %v1702_v8, %v1449_v51  ;;  %v2024_v4 = vpop.f32.mrf.mxu0 }
 0x1ac   : > { %4210 = vmatmul.msk.bf16.gmra.mxu1 %vm944_vm2, %v5131_v22 }
 0x1ad   : > { %4229 = vmatmul.msk.bf16.gmra.mxu2 %vm944_vm2, %v1277_v46  ;;  %v5568_v43 = vadd.f32 %v2021_v16, %v1770_v61  ;;  %v1915_v16 = vshrl.u32 %v4634_v47, 16  ;;  %v2677_v61 = vrot.slane %v2675_v37, 1 }
 0x1ae   : > { %4375 = vmatmul.msk.bf16.gmra.mxu0 %vm944_vm2, %v1914_v52 }
 0x1af   : > { %4524 = vmatmul.msk.bf16.vlgmr.msra.gmra.mxu3 %vm944_vm2, %v2671_v20  ;;  %v1917_v46 = vor.u32 %v1915_v16, %v1913_v57  ;;  %v2981_v20 = vrot.slane %v5550_v62, 1 }
 0x1b0   : > { %v1384_v48 = vpop.f32.mrf.mxu2 }
 0x1b1   : > { %v1450_v8 = vadd.f32 %v1384_v48, %v1191_v55  ;;  %v1192_v60 = vpop.f32.mrf.mxu1 }
 0x1b2   : > { %v1193_v63 = vadd.f32 %v1192_v60, %v5407_v15  ;;  %v1715_v51 = vpop.f32.mrf.mxu3  ;;  %v2674_v15 = vor.u32 %v2672_v33, %v2670_v11  ;;  %v2113_v60 = vrot.slane %v5257_v13, 1  ;;  %v5596_v11 = vld [vmem:[%s5092_s11 + $0x138] sm:$0xff] }
 0x1b3   : > { %v1771_v21 = vadd.f32 %v1705_v31, %v1450_v8  ;;  %v2026_v36 = vpop.f32.mrf.mxu0 }
 0x1b5   : > { %v5574_v22 = vadd.f32 %v2024_v4, %v1771_v21  ;;  %v2982_v21 = vrot.slane %v5557_v19, 1 }
 0x1b8   : > { %v1386_v54 = vpop.f32.mrf.mxu2 }
 0x1b9   : > { %v1451_v32 = vadd.f32 %v1386_v54, %v1193_v63  ;;  %v1195_v42 = vpop.f32.mrf.mxu1 }
 0x1ba   : > { %v1196_v57 = vadd.f32 %v1195_v42, %v5415_v39  ;;  %v1717_v52 = vpop.f32.mrf.mxu3 }
 0x1bb   : > { %v1772_v31 = vadd.f32 %v1707_v2, %v1451_v32  ;;  %v2029_v5 = vpop.f32.mrf.mxu0  ;;  %v2678_v2 = vsel %vm800_vm1, %v2674_v15, %v2677_v61  ;;  %v2679_v32 = vshrl.u32 %v5577_v44, 16 }
 0x1bc   : > { %4211 = vmatmul.msk.bf16.gmra.mxu1 %vm944_vm2, %v5167_v49 }
 0x1bd   : > { %4230 = vmatmul.msk.bf16.gmra.mxu2 %vm944_vm2, %v1276_v3  ;;  %v5585_v47 = vadd.f32 %v2026_v36, %v1772_v31  ;;  %v2112_v3 = vrot.slane %v5240_v59, 1  ;;  %v2682_v59 = vshll.u32 %v5596_v11, 16  ;;  %v2681_v33 = vor.u32 %v2679_v32, %v2677_v61 }
 0x1be   : > { %4376 = vmatmul.msk.bf16.gmra.mxu0 %vm944_vm2, %v1917_v46  ;;  %v2983_v46 = vsel %vm1242_vm3, %v2981_v20, %v2982_v21 }
 0x1bf   : > { %4525 = vmatmul.msk.bf16.gmra.mxu3 %vm944_vm2, %v2678_v2  ;;  %v2114_v54 = vsel %vm1242_vm3, %v2112_v3, %v2113_v60  ;;  %v2684_v37 = vrot.slane %v2682_v59, 1  ;;  %v2115_v2 = vrot.slane %v5273_v24, 1 }
 0x1c0   : > { %v1389_v4 = vpop.f32.mrf.mxu2 }
 0x1c1   : > { %v1452_v7 = vadd.f32 %v1389_v4, %v1196_v57  ;;  %v1197_v55 = vpop.f32.mrf.mxu1  ;;  %v2685_v4 = vsel %vm800_vm1, %v2681_v33, %v2684_v37 }
 0x1c2   : > { %v1198_v39 = vadd.f32 %v1197_v55, %v5428_v6  ;;  %v1720_v16 = vpop.f32.mrf.mxu3 }
 0x1c3   : > { %v1773_v48 = vadd.f32 %v1710_v29, %v1452_v7  ;;  %v2031_v8 = vpop.f32.mrf.mxu0 }
 0x1c5   : > { %v5591_v49 = vadd.f32 %v2029_v5, %v1773_v48  ;;  %v5618_v48 = vld [vmem:[%s5092_s11 + $0x140] sm:$0xff] }
 0x1c8   : > { %v1391_v36 = vpop.f32.mrf.mxu2 }
 0x1c9   : > { %v1453_v29 = vadd.f32 %v1391_v36, %v1198_v39  ;;  %v1200_v63 = vpop.f32.mrf.mxu1  ;;  %v2116_v36 = vsel %vm1242_vm3, %v2113_v60, %v2115_v2 }
 0x1ca   : > { %v1201_v31 = vadd.f32 %v1200_v63, %v5321_v56  ;;  %v1722_v15 = vpop.f32.mrf.mxu3  ;;  %v2984_v56 = vrot.slane %v5577_v44, 1 }
 0x1cb   : > { %v1774_v42 = vadd.f32 %v1712_v14, %v1453_v29  ;;  %v2034_v13 = vpop.f32.mrf.mxu0  ;;  %v2689_v29 = vshll.u32 %v5618_v48, 16 }
 0x1cc   : > { %4378 = vmatmul.msk.bf16.vlgmr.msra.gmra.mxu1 %vm944_vm2, %v2114_v54  ;;  %v2985_v24 = vsel %vm1242_vm3, %v2982_v21, %v2984_v56 }
 0x1cd   : > { %4505 = vmatmul.msk.bf16.vlgmr.msra.gmra.mxu2 %vm944_vm2, %v5550_v62  ;;  %v5608_v6 = vadd.f32 %v2031_v8, %v1774_v42  ;;  %v2691_v60 = vrot.slane %v2689_v29, 1 }
 0x1ce   : > { %4543 = vmatmul.msk.bf16.vlgmr.msra.gmra.mxu0 %vm944_vm2, %v2983_v46 }
 0x1cf   : > { %4526 = vmatmul.msk.bf16.gmra.mxu3 %vm944_vm2, %v2685_v4 }
 0x1d0   : > { %v1394_v5 = vpop.f32.mrf.mxu2 }
 0x1d1   : > { %v1454_v14 = vadd.f32 %v1394_v5, %v1201_v31  ;;  %v1202_v57 = vpop.f32.mrf.mxu1  ;;  %v2117_v5 = vrot.slane %v5287_v38, 1 }
 0x1d2   : > { %v1203_v61 = vadd.f32 %v1202_v57, %v5332_v9  ;;  %v1725_v3 = vpop.f32.mrf.mxu3 }
 0x1d3   : > { %v1775_v7 = vadd.f32 %v1715_v51, %v1454_v14  ;;  %v2036_v55 = vpop.f32.mrf.mxu0  ;;  %v2686_v51 = vshrl.u32 %v5596_v11, 16  ;;  %v5639_v14 = vld [vmem:[%s5092_s11 + $0x148] sm:$0xff] }
 0x1d5   : > { %v5614_v62 = vadd.f32 %v2034_v13, %v1775_v7  ;;  %v2688_v32 = vor.u32 %v2686_v51, %v2684_v37 }
 0x1d7   : > { %v2692_v21 = vsel %vm800_vm1, %v2688_v32, %v2691_v60 }
 0x1d8   : > { %v1396_v8 = vpop.f32.mrf.mxu2 }
 0x1d9   : > { %v1455_v39 = vadd.f32 %v1396_v8, %v1203_v61  ;;  %v1205_v20 = vpop.f32.mrf.mxu1  ;;  %v2118_v61 = vsel %vm1242_vm3, %v2115_v2, %v2117_v5  ;;  %v2696_v8 = vshll.u32 %v5639_v14, 16 }
 0x1da   : > { %v1206_v59 = vadd.f32 %v1205_v20, %v5349_v12  ;;  %v1727_v13 = vpop.f32.mrf.mxu3  ;;  %v2986_v12 = vrot.slane %v5596_v11, 1 }
 0x1db   : > { %v1776_v63 = vadd.f32 %v1717_v52, %v1455_v39  ;;  %v2039_v54 = vpop.f32.mrf.mxu0  ;;  %v2698_v2 = vrot.slane %v2696_v8, 1 }
 0x1dc   : > { %4379 = vmatmul.msk.bf16.gmra.mxu1 %vm944_vm2, %v2116_v36  ;;  %v2987_v38 = vsel %vm1242_vm3, %v2984_v56, %v2986_v12 }
 0x1dd   : > { %4506 = vmatmul.msk.bf16.gmra.mxu2 %vm944_vm2, %v5557_v19  ;;  %v5629_v9 = vadd.f32 %v2036_v55, %v1776_v63 }
 0x1de   : > { %4544 = vmatmul.msk.bf16.gmra.mxu0 %vm944_vm2, %v2985_v24 }
 0x1df   : > { %4527 = vmatmul.msk.bf16.gmra.mxu3 %vm944_vm2, %v2692_v21 }
 0x1e0   : > { %v1399_v42 = vpop.f32.mrf.mxu2 }
 0x1e1   : > { %v1456_v52 = vadd.f32 %v1399_v42, %v1206_v59  ;;  %v1207_v46 = vpop.f32.mrf.mxu1  ;;  %v2119_v59 = vrot.slane %v5301_v45, 1  ;;  %v5660_v42 = vld [vmem:[%s5092_s11 + $0x150] sm:$0xff] }
 0x1e2   : > { %v1208_v37 = vadd.f32 %v1207_v46, %v5362_v34  ;;  %v1730_v4 = vpop.f32.mrf.mxu3 }
 0x1e3   : > { %v1777_v33 = vadd.f32 %v1720_v16, %v1456_v52  ;;  %v2041_v31 = vpop.f32.mrf.mxu0  ;;  %v2693_v16 = vshrl.u32 %v5618_v48, 16 }
 0x1e5   : > { %v5635_v19 = vadd.f32 %v2039_v54, %v1777_v33  ;;  %v2695_v36 = vor.u32 %v2693_v16, %v2691_v60 }
 0x1e7   : > { %v2699_v56 = vsel %vm800_vm1, %v2695_v36, %v2698_v2 }
 0x1e8   : > { %v1401_v57 = vpop.f32.mrf.mxu2 }
 0x1e9   : > { %v1457_v7 = vadd.f32 %v1401_v57, %v1208_v37  ;;  %v1210_v55 = vpop.f32.mrf.mxu1  ;;  %v2703_v37 = vshll.u32 %v5660_v42, 16 }
 0x1ea   : > { %v1211_v51 = vadd.f32 %v1210_v55, %v5377_v41  ;;  %v1732_v63 = vpop.f32.mrf.mxu3  ;;  %v2988_v41 = vrot.slane %v5618_v48, 1 }
 0x1eb   : > { %v1778_v39 = vadd.f32 %v1722_v15, %v1457_v7  ;;  %v2044_v20 = vpop.f32.mrf.mxu0 }
 0x1ec   : > { %4380 = vmatmul.msk.bf16.gmra.mxu1 %vm944_vm2, %v2118_v61  ;;  %v2989_v45 = vsel %vm1242_vm3, %v2986_v12, %v2988_v41  ;;  %v6563_v61 = vld [vmem:[#allocation10_spill] sm:$0xff] }
 0x1ed   : > { %4507 = vmatmul.msk.bf16.gmra.mxu2 %vm944_vm2, %v5577_v44  ;;  %v5650_v34 = vadd.f32 %v2041_v31, %v1778_v39  ;;  %v2120_v31 = vsel %vm1242_vm3, %v2117_v5, %v2119_v59  ;;  %v2705_v5 = vrot.slane %v2703_v37, 1 }
 0x1ee   : > { %4545 = vmatmul.msk.bf16.gmra.mxu0 %vm944_vm2, %v2987_v38 }
 0x1ef   : > { %4528 = vmatmul.msk.bf16.gmra.mxu3 %vm944_vm2, %v2699_v56  ;;  %v2990_v56 = vrot.slane %v5639_v14, 1 }
 0x1f0   : > { %v1404_v29 = vpop.f32.mrf.mxu2 }
 0x1f1   : > { %v1458_v15 = vadd.f32 %v1404_v29, %v1211_v51  ;;  %v1212_v54 = vpop.f32.mrf.mxu1  ;;  %v6564_v51 = vld [vmem:[#allocation3_spill] sm:$0xff]  ;;  %v2991_v37 = vsel %vm1242_vm3, %v2988_v41, %v2990_v56 }
 0x1f2   : > { %v1213_v60 = vadd.f32 %v1212_v54, %v5388_v50  ;;  %v1735_v46 = vpop.f32.mrf.mxu3  ;;  %v2121_v29 = vrot.slane %v6564_v51, 1 }
 0x1f3   : > { %v1779_v24 = vadd.f32 %v1725_v3, %v1458_v15  ;;  %v2046_v32 = vpop.f32.mrf.mxu0  ;;  %v2700_v3 = vshrl.u32 %v5639_v14, 16  ;;  %v5681_v15 = vld [vmem:[%s5092_s11 + $0x158] sm:$0xff] }
 0x1f5   : > { %v5656_v44 = vadd.f32 %v2044_v20, %v1779_v24  ;;  %v2702_v55 = vor.u32 %v2700_v3, %v2698_v2  ;;  %v6565_v2 = vld [vmem:[#allocation12_spill] sm:$0xff] }
 0x1f7   : > { %v2706_v12 = vsel %vm800_vm1, %v2702_v55, %v2705_v5 }
 0x1f8   : > { %v1406_v52 = vpop.f32.mrf.mxu2 }
 0x1f9   : > { %v1459_v21 = vadd.f32 %v1406_v52, %v1213_v60  ;;  %v1215_v33 = vpop.f32.mrf.mxu1 }
 0x1fa   : > { %v1216_v16 = vadd.f32 %v1215_v33, %v6563_v61  ;;  %v1737_v39 = vpop.f32.mrf.mxu3  ;;  %v2710_v33 = vshll.u32 %v5681_v15, 16 }
 0x1fb   : > { %v1780_v57 = vadd.f32 %v1727_v13, %v1459_v21  ;;  %v2049_v7 = vpop.f32.mrf.mxu0  ;;  %v2122_v21 = vsel %vm1242_vm3, %v2119_v59, %v2121_v29 }
 0x1fc   : > { %4381 = vmatmul.msk.bf16.gmra.mxu1 %vm944_vm2, %v2120_v31  ;;  %v2712_v59 = vrot.slane %v2710_v33, 1 }
 0x1fd   : > { %4508 = vmatmul.msk.bf16.gmra.mxu2 %vm944_vm2, %v5596_v11  ;;  %v5671_v50 = vadd.f32 %v2046_v32, %v1780_v57 }
 0x1fe   : > { %4546 = vmatmul.msk.bf16.gmra.mxu0 %vm944_vm2, %v2989_v45  ;;  %v6566_v45 = vld [vmem:[#allocation13_spill] sm:$0xff] }
 0x1ff   : > { %4529 = vmatmul.msk.bf16.gmra.mxu3 %vm944_vm2, %v2706_v12  ;;  %v6567_v12 = vld [vmem:[#allocation5_spill] sm:$0xff] }
 0x200   : > { %v1409_v8 = vpop.f32.mrf.mxu2 }
 0x201   : > { %v1460_v13 = vadd.f32 %v1409_v8, %v1216_v16  ;;  %v1217_v20 = vpop.f32.mrf.mxu1 }
 0x202   : > { %v1218_v54 = vadd.f32 %v1217_v20, %v6565_v2  ;;  %v1740_v32 = vpop.f32.mrf.mxu3  ;;  %v2992_v2 = vrot.slane %v5660_v42, 1 }
 0x203   : > { %v1781_v38 = vadd.f32 %v1730_v4, %v1460_v13  ;;  %v2051_v36 = vpop.f32.mrf.mxu0  ;;  %v2707_v4 = vshrl.u32 %v5660_v42, 16 }
 0x205   : > { %v5677_v11 = vadd.f32 %v2049_v7, %v1781_v38  ;;  %v2709_v7 = vor.u32 %v2707_v4, %v2705_v5  ;;  %v2123_v38 = vrot.slane %v6567_v12, 1  ;;  %v6568_v5 = vld [vmem:[#allocation14_spill] sm:$0xff] }
 0x207   : > { %v2713_v41 = vsel %vm800_vm1, %v2709_v7, %v2712_v59 }
 0x208   : > { %v1411_v24 = vpop.f32.mrf.mxu2 }
 0x209   : > { %v1461_v60 = vadd.f32 %v1411_v24, %v1218_v54  ;;  %v1220_v52 = vpop.f32.mrf.mxu1 }
 0x20a   : > { %v1221_v55 = vadd.f32 %v1220_v52, %v6566_v45  ;;  %v1742_v16 = vpop.f32.mrf.mxu3  ;;  %v6569_v45 = vld [vmem:[#allocation4_spill] sm:$0xff] }
 0x20b   : > { %v1782_v31 = vadd.f32 %v1732_v63, %v1461_v60  ;;  %v2054_v3 = vpop.f32.mrf.mxu0 }
 0x20c   : > { %4382 = vmatmul.msk.bf16.gmra.mxu1 %vm944_vm2, %v2122_v21  ;;  %v2124_v21 = vsel %vm1242_vm3, %v2121_v29, %v2123_v38 }
 0x20d   : > { %4509 = vmatmul.msk.bf16.gmra.mxu2 %vm944_vm2, %v5618_v48  ;;  %v5692_v57 = vadd.f32 %v2051_v36, %v1782_v31  ;;  %v5702_v36 = vld [vmem:[%s5092_s11 + $0x160] sm:$0xff] }
 0x20e   : > { %4547 = vmatmul.msk.bf16.gmra.mxu0 %vm944_vm2, %v2991_v37  ;;  %v2717_v4 = vshll.u32 %v5702_v36, 16 }
 0x20f   : > { %4530 = vmatmul.msk.bf16.gmra.mxu3 %vm944_vm2, %v2713_v41 }
 0x210   : > { %v1414_v61 = vpop.f32.mrf.mxu2  ;;  %v2719_v7 = vrot.slane %v2717_v4, 1 }
 0x211   : > { %v1462_v63 = vadd.f32 %v1414_v61, %v1221_v55  ;;  %v1222_v8 = vpop.f32.mrf.mxu1 }
 0x212   : > { %v1223_v51 = vadd.f32 %v1222_v8, %v6568_v5  ;;  %v1745_v24 = vpop.f32.mrf.mxu3  ;;  %v5723_v5 = vld [vmem:[%s5092_s11 + $0x168] sm:$0xff] }
 0x213   : > { %v1783_v13 = vadd.f32 %v1735_v46, %v1462_v63  ;;  %v2056_v20 = vpop.f32.mrf.mxu0  ;;  %v2714_v46 = vshrl.u32 %v5681_v15, 16 }
 0x215   : > { %v5698_v48 = vadd.f32 %v2054_v3, %v1783_v13  ;;  %v2993_v3 = vsel %vm1242_vm3, %v2990_v56, %v2992_v2  ;;  %v2716_v29 = vor.u32 %v2714_v46, %v2712_v59  ;;  %v6570_v59 = vld [vmem:[#allocation6_spill] sm:$0xff] }
 0x217   : > { %v2720_v56 = vsel %vm800_vm1, %v2716_v29, %v2719_v7 }
 0x218   : > { %v1416_v54 = vpop.f32.mrf.mxu2 }
 0x219   : > { %v1463_v60 = vadd.f32 %v1416_v54, %v1223_v51  ;;  %v1225_v52 = vpop.f32.mrf.mxu1  ;;  %v2994_v54 = vrot.slane %v5681_v15, 1 }
 0x21a   : > { %v1226_v55 = vadd.f32 %v1225_v52, %v6569_v45 }
 0x21b   : > { %v1784_v33 = vadd.f32 %v1737_v39, %v1463_v60  ;;  %v2059_v31 = vpop.f32.mrf.mxu0  ;;  %v1747_v39 = vpop.f32.mrf.mxu3  ;;  %v2995_v29 = vsel %vm1242_vm3, %v2992_v2, %v2994_v54 }
 0x21c   : > { %4383 = vmatmul.msk.bf16.gmra.mxu1 %vm944_vm2, %v2124_v21 }
 0x21d   : > { %4510 = vmatmul.msk.bf16.gmra.mxu2 %vm944_vm2, %v5639_v14  ;;  %v5713_v37 = vadd.f32 %v2056_v20, %v1784_v33  ;;  %v4845_v20 = vld [vmem:[%s5092_s11 + $0xc8] sm:$0xff]  ;;  %v2724_v33 = vshll.u32 %v5723_v5, 16 }
 0x21e   : > { %4548 = vmatmul.msk.bf16.gmra.mxu0 %vm944_vm2, %v2993_v3  ;;  %v2125_v12 = vrot.slane %v4845_v20, 1 }
 0x21f   : > { %4531 = vmatmul.msk.bf16.gmra.mxu3 %vm944_vm2, %v2720_v56 }
 0x220   : > { %v1419_v61 = vpop.f32.mrf.mxu2  ;;  %v2126_v4 = vsel %vm1242_vm3, %v2123_v38, %v2125_v12 }
 0x221   : > { %v1464_v63 = vadd.f32 %v1419_v61, %v1226_v55  ;;  %v1227_v8 = vpop.f32.mrf.mxu1  ;;  %v2726_v55 = vrot.slane %v2724_v33, 1  ;;  %v6571_v61 = vld [vmem:[#allocation7_spill] sm:$0xff] }
 0x222   : > { %v1228_v51 = vadd.f32 %v1227_v8, %v6570_v59 }
 0x223   : > { %v1785_v41 = vadd.f32 %v1740_v32, %v1464_v63  ;;  %v2061_v13 = vpop.f32.mrf.mxu0  ;;  %v1750_v52 = vpop.f32.mrf.mxu3  ;;  %v2721_v32 = vshrl.u32 %v5702_v36, 16 }
 0x225   : > { %v5719_v14 = vadd.f32 %v2059_v31, %v1785_v41  ;;  %v2723_v38 = vor.u32 %v2721_v32, %v2719_v7  ;;  %v6573_v7 = vld [vmem:[#allocation8_spill] sm:$0xff] }
 0x227   : > { %v2727_v2 = vsel %vm800_vm1, %v2723_v38, %v2726_v55 }
 0x228   : > { %v1421_v60 = vpop.f32.mrf.mxu2 }
 0x229   : > { %v1465_v21 = vadd.f32 %v1421_v60, %v1228_v51  ;;  %v1230_v46 = vpop.f32.mrf.mxu1  ;;  %v5744_v60 = vld [vmem:[%s5092_s11 + $0x170] sm:$0xff] }
 0x22a   : > { %v1231_v63 = vadd.f32 %v1230_v46, %v6571_v61  ;;  %v2996_v46 = vrot.slane %v5702_v36, 1  ;;  %v2731_v38 = vshll.u32 %v5744_v60, 16 }
 0x22b   : > { %v1786_v31 = vadd.f32 %v1742_v16, %v1465_v21  ;;  %v2064_v3 = vpop.f32.mrf.mxu0  ;;  %v1752_v16 = vpop.f32.mrf.mxu3 }
 0x22c   : > { %4384 = vmatmul.msk.bf16.gmra.mxu1 %vm944_vm2, %v2126_v4 }
 0x22d   : > { %4511 = vmatmul.msk.bf16.gmra.mxu2 %vm944_vm2, %v5660_v42  ;;  %v5734_v45 = vadd.f32 %v2061_v13, %v1786_v31  ;;  %v4846_v13 = vld [vmem:[%s5092_s11 + $0xd0] sm:$0xff] }
 0x22e   : > { %4549 = vmatmul.msk.bf16.gmra.mxu0 %vm944_vm2, %v2995_v29  ;;  %v2127_v51 = vrot.slane %v4846_v13, 1 }
 0x22f   : > { %4532 = vmatmul.msk.bf16.gmra.mxu3 %vm944_vm2, %v2727_v2 }
 0x230   : > { %v1424_v8 = vpop.f32.mrf.mxu2  ;;  %v2128_v29 = vsel %vm1242_vm3, %v2125_v12, %v2127_v51 }
 0x231   : > { %v1466_v56 = vadd.f32 %v1424_v8, %v1231_v63  ;;  %v1232_v41 = vpop.f32.mrf.mxu1  ;;  %v2997_v63 = vsel %vm1242_vm3, %v2994_v54, %v2996_v46 }
 0x232   : > { %v1233_v21 = vadd.f32 %v1232_v41, %v6573_v7  ;;  %v6575_v41 = vld [vmem:[#allocation9_spill] sm:$0xff] }
 0x233   : > { %v1787_v20 = vadd.f32 %v1745_v24, %v1466_v56  ;;  %v2066_v59 = vpop.f32.mrf.mxu0  ;;  %v2853_v32 = vpop.f32.mrf.mxu3  ;;  %v2728_v24 = vshrl.u32 %v5723_v5, 16  ;;  %v2733_v56 = vrot.slane %v2731_v38, 1 }
 0x235   : > { %v5740_v42 = vadd.f32 %v2064_v3, %v1787_v20  ;;  %v2730_v12 = vor.u32 %v2728_v24, %v2726_v55  ;;  %v6577_v55 = vld [vmem:[#allocation11_spill] sm:$0xff] }
 0x237   : > { %6572 = vst [vmem:[#allocation10_spill] sm:$0xff] %v5740_v42  ;;  %v2734_v54 = vsel %vm800_vm1, %v2730_v12, %v2733_v56 }
 0x238   : > { %v1426_v4 = vpop.f32.mrf.mxu2 }
 0x239   : > { %v1467_v33 = vadd.f32 %v1426_v4, %v1233_v21  ;;  %v1235_v31 = vpop.f32.mrf.mxu1 }
 0x23a   : > { %v1236_v2 = vadd.f32 %v1235_v31, %v6575_v41  ;;  %v2998_v31 = vrot.slane %v5723_v5, 1 }
 0x23b   : > { %v1788_v3 = vadd.f32 %v1747_v39, %v1467_v33  ;;  %v2069_v61 = vpop.f32.mrf.mxu0  ;;  %v2855_v39 = vpop.f32.mrf.mxu3 }
 0x23c   : > { %4385 = vmatmul.msk.bf16.gmra.mxu1 %vm944_vm2, %v2128_v29  ;;  %v5765_v29 = vld [vmem:[%s5092_s11 + $0x178] sm:$0xff] }
 0x23d   : > { %4512 = vmatmul.msk.bf16.gmra.mxu2 %vm944_vm2, %v5681_v15  ;;  %v5755_v8 = vadd.f32 %v2066_v59, %v1788_v3  ;;  %v4847_v59 = vld [vmem:[%s5092_s11 + $0xd8] sm:$0xff] }
 0x23e   : > { %4550 = vmatmul.msk.bf16.gmra.mxu0 %vm944_vm2, %v2997_v63  ;;  %v2129_v33 = vrot.slane %v4847_v59, 1 }
 0x23f   : > { %6574 = vst [vmem:[#allocation3_spill] sm:$0xff] %v5755_v8  ;;  %4533 = vmatmul.msk.bf16.gmra.mxu3 %vm944_vm2, %v2734_v54 }
 0x240   : > { %v1429_v20 = vpop.f32.mrf.mxu2  ;;  %v2130_v12 = vsel %vm1242_vm3, %v2127_v51, %v2129_v33 }
 0x241   : > { %v1468_v13 = vadd.f32 %v1429_v20, %v1236_v2  ;;  %v1237_v7 = vpop.f32.mrf.mxu1  ;;  %v2738_v2 = vshll.u32 %v5765_v29, 16 }
 0x242   : > { %v1238_v24 = vadd.f32 %v1237_v7, %v6577_v55 }
 0x243   : > { %v1789_v21 = vadd.f32 %v1750_v52, %v1468_v13  ;;  %v2071_v4 = vpop.f32.mrf.mxu0  ;;  %v2858_v3 = vpop.f32.mrf.mxu3  ;;  %v2735_v52 = vshrl.u32 %v5744_v60, 16  ;;  %v2999_v13 = vsel %vm1242_vm3, %v2996_v46, %v2998_v31  ;;  %v2740_v54 = vrot.slane %v2738_v2, 1 }
 0x245   : > { %v5761_v15 = vadd.f32 %v2069_v61, %v1789_v21  ;;  %v2737_v51 = vor.u32 %v2735_v52, %v2733_v56  ;;  %v4848_v56 = vld [vmem:[%s5092_s11 + $0xe0] sm:$0xff] }
 0x247   : > { %6576 = vst [vmem:[#allocation12_spill] sm:$0xff] %v5761_v15 }
 0x248   : > { %v1431_v38 = vpop.f32.mrf.mxu2 }
 0x249   : > { %v1469_v63 = vadd.f32 %v1431_v38, %v1238_v24  ;;  %v2213_v41 = vpop.f32.mrf.mxu1  ;;  %v2741_v24 = vsel %vm800_vm1, %v2737_v51, %v2740_v54 }
 0x24a   : > { %v2303_v21 = vadd.f32 %v2213_v41, %v5445_v27  ;;  %v5791_v27 = vld [vmem:[%s5092_s11 + $0x180] sm:$0xff] }
 0x24b   : > { %v1790_v61 = vadd.f32 %v1752_v16, %v1469_v63  ;;  %v3082_v20 = vpop.f32.mrf.mxu0  ;;  %v5780_v16 = vpop.f32.mrf.mxu3 }
 0x24c   : > { %4386 = vmatmul.msk.bf16.gmra.mxu1 %vm944_vm2, %v2130_v12  ;;  %v2131_v12 = vrot.slane %v4848_v56, 1 }
 0x24d   : > { %4513 = vmatmul.msk.bf16.gmra.mxu2 %vm944_vm2, %v5702_v36  ;;  %v5776_v7 = vadd.f32 %v2071_v4, %v1790_v61  ;;  %v5786_v36 = vld [vmem:[%s6545_s2] ss:$0 sm:$0xff] }
 0x24e   : > { %4551 = vmatmul.msk.bf16.gmra.mxu0 %vm944_vm2, %v2999_v13 }
 0x24f   : > { %6578 = vst [vmem:[#allocation13_spill] sm:$0xff] %v5776_v7  ;;  %4534 = vmatmul.msk.bf16.gmra.mxu3 %vm944_vm2, %v2741_v24 }
 0x250   : > { %v2534_v59 = vpop.f32.mrf.mxu2 }
 0x251   : > { %v2624_v55 = vadd.f32 %v2534_v59, %v2303_v21  ;;  %v2215_v46 = vpop.f32.mrf.mxu1  ;;  %v2132_v21 = vsel %vm1242_vm3, %v2129_v33, %v2131_v12  ;;  %v2742_v59 = vshrl.u32 %v5765_v29, 16 }
 0x252   : > { %v2304_v52 = vadd.f32 %v2215_v46, %v5454_v17 }
 0x253   : > { %v2943_v38 = vadd.f32 %v2853_v32, %v2624_v55  ;;  %v3084_v4 = vpop.f32.mrf.mxu0  ;;  %v3000_v32 = vrot.slane %v5744_v60, 1  ;;  %v5798_v61 = vpop.f32.mrf.mxu3  ;;  %v2745_v55 = vshll.u32 %v5791_v27, 16 }
 0x255   : > { %v3172_v63 = vadd.f32 %v3082_v20, %v2943_v38  ;;  %v3001_v17 = vsel %vm1242_vm3, %v2998_v31, %v3000_v32  ;;  %v2747_v56 = vrot.slane %v2745_v55, 1 }
 0x257   : > { %v5794_v41 = vadd.f32 %v5786_v36, %v3172_v63  ;;  %v2744_v63 = vor.u32 %v2742_v59, %v2740_v54 }
 0x258   : > { %v2536_v2 = vpop.f32.mrf.mxu2 }
 0x259   : > { %v4561_v13 = vmul.f32 -1.442695, %v5794_v41  ;;  %v2625_v51 = vadd.f32 %v2536_v2, %v2304_v52  ;;  %v2218_v20 = vpop.f32.mrf.mxu1  ;;  %v2748_v54 = vsel %vm800_vm1, %v2744_v63, %v2747_v56 }
 0x25a   : > { %v2305_v52 = vadd.f32 %v2218_v20, %v5460_v25  ;;  %v5822_v20 = vld [vmem:[%s5092_s11 + $0xe8] sm:$0xff] }
 0x25b   : > { %4701 = vpow2.f32 %v4561_v13  ;;  %v2944_v24 = vadd.f32 %v2855_v39, %v2625_v51  ;;  %v3087_v38 = vpop.f32.mrf.mxu0  ;;  %v5813_v2 = vpop.f32.mrf.mxu3  ;;  %v6549_v55 = vrot.slane %v5822_v20, 1 }
 0x25c   : > { %4387 = vmatmul.msk.bf16.gmra.mxu1 %vm944_vm2, %v2132_v21 }
 0x25d   : > { %v3173_v46 = vadd.f32 %v3084_v4, %v2944_v24  ;;  %4514 = vmatmul.msk.bf16.gmra.mxu2 %vm944_vm2, %v5723_v5  ;;  %v5826_v24 = vld [vmem:[%s5092_s11 + $0x188] sm:$0xff] }
 0x25e   : > { %4552 = vmatmul.msk.bf16.gmra.mxu0 %vm944_vm2, %v3001_v17 }
 0x25f   : > { %v5810_v33 = vadd.f32 %v5786_v36, %v3173_v46  ;;  %4535 = vmatmul.msk.bf16.gmra.mxu3 %vm944_vm2, %v2748_v54 }
 0x260   : > { %v2539_v39 = vpop.f32.mrf.mxu2 }
 0x261   : > { %v4702_v31 = vpop.eup %4701  ;;  %v4562_v4 = vmul.f32 -1.442695, %v5810_v33  ;;  %v2626_v13 = vadd.f32 %v2539_v39, %v2305_v52  ;;  %v2220_v51 = vpop.f32.mrf.mxu1 }
 0x262   : > { %v5816_v5 = vadd.f32 1.0, %v4702_v31  ;;  %v2306_v46 = vadd.f32 %v2220_v51, %v5469_v40  ;;  %v2134_v40 = vsel %vm1242_vm3, %v2131_v12, %v6549_v55  ;;  %v2749_v51 = vshrl.u32 %v5791_v27, 16 }
 0x263   : > { %4703 = vpow2.f32 %v4562_v4  ;;  %v2945_v21 = vadd.f32 %v2858_v3, %v2626_v13  ;;  %v3089_v59 = vpop.f32.mrf.mxu0 }
 0x264   : > { %4705 = vrcp.f32 %v5816_v5  ;;  %vm3397_vm5 = vweird.f32 %v5816_v5 }
 0x265   : > { %v3174_v25 = vadd.f32 %v3087_v38, %v2945_v21  ;;  %v5834_v38 = vpop.f32.mrf.mxu3  ;;  %v2752_v21 = vshll.u32 %v5826_v24, 16 }
 0x267   : > { %v5829_v17 = vadd.f32 %v5786_v36, %v3174_v25 }
 0x268   : > { %v2541_v3 = vpop.f32.mrf.mxu2 }
 0x269   : > { %v4704_v52 = vpop.eup %4703  ;;  %v4563_v39 = vmul.f32 -1.442695, %v5829_v17  ;;  %v2627_v31 = vadd.f32 %v2541_v3, %v2306_v46  ;;  %v2223_v54 = vpop.f32.mrf.mxu1  ;;  %v6579_v46 = vrot.slane %v5765_v29, 1 }
 0x26a   : > { %v4706_v4 = vpop.eup %4705  ;;  %v5837_v13 = vadd.f32 1.0, %v4704_v52 }
 0x26b   : > { %v3393_v25 = vmul.f32 %v4706_v4, %v5816_v5  ;;  %4707 = vpow2.f32 %v4563_v39  ;;  %v2946_v63 = vadd.f32 %v5780_v16, %v2627_v31  ;;  %v3092_v7 = vpop.f32.mrf.mxu0  ;;  %v3003_v3 = vsel %vm1242_vm3, %v3000_v32, %v6579_v46 }
 0x26c   : > { %4709 = vrcp.f32 %v5837_v13  ;;  %4388 = vmatmul.msk.bf16.gmra.mxu1 %vm944_vm2, %v2134_v40  ;;  %v3401_v16 = vand.u32 2147483647, %v5816_v5  ;;  %v3403_v39 = vand.u32 2147483648, %v5816_v5  ;;  %v2751_v32 = vor.u32 %v2749_v51, %v2747_v56 }
 0x26d   : > { %v3394_v12 = vsub.f32 1.0, %v3393_v25  ;;  %v3175_v52 = vadd.f32 %v3089_v59, %v2946_v63  ;;  %4515 = vmatmul.msk.bf16.gmra.mxu2 %vm944_vm2, %v5744_v60  ;;  %v5861_v31 = vrot.slane %v2752_v21, 1  ;;  %vm3398_vm4 = vweird.f32 %v4706_v4  ;;  %v5868_v40 = vpop.f32.mrf.mxu3 }
 0x26e   : > { %4553 = vmatmul.msk.bf16.gmra.mxu0 %vm944_vm2, %v3003_v3  ;;  %v2307_v59 = vadd.f32 %v2223_v54, %v5475_v0  ;;  %vm3399_vm6 = vmor %vm3397_vm5, %vm3398_vm4  ;;  %v3404_v21 = vor.u32 1.1754944e-38, %v3403_v39  ;;  %vm3402_vm7 = vcmp.eq.f32.partialorder %v3401_v16, 8.507059e+37  ;;  %vm3412_vm9 = vweird.f32 %v5837_v13 }
 0x26f   : > { %v3395_v46 = vmul.f32 %v4706_v4, %v3394_v12  ;;  %v5864_v55 = vadd.f32 %v5786_v36, %v3175_v52  ;;  %v2755_v0 = vsel %vm800_vm1, %v2751_v32, %v5861_v31 }
 0x270   : > { %v2544_v63 = vpop.f32.mrf.mxu2  ;;  %4536 = vmatmul.msk.bf16.gmra.mxu3 %vm944_vm2, %v2755_v0 }
 0x271   : > { %v4708_v60 = vpop.eup %4707  ;;  %v3396_v25 = vadd.f32 %v4706_v4, %v3395_v46  ;;  %v4564_v3 = vmul.f32 -1.442695, %v5864_v55  ;;  %v2628_v56 = vadd.f32 %v2544_v63, %v2307_v59  ;;  %v2225_v52 = vpop.f32.mrf.mxu1  ;;  %v5884_v59 = vld [vmem:[%s5092_s11 + $0xf0] sm:$0xff] }
 0x272   : > { %v4710_v51 = vpop.eup %4709  ;;  %v5872_v12 = vadd.f32 1.0, %v4708_v60  ;;  %v3418_v60 = vand.u32 2147483648, %v5837_v13  ;;  %v2308_v32 = vadd.f32 %v2225_v52, %v5484_v30 }
 0x273   : > { %v3400_v54 = vsel %vm3399_vm6, %v4706_v4, %v3396_v25  ;;  %v3408_v46 = vmul.f32 %v4710_v51, %v5837_v13  ;;  %4711 = vpow2.f32 %v4564_v3  ;;  %v3094_v5 = vpop.f32.mrf.mxu0  ;;  %v2947_v25 = vadd.f32 %v5798_v61, %v2628_v56  ;;  %v5893_v3 = vld [vmem:[%s5092_s11 + $0x190] sm:$0xff] }
 0x274   : > { %v3405_v39 = vsel %vm3402_vm7, %v3404_v21, %v3400_v54  ;;  %4713 = vrcp.f32 %v5872_v12  ;;  %vm3413_vm8 = vweird.f32 %v4710_v51  ;;  %v3416_v54 = vand.u32 2147483647, %v5837_v13 }
 0x275   : > { %v3932_v16 = vmul.f32 %v3405_v39, %v5794_v41  ;;  %v3409_v63 = vsub.f32 1.0, %v3408_v46  ;;  %v3176_v15 = vadd.f32 %v3092_v7, %v2947_v25  ;;  %v6580_v41 = vrot.slane %v5884_v59, 1  ;;  %vm3414_vm10 = vmor %vm3412_vm9, %vm3413_vm8 }
 0x276   : > { %v6581_v46 = vrot.slane %v5822_v20, 1  ;;  %v6582_v61 = vrot.slane %v5791_v27, 1  ;;  %v6583_v56 = vrot.slane %v5765_v29, 1  ;;  %v3419_v30 = vor.u32 1.1754944e-38, %v3418_v60 }
 0x277   : > { %3968 = vst [vmem:[%s5880_s5] sm:$0xff] %v3932_v16  ;;  %v3410_v21 = vmul.f32 %v4710_v51, %v3409_v63  ;;  %v5908_v16 = vpop.f32.mrf.mxu3  ;;  %v5912_v7 = vadd.f32 %v5786_v36, %v3176_v15  ;;  %vm3417_vm11 = vcmp.eq.f32.partialorder %v3416_v54, 8.507059e+37  ;;  %vm3427_vm13 = vweird.f32 %v5872_v12 }
 0x278   : > { %v2546_v4 = vpop.f32.mrf.mxu2  ;;  %v2136_v39 = vsel %vm1242_vm3, %v6581_v46, %v6580_v41  ;;  %v3005_v0 = vsel %vm1242_vm3, %v6583_v56, %v6582_v61  ;;  %v2756_v46 = vshrl.u32 %v5826_v24, 16  ;;  %v2759_v61 = vshll.u32 %v5893_v3, 16 }
 0x279   : > { %v4712_v63 = vpop.eup %4711  ;;  %v3411_v8 = vadd.f32 %v4710_v51, %v3410_v21  ;;  %v2629_v25 = vadd.f32 %v2546_v4, %v2308_v32  ;;  %v2228_v41 = vpop.f32.mrf.mxu1  ;;  %v4565_v13 = vmul.f32 -1.442695, %v5912_v7 }
 0x27a   : > { %v4714_v52 = vpop.eup %4713  ;;  %v5914_v20 = vadd.f32 1.0, %v4712_v63  ;;  %v2758_v32 = vor.u32 %v2756_v46, %v5861_v31  ;;  %v5929_v4 = vrot.slane %v2759_v61, 1 }
 0x27b   : > { %v3415_v56 = vsel %vm3414_vm10, %v4710_v51, %v3411_v8  ;;  %v3423_v21 = vmul.f32 %v4714_v52, %v5872_v12  ;;  %v3097_v60 = vpop.f32.mrf.mxu0  ;;  %v3433_v8 = vand.u32 2147483648, %v5872_v12  ;;  %v2948_v51 = vadd.f32 %v5813_v2, %v2629_v25 }
 0x27c   : > { %v3420_v15 = vsel %vm3417_vm11, %v3419_v30, %v3415_v56  ;;  %4715 = vrcp.f32 %v5914_v20  ;;  %4389 = vmatmul.msk.bf16.gmra.mxu1 %vm944_vm2, %v2136_v39  ;;  %vm3428_vm12 = vweird.f32 %v4714_v52  ;;  %v2309_v39 = vadd.f32 %v2228_v41, %v5490_v1 }
 0x27d   : > { %v3933_v63 = vmul.f32 %v3420_v15, %v5810_v33  ;;  %v3424_v42 = vsub.f32 1.0, %v3423_v21  ;;  %4717 = vpow2.f32 %v4565_v13  ;;  %4516 = vmatmul.msk.bf16.gmra.mxu2 %vm944_vm2, %v5765_v29  ;;  %v3431_v33 = vand.u32 2147483647, %v5872_v12  ;;  %vm3429_vm14 = vmor %vm3427_vm13, %vm3428_vm12 }
 0x27e   : > { %4554 = vmatmul.msk.bf16.gmra.mxu0 %vm944_vm2, %v3005_v0  ;;  %v3177_v30 = vadd.f32 %v3094_v5, %v2948_v51  ;;  %v3434_v31 = vor.u32 1.1754944e-38, %v3433_v8  ;;  %v2762_v46 = vsel %vm800_vm1, %v2758_v32, %v5929_v4  ;;  %v5948_v8 = vld [vmem:[%s5092_s11 + $0xf8] sm:$0xff]  ;;  %vm3442_vm4 = vweird.f32 %v5914_v20 }
 0x27f   : > { %3969 = vst [vmem:[%s5880_s5 + $0x8] sm:$0xff] %v3933_v63  ;;  %v3425_v54 = vmul.f32 %v4714_v52, %v3424_v42  ;;  %v5934_v29 = vpop.f32.mrf.mxu3  ;;  %vm3432_vm15 = vcmp.eq.f32.partialorder %v3431_v33, 8.507059e+37  ;;  %v2137_v51 = vrot.slane %v5948_v8, 1  ;;  %v3006_v33 = vrot.slane %v5826_v24, 1 }
 0x280   : > { %v2549_v56 = vpop.f32.mrf.mxu2  ;;  %v5938_v25 = vadd.f32 %v5786_v36, %v3177_v30  ;;  %4537 = vmatmul.msk.bf16.gmra.mxu3 %vm944_vm2, %v2762_v46  ;;  %v5958_v30 = vld [vmem:[%s5092_s11 + $0x198] sm:$0xff] }
 0x281   : > { %v3426_v21 = vadd.f32 %v4714_v52, %v3425_v54  ;;  %v2630_v2 = vadd.f32 %v2549_v56, %v2309_v39  ;;  %v2230_v42 = vpop.f32.mrf.mxu1  ;;  %v3448_v39 = vand.u32 2147483648, %v5914_v20 }
 0x282   : > { %v4716_v0 = vpop.eup %4715  ;;  %v4566_v63 = vmul.f32 -1.442695, %v5938_v25 }
 0x283   : > { %v4718_v1 = vpop.eup %4717  ;;  %v3430_v5 = vsel %vm3429_vm14, %v4714_v52, %v3426_v21  ;;  %v3438_v41 = vmul.f32 %v4716_v0, %v5914_v20  ;;  %v2949_v61 = vadd.f32 %v5834_v38, %v2630_v2  ;;  %v3099_v12 = vpop.f32.mrf.mxu0  ;;  %vm3443_vm0 = vweird.f32 %v4716_v0 }
 0x284   : > { %v3435_v13 = vsel %vm3432_vm15, %v3434_v31, %v3430_v5  ;;  %v5944_v15 = vadd.f32 1.0, %v4718_v1  ;;  %v3446_v38 = vand.u32 2147483647, %v5914_v20  ;;  %v6584_v2 = vrot.slane %v5884_v59, 1  ;;  %vm3444_vm5 = vmor %vm3442_vm4, %vm3443_vm0 }
 0x285   : > { %v3934_v32 = vmul.f32 %v3435_v13, %v5829_v17  ;;  %v3439_v52 = vsub.f32 1.0, %v3438_v41  ;;  %v3178_v54 = vadd.f32 %v3097_v60, %v2949_v61  ;;  %v2310_v60 = vadd.f32 %v2230_v42, %v5499_v35 }
 0x286   : > { %4719 = vrcp.f32 %v5944_v15  ;;  %v2138_v31 = vsel %vm1242_vm3, %v6584_v2, %v2137_v51  ;;  %v3449_v61 = vor.u32 1.1754944e-38, %v3448_v39  ;;  %v6585_v35 = vrot.slane %v5791_v27, 1 }
 0x287   : > { %3970 = vst [vmem:[%s5880_s5 + $0x10] sm:$0xff] %v3934_v32  ;;  %v3440_v56 = vmul.f32 %v4716_v0, %v3439_v52  ;;  %4721 = vpow2.f32 %v4566_v63  ;;  %v5962_v17 = vadd.f32 %v5786_v36, %v3178_v54  ;;  %v5970_v46 = vpop.f32.mrf.mxu3  ;;  %v2763_v42 = vshrl.u32 %v5893_v3, 16 }
 0x288   : > { %v2551_v21 = vpop.f32.mrf.mxu2  ;;  %v3007_v59 = vsel %vm1242_vm3, %v6585_v35, %v3006_v33  ;;  %v2766_v63 = vshll.u32 %v5958_v30, 16  ;;  %vm3447_vm6 = vcmp.eq.f32.partialorder %v3446_v38, 8.507059e+37  ;;  %vm3457_vm8 = vweird.f32 %v5944_v15 }
 0x289   : > { %v3441_v1 = vadd.f32 %v4716_v0, %v3440_v56  ;;  %v4567_v5 = vmul.f32 -1.442695, %v5962_v17  ;;  %v2631_v41 = vadd.f32 %v2551_v21, %v2310_v60  ;;  %v2233_v13 = vpop.f32.mrf.mxu1 }
 0x28a   : > { %v5992_v38 = vrot.slane %v2766_v63, 1 }
 0x28b   : > { %v3445_v32 = vsel %vm3444_vm5, %v4716_v0, %v3441_v1  ;;  %4723 = vpow2.f32 %v4567_v5  ;;  %v2950_v20 = vadd.f32 %v5868_v40, %v2631_v41  ;;  %v3102_v52 = vpop.f32.mrf.mxu0  ;;  %v2765_v40 = vor.u32 %v2763_v42, %v5929_v4 }
 0x28c   : > { %v4720_v54 = vpop.eup %4719  ;;  %v3450_v39 = vsel %vm3447_vm6, %v3449_v61, %v3445_v32  ;;  %4390 = vmatmul.msk.bf16.gmra.mxu1 %vm944_vm2, %v2138_v31  ;;  %v3461_v31 = vand.u32 2147483647, %v5944_v15  ;;  %v3463_v5 = vand.u32 2147483648, %v5944_v15 }
 0x28d   : > { %v4722_v56 = vpop.eup %4721  ;;  %v3935_v60 = vmul.f32 %v3450_v39, %v5864_v55  ;;  %v3453_v21 = vmul.f32 %v4720_v54, %v5944_v15  ;;  %v3179_v2 = vadd.f32 %v3099_v12, %v2950_v20  ;;  %4517 = vmatmul.msk.bf16.gmra.mxu2 %vm944_vm2, %v5791_v27  ;;  %v2311_v12 = vadd.f32 %v2233_v13, %v5505_v28 }
 0x28e   : > { %v5988_v0 = vadd.f32 1.0, %v4722_v56  ;;  %4555 = vmatmul.msk.bf16.gmra.mxu0 %vm944_vm2, %v3007_v59  ;;  %vm3458_vm7 = vweird.f32 %v4720_v54  ;;  %v2769_v28 = vsel %vm800_vm1, %v2765_v40, %v5992_v38  ;;  %v3464_v39 = vor.u32 1.1754944e-38, %v3463_v5  ;;  %v6013_v56 = vld [vmem:[%s5092_s11 + $0x100] sm:$0xff] }
 0x28f   : > { %3971 = vst [vmem:[%s5880_s5 + $0x18] sm:$0xff] %v3935_v60  ;;  %v3454_v1 = vsub.f32 1.0, %v3453_v21  ;;  %v5996_v55 = vadd.f32 %v5786_v36, %v3179_v2  ;;  %v6002_v41 = vpop.f32.mrf.mxu3  ;;  %vm3459_vm9 = vmor %vm3457_vm8, %vm3458_vm7  ;;  %v2139_v60 = vrot.slane %v6013_v56, 1  ;;  %vm3462_vm10 = vcmp.eq.f32.partialorder %v3461_v31, 8.507059e+37 }
 0x290   : > { %4725 = vrcp.f32 %v5988_v0  ;;  %v2554_v27 = vpop.f32.mrf.mxu2  ;;  %4538 = vmatmul.msk.bf16.gmra.mxu3 %vm944_vm2, %v2769_v28  ;;  %v3476_v31 = vand.u32 2147483647, %v5988_v0  ;;  %vm3472_vm12 = vweird.f32 %v5988_v0 }
 0x291   : > { %v4724_v61 = vpop.eup %4723  ;;  %v3455_v4 = vmul.f32 %v4720_v54, %v3454_v1  ;;  %v4568_v35 = vmul.f32 -1.442695, %v5996_v55  ;;  %v2632_v59 = vadd.f32 %v2554_v27, %v2311_v12  ;;  %v2235_v63 = vpop.f32.mrf.mxu1  ;;  %v6550_v1 = vrot.slane %v5893_v3, 1 }
 0x292   : > { %v6005_v42 = vadd.f32 1.0, %v4724_v61  ;;  %v2140_v61 = vsel %vm1242_vm3, %v2137_v51, %v2139_v60  ;;  %v2770_v51 = vshrl.u32 %v5958_v30, 16  ;;  %vm6049_vm13 = vcmp.eq.f32.partialorder %v3476_v31, 8.507059e+37 }
 0x293   : > { %v3456_v13 = vadd.f32 %v4720_v54, %v3455_v4  ;;  %4727 = vpow2.f32 %v4568_v35  ;;  %v2951_v32 = vadd.f32 %v5908_v16, %v2632_v59  ;;  %v3104_v20 = vpop.f32.mrf.mxu0  ;;  %v6019_v16 = vld [vmem:[%s5092_s11 + $0x1a0] sm:$0xff]  ;;  %v3478_v59 = vand.u32 2147483648, %v5988_v0 }
 0x294   : > { %4729 = vrcp.f32 %v6005_v42  ;;  %v3009_v8 = vsel %vm1242_vm3, %v3006_v33, %v6550_v1  ;;  %v2772_v31 = vor.u32 %v2770_v51, %v5992_v38  ;;  %vm3487_vm0 = vweird.f32 %v6005_v42 }
 0x295   : > { %v3460_v21 = vsel %vm3459_vm9, %v4720_v54, %v3456_v13  ;;  %v3180_v2 = vadd.f32 %v3102_v52, %v2951_v32  ;;  %v2312_v54 = vadd.f32 %v2235_v63, %v5514_v53  ;;  %v3479_v33 = vor.u32 1.1754944e-38, %v3478_v59 }
 0x296   : > { %v4726_v15 = vpop.eup %4725  ;;  %v3465_v40 = vsel %vm3462_vm10, %v3464_v39, %v3460_v21  ;;  %v2773_v39 = vshll.u32 %v6019_v16, 16 }
 0x297   : > { %v3936_v12 = vmul.f32 %v3465_v40, %v5912_v7  ;;  %v3468_v5 = vmul.f32 %v4726_v15, %v5988_v0  ;;  %v6024_v27 = vadd.f32 %v5786_v36, %v3180_v2  ;;  %v6033_v4 = vpop.f32.mrf.mxu3  ;;  %vm3473_vm11 = vweird.f32 %v4726_v15 }
 0x298   : > { %v2556_v52 = vpop.f32.mrf.mxu2  ;;  %vm3474_vm14 = vmor %vm3472_vm12, %vm3473_vm11  ;;  %v3493_v0 = vand.u32 2147483648, %v6005_v42 }
 0x299   : > { %v4728_v35 = vpop.eup %4727  ;;  %3972 = vst [vmem:[%s5880_s5 + $0x20] sm:$0xff] %v3936_v12  ;;  %v3469_v7 = vsub.f32 1.0, %v3468_v5  ;;  %v4569_v28 = vmul.f32 -1.442695, %v6024_v27  ;;  %v2633_v13 = vadd.f32 %v2556_v52, %v2312_v54  ;;  %v2238_v32 = vpop.f32.mrf.mxu1 }
 0x29a   : > { %v4730_v53 = vpop.eup %4729  ;;  %v6038_v63 = vadd.f32 1.0, %v4728_v35  ;;  %v3491_v35 = vand.u32 2147483647, %v6005_v42 }
 0x29b   : > { %v3470_v21 = vmul.f32 %v4726_v15, %v3469_v7  ;;  %v3483_v2 = vmul.f32 %v4730_v53, %v6005_v42  ;;  %4731 = vpow2.f32 %v4569_v28  ;;  %v3107_v40 = vpop.f32.mrf.mxu0  ;;  %v2952_v52 = vadd.f32 %v5934_v29, %v2633_v13 }
 0x29c   : > { %4733 = vrcp.f32 %v6038_v63  ;;  %4391 = vmatmul.msk.bf16.gmra.mxu1 %vm944_vm2, %v2140_v61  ;;  %v6062_v7 = vrot.slane %v2773_v39, 1  ;;  %vm3488_vm15 = vweird.f32 %v4730_v53  ;;  %vm3492_vm5 = vcmp.eq.f32.partialorder %v3491_v35, 8.507059e+37 }
 0x29d   : > { %v3471_v5 = vadd.f32 %v4726_v15, %v3470_v21  ;;  %v3484_v54 = vsub.f32 1.0, %v3483_v2  ;;  %4518 = vmatmul.msk.bf16.gmra.mxu2 %vm944_vm2, %v5826_v24  ;;  %v3181_v29 = vadd.f32 %v3104_v20, %v2952_v52  ;;  %v2313_v24 = vadd.f32 %v2238_v32, %v5520_v58  ;;  %vm3489_vm4 = vmor %vm3487_vm0, %vm3488_vm15 }
 0x29e   : > { %4556 = vmatmul.msk.bf16.gmra.mxu0 %vm944_vm2, %v3009_v8  ;;  %v2776_v32 = vsel %vm800_vm1, %v2772_v31, %v6062_v7  ;;  %vm3502_vm7 = vweird.f32 %v6038_v63 }
 0x29f   : > { %v3475_v59 = vsel %vm3474_vm14, %v4726_v15, %v3471_v5  ;;  %v3485_v28 = vmul.f32 %v4730_v53, %v3484_v54  ;;  %v6067_v21 = vpop.f32.mrf.mxu3  ;;  %v6072_v38 = vadd.f32 %v5786_v36, %v3181_v29  ;;  %v3494_v15 = vor.u32 1.1754944e-38, %v3493_v0  ;;  %v6083_v54 = vld [vmem:[%s5092_s11 + $0x108] sm:$0xff] }
 0x2a0   : > { %v3480_v61 = vsel %vm6049_vm13, %v3479_v33, %v3475_v59  ;;  %v2559_v13 = vpop.f32.mrf.mxu2  ;;  %v2141_v52 = vrot.slane %v6083_v54, 1  ;;  %4539 = vmatmul.msk.bf16.gmra.mxu3 %vm944_vm2, %v2776_v32  ;;  %v6092_v59 = vld [vmem:[%s5092_s11 + $0x1a8] sm:$0xff]  ;;  %v3506_v29 = vand.u32 2147483647, %v6038_v63 }
 0x2a1   : > { %v4732_v2 = vpop.eup %4731  ;;  %v3937_v8 = vmul.f32 %v3480_v61, %v5938_v25  ;;  %v3486_v1 = vadd.f32 %v4730_v53, %v3485_v28  ;;  %v2634_v39 = vadd.f32 %v2559_v13, %v2313_v24  ;;  %v2240_v58 = vpop.f32.mrf.mxu1  ;;  %v4570_v42 = vmul.f32 -1.442695, %v6072_v38 }
 0x2a2   : > { %v4734_v20 = vpop.eup %4733  ;;  %v6074_v51 = vadd.f32 1.0, %v4732_v2  ;;  %v2314_v61 = vadd.f32 %v2240_v58, %v5529_v10  ;;  %v2142_v13 = vsel %vm1242_vm3, %v2139_v60, %v2141_v52  ;;  %v2777_v60 = vshrl.u32 %v6019_v16, 16 }
 0x2a3   : > { %3973 = vst [vmem:[%s5880_s5 + $0x28] sm:$0xff] %v3937_v8  ;;  %v3490_v12 = vsel %vm3489_vm4, %v4730_v53, %v3486_v1  ;;  %v3498_v25 = vmul.f32 %v4734_v20, %v6038_v63  ;;  %v3109_v5 = vpop.f32.mrf.mxu0  ;;  %v3010_v1 = vrot.slane %v5958_v30, 1  ;;  %v3508_v53 = vand.u32 2147483648, %v6038_v63 }
 0x2a4   : > { %v3495_v33 = vsel %vm3492_vm5, %v3494_v15, %v3490_v12  ;;  %4735 = vrcp.f32 %v6074_v51  ;;  %v2953_v35 = vadd.f32 %v5970_v46, %v2634_v39  ;;  %vm3503_vm6 = vweird.f32 %v4734_v20 }
 0x2a5   : > { %v3938_v0 = vmul.f32 %v3495_v33, %v5962_v17  ;;  %v3499_v31 = vsub.f32 1.0, %v3498_v25  ;;  %4737 = vpow2.f32 %v4570_v42  ;;  %v6588_v15 = vrot.slane %v5893_v3, 1  ;;  %vm3504_vm8 = vmor %vm3502_vm7, %vm3503_vm6 }
 0x2a6   : > { %v3182_v17 = vadd.f32 %v3107_v40, %v2953_v35  ;;  %v3509_v39 = vor.u32 1.1754944e-38, %v3508_v53  ;;  %v2780_v32 = vshll.u32 %v6092_v59, 16  ;;  %vm3507_vm9 = vcmp.eq.f32.partialorder %v3506_v29, 8.507059e+37 }
 0x2a7   : > { %3974 = vst [vmem:[%s5880_s5 + $0x30] sm:$0xff] %v3938_v0  ;;  %v3500_v28 = vmul.f32 %v4734_v20, %v3499_v31  ;;  %v6102_v2 = vpop.f32.mrf.mxu3  ;;  %v3011_v10 = vsel %vm1242_vm3, %v6588_v15, %v3010_v1  ;;  %v3521_v31 = vand.u32 2147483647, %v6074_v51  ;;  %vm3517_vm11 = vweird.f32 %v6074_v51 }
 0x2a8   : > { %v2561_v24 = vpop.f32.mrf.mxu2  ;;  %v6111_v58 = vadd.f32 %v5786_v36, %v3182_v17  ;;  %v3523_v17 = vand.u32 2147483648, %v6074_v51  ;;  %v6129_v29 = vrot.slane %v2780_v32, 1 }
 0x2a9   : > { %v3501_v46 = vadd.f32 %v4734_v20, %v3500_v28  ;;  %v2635_v8 = vadd.f32 %v2561_v24, %v2314_v61  ;;  %v2243_v56 = vpop.f32.mrf.mxu1  ;;  %vm3522_vm13 = vcmp.eq.f32.partialorder %v3521_v31, 8.507059e+37  ;;  %v3012_v31 = vrot.slane %v6019_v16, 1 }
 0x2aa   : > { %v4736_v40 = vpop.eup %4735  ;;  %v4571_v35 = vmul.f32 -1.442695, %v6111_v58 }
 0x2ab   : > { %v4738_v12 = vpop.eup %4737  ;;  %v3505_v63 = vsel %vm3504_vm8, %v4734_v20, %v3501_v46  ;;  %v3513_v25 = vmul.f32 %v4736_v40, %v6074_v51  ;;  %v2954_v42 = vadd.f32 %v6002_v41, %v2635_v8  ;;  %v3112_v33 = vpop.f32.mrf.mxu0  ;;  %vm3518_vm10 = vweird.f32 %v4736_v40 }
 0x2ac   : > { %v3510_v0 = vsel %vm3507_vm9, %v3509_v39, %v3505_v63  ;;  %v6118_v53 = vadd.f32 1.0, %v4738_v12  ;;  %4392 = vmatmul.msk.bf16.gmra.mxu1 %vm944_vm2, %v2142_v13  ;;  %v2779_v41 = vor.u32 %v2777_v60, %v6062_v7  ;;  %vm3519_vm12 = vmor %vm3517_vm11, %vm3518_vm10  ;;  %v3524_v7 = vor.u32 1.1754944e-38, %v3523_v17 }
 0x2ad   : > { %v3939_v28 = vmul.f32 %v3510_v0, %v5996_v55  ;;  %v3514_v61 = vsub.f32 1.0, %v3513_v25  ;;  %v3183_v20 = vadd.f32 %v3109_v5, %v2954_v42  ;;  %4519 = vmatmul.msk.bf16.gmra.mxu2 %vm944_vm2, %v5893_v3  ;;  %v2315_v5 = vadd.f32 %v2243_v56, %v5535_v26 }
 0x2ae   : > { %4739 = vrcp.f32 %v6118_v53  ;;  %4557 = vmatmul.msk.bf16.gmra.mxu0 %vm944_vm2, %v3011_v10  ;;  %v2783_v39 = vsel %vm800_vm1, %v2779_v41, %v6129_v29  ;;  %vm3532_vm14 = vweird.f32 %v6118_v53 }
 0x2af   : > { %3975 = vst [vmem:[%s5880_s5 + $0x38] sm:$0xff] %v3939_v28  ;;  %v3515_v55 = vmul.f32 %v4736_v40, %v3514_v61  ;;  %4741 = vpow2.f32 %v4571_v35  ;;  %v6133_v24 = vadd.f32 %v5786_v36, %v3183_v20  ;;  %v6136_v46 = vpop.f32.mrf.mxu3  ;;  %v6150_v35 = vld [vmem:[%s5092_s11 + $0x110] sm:$0xff]  ;;  %v3536_v61 = vand.u32 2147483647, %v6118_v53 }
 0x2b0   : > { %v2564_v13 = vpop.f32.mrf.mxu2  ;;  %4540 = vmatmul.msk.bf16.gmra.mxu3 %vm944_vm2, %v2783_v39 }
 0x2b1   : > { %v3516_v3 = vadd.f32 %v4736_v40, %v3515_v55  ;;  %v4572_v8 = vmul.f32 -1.442695, %v6133_v24  ;;  %v2636_v15 = vadd.f32 %v2564_v13, %v2315_v5  ;;  %v2245_v10 = vpop.f32.mrf.mxu1  ;;  %vm3537_vm0 = vcmp.eq.f32.partialorder %v3536_v61, 8.507059e+37 }
 0x2b3   : > { %v3520_v60 = vsel %vm3519_vm12, %v4736_v40, %v3516_v3  ;;  %4743 = vpow2.f32 %v4572_v8  ;;  %v2955_v26 = vadd.f32 %v6033_v4, %v2636_v15  ;;  %v3114_v56 = vpop.f32.mrf.mxu0  ;;  %v2143_v40 = vrot.slane %v6150_v35, 1 }
 0x2b4   : > { %v4740_v32 = vpop.eup %4739  ;;  %v3525_v51 = vsel %vm3522_vm13, %v3524_v7, %v3520_v60  ;;  %v3013_v15 = vsel %vm1242_vm3, %v3010_v1, %v3012_v31  ;;  %v2784_v1 = vshrl.u32 %v6092_v59, 16 }
 0x2b5   : > { %v4742_v12 = vpop.eup %4741  ;;  %v3940_v63 = vmul.f32 %v3525_v51, %v6024_v27  ;;  %v3528_v25 = vmul.f32 %v4740_v32, %v6118_v53  ;;  %v3184_v42 = vadd.f32 %v3112_v33, %v2955_v26  ;;  %v2316_v27 = vadd.f32 %v2245_v10, %v5544_v18 }
 0x2b6   : > { %v6147_v0 = vadd.f32 1.0, %v4742_v12  ;;  %v3538_v33 = vand.u32 2147483648, %v6118_v53  ;;  %vm3533_vm1 = vweird.f32 %v4740_v32  ;;  %v2144_v18 = vsel %vm1242_vm3, %v2141_v52, %v2143_v40 }
 0x2b7   : > { %3976 = vst [vmem:[%s5880_s5 + $0x40] sm:$0xff] %v3940_v63  ;;  %v3529_v4 = vsub.f32 1.0, %v3528_v25  ;;  %v6156_v28 = vadd.f32 %v5786_v36, %v3184_v42  ;;  %v6162_v20 = vpop.f32.mrf.mxu3  ;;  %vm3534_vm15 = vmor %vm3532_vm14, %vm3533_vm1 }
 0x2b8   : > { %4745 = vrcp.f32 %v6147_v0  ;;  %v2566_v17 = vpop.f32.mrf.mxu2  ;;  %v3539_v60 = vor.u32 1.1754944e-38, %v3538_v33  ;;  %v3551_v61 = vand.u32 2147483647, %v6147_v0  ;;  %v3553_v33 = vand.u32 2147483648, %v6147_v0 }
 0x2b9   : > { %v4744_v41 = vpop.eup %4743  ;;  %v3530_v55 = vmul.f32 %v4740_v32, %v3529_v4  ;;  %v4573_v5 = vmul.f32 -1.442695, %v6156_v28  ;;  %v2637_v13 = vadd.f32 %v2566_v17, %v2316_v27  ;;  %v2248_v8 = vpop.f32.mrf.mxu1  ;;  %v2786_v27 = vor.u32 %v2784_v1, %v6129_v29 }
 0x2ba   : > { %v6165_v3 = vadd.f32 1.0, %v4744_v41  ;;  %vm3547_vm5 = vweird.f32 %v6147_v0  ;;  %vm3552_vm7 = vcmp.eq.f32.partialorder %v3551_v61, 8.507059e+37 }
 0x2bb   : > { %v3531_v7 = vadd.f32 %v4740_v32, %v3530_v55  ;;  %4747 = vpow2.f32 %v4573_v5  ;;  %v2956_v10 = vadd.f32 %v6067_v21, %v2637_v13  ;;  %v3117_v39 = vpop.f32.mrf.mxu0  ;;  %v6203_v13 = vld [vmem:[%s5092_s11 + $0x118] sm:$0xff] }
 0x2bc   : > { %4749 = vrcp.f32 %v6165_v3  ;;  %4393 = vmatmul.msk.bf16.gmra.mxu1 %vm944_vm2, %v2144_v18  ;;  %v2145_v29 = vrot.slane %v6203_v13, 1  ;;  %vm3562_vm9 = vweird.f32 %v6165_v3 }
 0x2bd   : > { %v3535_v54 = vsel %vm3534_vm15, %v4740_v32, %v3531_v7  ;;  %v3185_v52 = vadd.f32 %v3114_v56, %v2956_v10  ;;  %4520 = vmatmul.msk.bf16.gmra.mxu2 %vm944_vm2, %v5958_v30  ;;  %v2317_v56 = vadd.f32 %v2248_v8, %v5553_v23  ;;  %v3014_v8 = vrot.slane %v6092_v59, 1 }
 0x2be   : > { %v4746_v53 = vpop.eup %4745  ;;  %v3540_v26 = vsel %vm3537_vm0, %v3539_v60, %v3535_v54  ;;  %4558 = vmatmul.msk.bf16.gmra.mxu0 %vm944_vm2, %v3013_v15  ;;  %v3554_v10 = vor.u32 1.1754944e-38, %v3553_v33  ;;  %v3566_v60 = vand.u32 2147483647, %v6165_v3  ;;  %v3568_v54 = vand.u32 2147483648, %v6165_v3 }
 0x2bf   : > { %v3941_v21 = vmul.f32 %v3540_v26, %v6072_v38  ;;  %v3543_v51 = vmul.f32 %v4746_v53, %v6147_v0  ;;  %v6188_v32 = vadd.f32 %v5786_v36, %v3185_v52  ;;  %v6191_v63 = vpop.f32.mrf.mxu3  ;;  %vm3548_vm4 = vweird.f32 %v4746_v53 }
 0x2c0   : > { %v2569_v12 = vpop.f32.mrf.mxu2  ;;  %4541 = vmatmul.msk.bf16.gmra.mxu3 %vm944_vm2, %v2786_v27  ;;  %vm3549_vm6 = vmor %vm3547_vm5, %vm3548_vm4  ;;  %vm3567_vm11 = vcmp.eq.f32.partialorder %v3566_v60, 8.507059e+37 }
 0x2c1   : > { %v4748_v25 = vpop.eup %4747  ;;  %3977 = vst [vmem:[%s5880_s5 + $0x48] sm:$0xff] %v3941_v21  ;;  %v3544_v30 = vsub.f32 1.0, %v3543_v51  ;;  %v4574_v42 = vmul.f32 -1.442695, %v6188_v32  ;;  %v2638_v4 = vadd.f32 %v2569_v12, %v2317_v56  ;;  %v2250_v23 = vpop.f32.mrf.mxu1 }
 0x2c2   : > { %v4750_v38 = vpop.eup %4749  ;;  %v6198_v17 = vadd.f32 1.0, %v4748_v25  ;;  %v2318_v51 = vadd.f32 %v2250_v23, %v5568_v43 }
 0x2c3   : > { %v3545_v41 = vmul.f32 %v4746_v53, %v3544_v30  ;;  %v3558_v55 = vmul.f32 %v4750_v38, %v6165_v3  ;;  %4751 = vpow2.f32 %v4574_v42  ;;  %v3119_v5 = vpop.f32.mrf.mxu0  ;;  %v2957_v7 = vadd.f32 %v6102_v2, %v2638_v4 }
 0x2c4   : > { %4753 = vrcp.f32 %v6198_v17  ;;  %vm3563_vm8 = vweird.f32 %v4750_v38  ;;  %v2146_v2 = vsel %vm1242_vm3, %v2143_v40, %v2145_v29  ;;  %v3569_v30 = vor.u32 1.1754944e-38, %v3568_v54  ;;  %v6252_v54 = vld [vmem:[%s6545_s2] ss:$0 sm:$0xff] }
 0x2c5   : > { %v3546_v18 = vadd.f32 %v4746_v53, %v3545_v41  ;;  %v3559_v15 = vsub.f32 1.0, %v3558_v55  ;;  %v3186_v26 = vadd.f32 %v3117_v39, %v2957_v7  ;;  %vm3564_vm10 = vmor %vm3562_vm9, %vm3563_vm8  ;;  %v3015_v40 = vsel %vm1242_vm3, %v3012_v31, %v3014_v8 }
 0x2c6   : > { %v3583_v31 = vand.u32 2147483648, %v6198_v17  ;;  %v3581_v55 = vand.u32 2147483647, %v6198_v17  ;;  %vm3577_vm12 = vweird.f32 %v6198_v17 }
 0x2c7   : > { %v3550_v52 = vsel %vm3549_vm6, %v4746_v53, %v3546_v18  ;;  %v3560_v1 = vmul.f32 %v4750_v38, %v3559_v15  ;;  %v6218_v56 = vpop.f32.mrf.mxu3  ;;  %v6223_v39 = vadd.f32 %v5786_v36, %v3186_v26 }
 0x2c8   : > { %v3555_v21 = vsel %vm3552_vm7, %v3554_v10, %v3550_v52  ;;  %v2571_v0 = vpop.f32.mrf.mxu2  ;;  %vm3582_vm1 = vcmp.eq.f32.partialorder %v3581_v55, 8.507059e+37 }
 0x2c9   : > { %v4752_v12 = vpop.eup %4751  ;;  %v3942_v25 = vmul.f32 %v3555_v21, %v6111_v58  ;;  %v3561_v53 = vadd.f32 %v4750_v38, %v3560_v1  ;;  %v2639_v4 = vadd.f32 %v2571_v0, %v2318_v51  ;;  %v2253_v35 = vpop.f32.mrf.mxu1  ;;  %v4575_v3 = vmul.f32 -1.442695, %v6223_v39 }
 0x2ca   : > { %v4754_v43 = vpop.eup %4753  ;;  %v6225_v42 = vadd.f32 1.0, %v4752_v12 }
 0x2cb   : > { %3978 = vst [vmem:[%s5880_s5 + $0x50] sm:$0xff] %v3942_v25  ;;  %v3565_v58 = vsel %vm3564_vm10, %v4750_v38, %v3561_v53  ;;  %v3573_v36 = vmul.f32 %v4754_v43, %v6198_v17  ;;  %v3122_v27 = vpop.f32.mrf.mxu0  ;;  %v2958_v38 = vadd.f32 %v6136_v46, %v2639_v4  ;;  %vm3578_vm3 = vweird.f32 %v4754_v43 }
 0x2cc   : > { %v3570_v61 = vsel %vm3567_vm11, %v3569_v30, %v3565_v58  ;;  %4755 = vrcp.f32 %v6225_v42  ;;  %4394 = vmatmul.msk.bf16.gmra.mxu1 %vm944_vm2, %v2146_v2  ;;  %vm3579_vm13 = vmor %vm3577_vm12, %vm3578_vm3  ;;  %v3584_v46 = vor.u32 1.1754944e-38, %v3583_v31  ;;  %v3596_v30 = vand.u32 2147483647, %v6225_v42 }
 0x2cd   : > { %v3943_v33 = vmul.f32 %v3570_v61, %v6133_v24  ;;  %v3574_v23 = vsub.f32 1.0, %v3573_v36  ;;  %4757 = vpow2.f32 %v4575_v3  ;;  %4521 = vmatmul.msk.bf16.gmra.mxu2 %vm944_vm2, %v6019_v16  ;;  %v2319_v24 = vadd.f32 %v2253_v35, %v5574_v22 }
 0x2ce   : > { %4559 = vmatmul.msk.bf16.gmra.mxu0 %vm944_vm2, %v3015_v40  ;;  %v3187_v18 = vadd.f32 %v3119_v5, %v2958_v38  ;;  %vm3592_vm15 = vweird.f32 %v6225_v42  ;;  %vm3597_vm4 = vcmp.eq.f32.partialorder %v3596_v30, 8.507059e+37 }
 0x2cf   : > { %3979 = vst [vmem:[%s5880_s5 + $0x58] sm:$0xff] %v3943_v33  ;;  %v3575_v41 = vmul.f32 %v4754_v43, %v3574_v23  ;;  %v6246_v7 = vpop.f32.mrf.mxu3 }
 0x2d0   : > { %v2574_v15 = vpop.f32.mrf.mxu2  ;;  %v6255_v52 = vadd.f32 %v6252_v54, %v3187_v18 }
 0x2d1   : > { %v3576_v10 = vadd.f32 %v4754_v43, %v3575_v41  ;;  %v2640_v16 = vadd.f32 %v2574_v15, %v2319_v24  ;;  %v2255_v22 = vpop.f32.mrf.mxu1 }
 0x2d2   : > { %v4756_v60 = vpop.eup %4755  ;;  %v4576_v2 = vmul.f32 -1.442695, %v6255_v52  ;;  %v2320_v35 = vadd.f32 %v2255_v22, %v5585_v47 }
 0x2d3   : > { %v4758_v5 = vpop.eup %4757  ;;  %v3580_v1 = vsel %vm3579_vm13, %v4754_v43, %v3576_v10  ;;  %v3588_v26 = vmul.f32 %v4756_v60, %v6225_v42  ;;  %v2959_v17 = vadd.f32 %v6162_v20, %v2640_v16  ;;  %v3124_v21 = vpop.f32.mrf.mxu0  ;;  %vm3593_vm14 = vweird.f32 %v4756_v60 }
 0x2d4   : > { %v3585_v51 = vsel %vm3582_vm1, %v3584_v46, %v3580_v1  ;;  %v6259_v0 = vadd.f32 1.0, %v4758_v5  ;;  %v3598_v43 = vand.u32 2147483648, %v6225_v42  ;;  %vm3594_vm0 = vmor %vm3592_vm15, %vm3593_vm14 }
 0x2d5   : > { %v3944_v12 = vmul.f32 %v3585_v51, %v6156_v28  ;;  %v3589_v25 = vsub.f32 1.0, %v3588_v26  ;;  %v3188_v53 = vadd.f32 %v3122_v27, %v2959_v17 }
 0x2d6   : > { %4759 = vrcp.f32 %v6259_v0  ;;  %v3599_v27 = vor.u32 1.1754944e-38, %v3598_v43  ;;  %v3611_v10 = vand.u32 2147483647, %v6259_v0  ;;  %v3613_v13 = vand.u32 2147483648, %v6259_v0 }
 0x2d7   : > { %3980 = vst [vmem:[%s5880_s5 + $0x60] sm:$0xff] %v3944_v12  ;;  %v3590_v4 = vmul.f32 %v4756_v60, %v3589_v25  ;;  %4761 = vpow2.f32 %v4576_v2  ;;  %v6268_v20 = vadd.f32 %v6252_v54, %v3188_v53  ;;  %v6271_v58 = vpop.f32.mrf.mxu3 }
 0x2d8   : > { %v2576_v40 = vpop.f32.mrf.mxu2  ;;  %v3614_v17 = vor.u32 1.1754944e-38, %v3613_v13  ;;  %vm3612_vm7 = vcmp.eq.f32.partialorder %v3611_v10, 8.507059e+37 }
 0x2d9   : > { %v3591_v28 = vadd.f32 %v4756_v60, %v3590_v4  ;;  %v4577_v36 = vmul.f32 -1.442695, %v6268_v20  ;;  %v2641_v3 = vadd.f32 %v2576_v40, %v2320_v35  ;;  %v2258_v61 = vpop.f32.mrf.mxu1 }
 0x2db   : > { %v3595_v33 = vsel %vm3594_vm0, %v4756_v60, %v3591_v28  ;;  %4763 = vpow2.f32 %v4577_v36  ;;  %v2960_v23 = vadd.f32 %v6191_v63, %v2641_v3  ;;  %v3127_v47 = vpop.f32.mrf.mxu0 }
 0x2dc   : > { %v4760_v31 = vpop.eup %4759  ;;  %v3600_v38 = vsel %vm3597_vm4, %v3599_v27, %v3595_v33  ;;  %4395 = vmatmul.msk.bf16.gmra.mxu1 %vm944_vm2, %v2145_v29 }
 0x2dd   : > { %v4762_v41 = vpop.eup %4761  ;;  %v3945_v55 = vmul.f32 %v3600_v38, %v6188_v32  ;;  %v3603_v42 = vmul.f32 %v4760_v31, %v6259_v0  ;;  %v3189_v24 = vadd.f32 %v3124_v21, %v2960_v23  ;;  %4522 = vmatmul.msk.bf16.gmra.mxu2 %vm944_vm2, %v6092_v59  ;;  %v2321_v32 = vadd.f32 %v2258_v61, %v5591_v49 }
 0x2de   : > { %v3371_v18 = vadd.f32 1.0, %v4762_v41  ;;  %4560 = vmatmul.msk.bf16.gmra.mxu0 %vm944_vm2, %v3014_v8  ;;  %vm3608_vm5 = vweird.f32 %v4760_v31  ;;  %vm3607_vm2 = vweird.f32 %v6259_v0 }
 0x2df   : > { %3981 = vst [vmem:[%s5880_s5 + $0x68] sm:$0xff] %v3945_v55  ;;  %v3604_v63 = vsub.f32 1.0, %v3603_v42  ;;  %v6289_v15 = vadd.f32 %v6252_v54, %v3189_v24  ;;  %v6295_v8 = vpop.f32.mrf.mxu3  ;;  %vm3609_vm6 = vmor %vm3607_vm2, %vm3608_vm5 }
 0x2e0   : > { %4765 = vrcp.f32 %v3371_v18  ;;  %v2579_v29 = vpop.f32.mrf.mxu2  ;;  %v3626_v36 = vand.u32 2147483647, %v3371_v18  ;;  %v3628_v3 = vand.u32 2147483648, %v3371_v18  ;;  %vm3622_vm9 = vweird.f32 %v3371_v18 }
 0x2e1   : > { %v4764_v16 = vpop.eup %4763  ;;  %v3605_v60 = vmul.f32 %v4760_v31, %v3604_v63  ;;  %v4578_v59 = vmul.f32 -1.442695, %v6289_v15  ;;  %v2642_v46 = vadd.f32 %v2579_v29, %v2321_v32  ;;  %v2260_v5 = vpop.f32.mrf.mxu1 }
 0x2e2   : > { %v6297_v22 = vadd.f32 1.0, %v4764_v16  ;;  %v2322_v0 = vadd.f32 %v2260_v5, %v5608_v6  ;;  %vm3627_vm11 = vcmp.eq.f32.partialorder %v3626_v36, 8.507059e+37  ;;  %v3629_v41 = vor.u32 1.1754944e-38, %v3628_v3 }
 0x2e3   : > { %v3606_v1 = vadd.f32 %v4760_v31, %v3605_v60  ;;  %4767 = vpow2.f32 %v4578_v59  ;;  %v2961_v49 = vadd.f32 %v6218_v56, %v2642_v46  ;;  %v3129_v26 = vpop.f32.mrf.mxu0 }
 0x2e4   : > { %4769 = vrcp.f32 %v6297_v22  ;;  %v3641_v55 = vand.u32 2147483647, %v6297_v22  ;;  %v3643_v42 = vand.u32 2147483648, %v6297_v22  ;;  %vm3637_vm12 = vweird.f32 %v6297_v22 }
 0x2e5   : > { %v3610_v21 = vsel %vm3609_vm6, %v4760_v31, %v3606_v1  ;;  %v3190_v51 = vadd.f32 %v3127_v47, %v2961_v49 }
 0x2e6   : > { %v4766_v2 = vpop.eup %4765  ;;  %v3615_v12 = vsel %vm3612_vm7, %v3614_v17, %v3610_v21  ;;  %v3644_v46 = vor.u32 1.1754944e-38, %v3643_v42  ;;  %vm3642_vm1 = vcmp.eq.f32.partialorder %v3641_v55, 8.507059e+37 }
 0x2e7   : > { %v3946_v25 = vmul.f32 %v3615_v12, %v6223_v39  ;;  %v3618_v53 = vmul.f32 %v4766_v2, %v3371_v18  ;;  %v6304_v30 = vadd.f32 %v6252_v54, %v3190_v51  ;;  %vm3623_vm8 = vweird.f32 %v4766_v2  ;;  %v6312_v6 = vpop.f32.mrf.mxu3 }
 0x2e8   : > { %v2581_v56 = vpop.f32.mrf.mxu2  ;;  %vm3624_vm10 = vmor %vm3622_vm9, %vm3623_vm8 }
 0x2e9   : > { %v4768_v43 = vpop.eup %4767  ;;  %3982 = vst [vmem:[%s5880_s5 + $0x70] sm:$0xff] %v3946_v25  ;;  %v3619_v4 = vsub.f32 1.0, %v3618_v53  ;;  %v4579_v35 = vmul.f32 -1.442695, %v6304_v30  ;;  %v2643_v40 = vadd.f32 %v2581_v56, %v2322_v0  ;;  %v2263_v61 = vpop.f32.mrf.mxu1 }
 0x2ea   : > { %v4770_v28 = vpop.eup %4769  ;;  %v6309_v27 = vadd.f32 1.0, %v4768_v43  ;;  %v2323_v13 = vadd.f32 %v2263_v61, %v5614_v62 }
 0x2eb   : > { %v3620_v39 = vmul.f32 %v4766_v2, %v3619_v4  ;;  %v3633_v33 = vmul.f32 %v4770_v28, %v6297_v22  ;;  %4771 = vpow2.f32 %v4579_v35  ;;  %v3132_v23 = vpop.f32.mrf.mxu0  ;;  %v2962_v38 = vadd.f32 %v6246_v7, %v2643_v40 }
 0x2ec   : > { %4773 = vrcp.f32 %v6309_v27  ;;  %vm3638_vm3 = vweird.f32 %v4770_v28  ;;  %v3658_v12 = vand.u32 2147483648, %v6309_v27  ;;  %v3656_v0 = vand.u32 2147483647, %v6309_v27 }
 0x2ed   : > { %v3621_v47 = vadd.f32 %v4766_v2, %v3620_v39  ;;  %v3634_v31 = vsub.f32 1.0, %v3633_v33  ;;  %v3191_v32 = vadd.f32 %v3129_v26, %v2962_v38  ;;  %vm3639_vm13 = vmor %vm3637_vm12, %vm3638_vm3  ;;  %vm3652_vm15 = vweird.f32 %v6309_v27 }
 0x2ee   : > { %vm3657_vm4 = vcmp.eq.f32.partialorder %v3656_v0, 8.507059e+37 }
 0x2ef   : > { %v3625_v24 = vsel %vm3624_vm10, %v4766_v2, %v3621_v47  ;;  %v3635_v63 = vmul.f32 %v4770_v28, %v3634_v31  ;;  %v6322_v60 = vadd.f32 %v6252_v54, %v3191_v32  ;;  %v6331_v2 = vpop.f32.mrf.mxu3 }
 0x2f0   : > { %v3630_v10 = vsel %vm3627_vm11, %v3629_v41, %v3625_v24  ;;  %v2584_v29 = vpop.f32.mrf.mxu2 }
 0x2f1   : > { %v4772_v18 = vpop.eup %4771  ;;  %v3947_v16 = vmul.f32 %v3630_v10, %v6255_v52  ;;  %v3636_v7 = vadd.f32 %v4770_v28, %v3635_v63  ;;  %v2644_v1 = vadd.f32 %v2584_v29, %v2323_v13  ;;  %v2265_v49 = vpop.f32.mrf.mxu1  ;;  %v4580_v52 = vmul.f32 -1.442695, %v6322_v60 }
 0x2f2   : > { %v4774_v59 = vpop.eup %4773  ;;  %v6324_v5 = vadd.f32 1.0, %v4772_v18  ;;  %v2324_v56 = vadd.f32 %v2265_v49, %v5629_v9 }
 0x2f3   : > { %3983 = vst [vmem:[%s5880_s5 + $0x78] sm:$0xff] %v3947_v16  ;;  %v3640_v62 = vsel %vm3639_vm13, %v4770_v28, %v3636_v7  ;;  %v3648_v26 = vmul.f32 %v4774_v59, %v6309_v27  ;;  %v3134_v17 = vpop.f32.mrf.mxu0  ;;  %v2963_v25 = vadd.f32 %v6271_v58, %v2644_v1  ;;  %vm3653_vm14 = vweird.f32 %v4774_v59 }
 0x2f4   : > { %v3645_v22 = vsel %vm3642_vm1, %v3644_v46, %v3640_v62  ;;  %4775 = vrcp.f32 %v6324_v5  ;;  %vm3654_vm0 = vmor %vm3652_vm15, %vm3653_vm14  ;;  %v3659_v28 = vor.u32 1.1754944e-38, %v3658_v12  ;;  %v3671_v55 = vand.u32 2147483647, %v6324_v5 }
 0x2f5   : > { %v3948_v21 = vmul.f32 %v3645_v22, %v6268_v20  ;;  %v3649_v51 = vsub.f32 1.0, %v3648_v26  ;;  %4777 = vpow2.f32 %v4580_v52  ;;  %v3192_v43 = vadd.f32 %v3132_v23, %v2963_v25 }
 0x2f6   : > { %v3673_v42 = vand.u32 2147483648, %v6324_v5  ;;  %vm3667_vm2 = vweird.f32 %v6324_v5  ;;  %vm3672_vm7 = vcmp.eq.f32.partialorder %v3671_v55, 8.507059e+37 }
 0x2f7   : > { %3984 = vst [vmem:[%s5880_s5 + $0x80] sm:$0xff] %v3948_v21  ;;  %v3650_v53 = vmul.f32 %v4774_v59, %v3649_v51  ;;  %v6340_v36 = vadd.f32 %v6252_v54, %v3192_v43  ;;  %v6353_v32 = vpop.f32.mrf.mxu3 }
 0x2f8   : > { %v2586_v4 = vpop.f32.mrf.mxu2  ;;  %v3674_v18 = vor.u32 1.1754944e-38, %v3673_v42 }
 0x2f9   : > { %v3651_v35 = vadd.f32 %v4774_v59, %v3650_v53  ;;  %v2645_v20 = vadd.f32 %v2586_v4, %v2324_v56  ;;  %v2268_v58 = vpop.f32.mrf.mxu1  ;;  %v4581_v27 = vmul.f32 -1.442695, %v6340_v36 }
 0x2fa   : > { %v4776_v40 = vpop.eup %4775  ;;  %v2325_v63 = vadd.f32 %v2268_v58, %v5635_v19 }
 0x2fb   : > { %v4778_v3 = vpop.eup %4777  ;;  %v3655_v61 = vsel %vm3654_vm0, %v4774_v59, %v3651_v35  ;;  %v3663_v39 = vmul.f32 %v4776_v40, %v6324_v5  ;;  %v2964_v9 = vadd.f32 %v6295_v8, %v2645_v20  ;;  %v3137_v33 = vpop.f32.mrf.mxu0  ;;  %vm3668_vm5 = vweird.f32 %v4776_v40 }
 0x2fc   : > { %v3660_v23 = vsel %vm3657_vm4, %v3659_v28, %v3655_v61  ;;  %v3375_v47 = vadd.f32 1.0, %v4778_v3  ;;  %vm3669_vm6 = vmor %vm3667_vm2, %vm3668_vm5 }
 0x2fd   : > { %v3949_v31 = vmul.f32 %v3660_v23, %v6289_v15  ;;  %v3664_v38 = vsub.f32 1.0, %v3663_v39  ;;  %v3193_v41 = vadd.f32 %v3134_v17, %v2964_v9 }
 0x2fe   : > { %4779 = vrcp.f32 %v3375_v47  ;;  %v3686_v51 = vand.u32 2147483647, %v3375_v47  ;;  %v3688_v12 = vand.u32 2147483648, %v3375_v47  ;;  %vm3682_vm9 = vweird.f32 %v3375_v47 }
 0x2ff   : > { %3985 = vst [vmem:[%s5880_s5 + $0x88] sm:$0xff] %v3949_v31  ;;  %v3665_v24 = vmul.f32 %v4776_v40, %v3664_v38  ;;  %4781 = vpow2.f32 %v4581_v27  ;;  %v6350_v8 = vadd.f32 %v6252_v54, %v3193_v41  ;;  %v6366_v56 = vpop.f32.mrf.mxu3 }
 0x300   : > { %v2589_v10 = vpop.f32.mrf.mxu2  ;;  %vm3687_vm11 = vcmp.eq.f32.partialorder %v3686_v51, 8.507059e+37 }
 0x301   : > { %v3666_v15 = vadd.f32 %v4776_v40, %v3665_v24  ;;  %v4582_v13 = vmul.f32 -1.442695, %v6350_v8  ;;  %v2646_v29 = vadd.f32 %v2589_v10, %v2325_v63  ;;  %v2270_v16 = vpop.f32.mrf.mxu1 }
 0x302   : > { %v2326_v21 = vadd.f32 %v2270_v16, %v5650_v34 }
 0x303   : > { %v3670_v7 = vsel %vm3669_vm6, %v4776_v40, %v3666_v15  ;;  %4783 = vpow2.f32 %v4582_v13  ;;  %v2965_v59 = vadd.f32 %v6312_v6, %v2646_v29  ;;  %v3139_v19 = vpop.f32.mrf.mxu0  ;;  %v3689_v40 = vor.u32 1.1754944e-38, %v3688_v12 }
 0x304   : > { %v4780_v46 = vpop.eup %4779  ;;  %v3675_v1 = vsel %vm3672_vm7, %v3674_v18, %v3670_v7 }
 0x305   : > { %v4782_v49 = vpop.eup %4781  ;;  %v3950_v62 = vmul.f32 %v3675_v1, %v6304_v30  ;;  %v3678_v5 = vmul.f32 %v4780_v46, %v3375_v47  ;;  %v3194_v26 = vadd.f32 %v3137_v33, %v2965_v59  ;;  %vm3683_vm8 = vweird.f32 %v4780_v46 }
 0x306   : > { %v3376_v52 = vadd.f32 1.0, %v4782_v49  ;;  %vm3684_vm10 = vmor %vm3682_vm9, %vm3683_vm8 }
 0x307   : > { %3986 = vst [vmem:[%s5880_s5 + $0x90] sm:$0xff] %v3950_v62  ;;  %v3679_v17 = vsub.f32 1.0, %v3678_v5  ;;  %v6362_v22 = vadd.f32 %v6252_v54, %v3194_v26 }
 0x308   : > { %4785 = vrcp.f32 %v3376_v52  ;;  %v2591_v6 = vpop.f32.mrf.mxu2  ;;  %v3701_v55 = vand.u32 2147483647, %v3376_v52  ;;  %v3703_v42 = vand.u32 2147483648, %v3376_v52  ;;  %vm3697_vm12 = vweird.f32 %v3376_v52 }
 0x309   : > { %v4784_v25 = vpop.eup %4783  ;;  %v3680_v53 = vmul.f32 %v4780_v46, %v3679_v17  ;;  %v4583_v0 = vmul.f32 -1.442695, %v6362_v22  ;;  %v2647_v30 = vadd.f32 %v2591_v6, %v2326_v21  ;;  %v2273_v4 = vpop.f32.mrf.mxu1 }
 0x30a   : > { %v6368_v43 = vadd.f32 1.0, %v4784_v25  ;;  %v2327_v23 = vadd.f32 %v2273_v4, %v5656_v44  ;;  %v2918_v44 = vpop.f32.mrf.mxu3  ;;  %vm3702_vm1 = vcmp.eq.f32.partialorder %v3701_v55, 8.507059e+37  ;;  %v3704_v16 = vor.u32 1.1754944e-38, %v3703_v42 }
 0x30b   : > { %v3681_v35 = vadd.f32 %v4780_v46, %v3680_v53  ;;  %4787 = vpow2.f32 %v4583_v0  ;;  %v2966_v34 = vadd.f32 %v6331_v2, %v2647_v30  ;;  %v3142_v20 = vpop.f32.mrf.mxu0 }
 0x30c   : > { %4789 = vrcp.f32 %v6368_v43  ;;  %v3716_v7 = vand.u32 2147483647, %v6368_v43  ;;  %v3718_v59 = vand.u32 2147483648, %v6368_v43  ;;  %vm3712_vm15 = vweird.f32 %v6368_v43 }
 0x30d   : > { %v3685_v28 = vsel %vm3684_vm10, %v4780_v46, %v3681_v35  ;;  %v3195_v58 = vadd.f32 %v3139_v19, %v2966_v34 }
 0x30e   : > { %v4786_v3 = vpop.eup %4785  ;;  %v3690_v61 = vsel %vm3687_vm11, %v3689_v40, %v3685_v28  ;;  %v3719_v51 = vor.u32 1.1754944e-38, %v3718_v59  ;;  %vm3717_vm4 = vcmp.eq.f32.partialorder %v3716_v7, 8.507059e+37 }
 0x30f   : > { %v3951_v39 = vmul.f32 %v3690_v61, %v6322_v60  ;;  %v3693_v9 = vmul.f32 %v4786_v3, %v3376_v52  ;;  %v6374_v33 = vadd.f32 %v6252_v54, %v3195_v58  ;;  %vm3698_vm3 = vweird.f32 %v4786_v3 }
 0x310   : > { %v2594_v2 = vpop.f32.mrf.mxu2  ;;  %vm3699_vm13 = vmor %vm3697_vm12, %vm3698_vm3 }
 0x311   : > { %v4788_v47 = vpop.eup %4787  ;;  %3987 = vst [vmem:[%s5880_s5 + $0x98] sm:$0xff] %v3951_v39  ;;  %v3694_v27 = vsub.f32 1.0, %v3693_v9  ;;  %v4584_v31 = vmul.f32 -1.442695, %v6374_v33  ;;  %v2648_v38 = vadd.f32 %v2594_v2, %v2327_v23  ;;  %v2275_v63 = vpop.f32.mrf.mxu1 }
 0x312   : > { %v4790_v41 = vpop.eup %4789  ;;  %v6379_v24 = vadd.f32 1.0, %v4788_v47  ;;  %v2328_v62 = vadd.f32 %v2275_v63, %v5671_v50  ;;  %v2920_v35 = vpop.f32.mrf.mxu3 }
 0x313   : > { %v3695_v60 = vmul.f32 %v4786_v3, %v3694_v27  ;;  %v3708_v10 = vmul.f32 %v4790_v41, %v6368_v43  ;;  %4791 = vpow2.f32 %v4584_v31  ;;  %v3144_v15 = vpop.f32.mrf.mxu0  ;;  %v2967_v18 = vadd.f32 %v6353_v32, %v2648_v38 }
 0x314   : > { %4793 = vrcp.f32 %v6379_v24  ;;  %vm3713_vm14 = vweird.f32 %v4790_v41  ;;  %v3733_v34 = vand.u32 2147483648, %v6379_v24  ;;  %v3731_v28 = vand.u32 2147483647, %v6379_v24 }
 0x315   : > { %v3696_v13 = vadd.f32 %v4786_v3, %v3695_v60  ;;  %v3709_v29 = vsub.f32 1.0, %v3708_v10  ;;  %v3196_v1 = vadd.f32 %v3142_v20, %v2967_v18  ;;  %vm3714_vm0 = vmor %vm3712_vm15, %vm3713_vm14  ;;  %vm3727_vm2 = vweird.f32 %v6379_v24 }
 0x316   : > { %v3734_v23 = vor.u32 1.1754944e-38, %v3733_v34  ;;  %vm3732_vm7 = vcmp.eq.f32.partialorder %v3731_v28, 8.507059e+37 }
 0x317   : > { %v3700_v19 = vsel %vm3699_vm13, %v4786_v3, %v3696_v13  ;;  %v3710_v46 = vmul.f32 %v4790_v41, %v3709_v29  ;;  %v6390_v17 = vadd.f32 %v6252_v54, %v3196_v1 }
 0x318   : > { %v3705_v49 = vsel %vm3702_vm1, %v3704_v16, %v3700_v19  ;;  %v2596_v5 = vpop.f32.mrf.mxu2 }
 0x319   : > { %v4792_v26 = vpop.eup %4791  ;;  %v3952_v52 = vmul.f32 %v3705_v49, %v6340_v36  ;;  %v3711_v32 = vadd.f32 %v4790_v41, %v3710_v46  ;;  %v2649_v6 = vadd.f32 %v2596_v5, %v2328_v62  ;;  %v2278_v25 = vpop.f32.mrf.mxu1  ;;  %v4585_v36 = vmul.f32 -1.442695, %v6390_v17 }
 0x31a   : > { %v4794_v21 = vpop.eup %4793  ;;  %v6392_v12 = vadd.f32 1.0, %v4792_v26  ;;  %v2329_v58 = vadd.f32 %v2278_v25, %v5677_v11  ;;  %v2923_v18 = vpop.f32.mrf.mxu3 }
 0x31b   : > { %3988 = vst [vmem:[%s5880_s5 + $0xa0] sm:$0xff] %v3952_v52  ;;  %v3715_v50 = vsel %vm3714_vm0, %v4790_v41, %v3711_v32  ;;  %v3723_v53 = vmul.f32 %v4794_v21, %v6379_v24  ;;  %v3147_v0 = vpop.f32.mrf.mxu0  ;;  %v2968_v20 = vadd.f32 %v6366_v56, %v2649_v6  ;;  %vm3728_vm5 = vweird.f32 %v4794_v21 }
 0x31c   : > { %v3720_v30 = vsel %vm3717_vm4, %v3719_v51, %v3715_v50  ;;  %4795 = vrcp.f32 %v6392_v12  ;;  %vm3729_vm6 = vmor %vm3727_vm2, %vm3728_vm5  ;;  %v3746_v10 = vand.u32 2147483647, %v6392_v12  ;;  %vm3742_vm9 = vweird.f32 %v6392_v12 }
 0x31d   : > { %v3953_v43 = vmul.f32 %v3720_v30, %v6350_v8  ;;  %v3724_v4 = vsub.f32 1.0, %v3723_v53  ;;  %4797 = vpow2.f32 %v4585_v36  ;;  %v3197_v3 = vadd.f32 %v3144_v15, %v2968_v20 }
 0x31e   : > { %v3748_v15 = vand.u32 2147483648, %v6392_v12  ;;  %vm3747_vm11 = vcmp.eq.f32.partialorder %v3746_v10, 8.507059e+37 }
 0x31f   : > { %3989 = vst [vmem:[%s5880_s5 + $0xa8] sm:$0xff] %v3953_v43  ;;  %v3725_v40 = vmul.f32 %v4794_v21, %v3724_v4  ;;  %v6406_v2 = vadd.f32 %v6252_v54, %v3197_v3 }
 0x320   : > { %v2599_v61 = vpop.f32.mrf.mxu2  ;;  %v3749_v19 = vor.u32 1.1754944e-38, %v3748_v15 }
 0x321   : > { %v3726_v39 = vadd.f32 %v4794_v21, %v3725_v40  ;;  %v2650_v8 = vadd.f32 %v2599_v61, %v2329_v58  ;;  %v2280_v56 = vpop.f32.mrf.mxu1  ;;  %v4586_v42 = vmul.f32 -1.442695, %v6406_v2 }
 0x322   : > { %v4796_v9 = vpop.eup %4795  ;;  %v2330_v29 = vadd.f32 %v2280_v56, %v5692_v57  ;;  %v2925_v4 = vpop.f32.mrf.mxu3 }
 0x323   : > { %v4798_v47 = vpop.eup %4797  ;;  %v3730_v27 = vsel %vm3729_vm6, %v4794_v21, %v3726_v39  ;;  %v3738_v31 = vmul.f32 %v4796_v9, %v6392_v12  ;;  %v2969_v11 = vadd.f32 %v2918_v44, %v2650_v8  ;;  %v3149_v38 = vpop.f32.mrf.mxu0  ;;  %vm3743_vm8 = vweird.f32 %v4796_v9 }
 0x324   : > { %v3735_v41 = vsel %vm3732_vm7, %v3734_v23, %v3730_v27  ;;  %v3380_v55 = vadd.f32 1.0, %v4798_v47  ;;  %vm3744_vm10 = vmor %vm3742_vm9, %vm3743_vm8 }
 0x325   : > { %v3954_v24 = vmul.f32 %v3735_v41, %v6362_v22  ;;  %v3739_v63 = vsub.f32 1.0, %v3738_v31  ;;  %v3198_v60 = vadd.f32 %v3147_v0, %v2969_v11 }
 0x326   : > { %4799 = vrcp.f32 %v3380_v55  ;;  %v3761_v50 = vand.u32 2147483647, %v3380_v55  ;;  %v3763_v53 = vand.u32 2147483648, %v3380_v55  ;;  %vm3757_vm12 = vweird.f32 %v3380_v55 }
 0x327   : > { %3990 = vst [vmem:[%s5880_s5 + $0xb0] sm:$0xff] %v3954_v24  ;;  %v3740_v13 = vmul.f32 %v4796_v9, %v3739_v63  ;;  %4801 = vpow2.f32 %v4586_v42  ;;  %v6415_v44 = vadd.f32 %v6252_v54, %v3198_v60 }
 0x328   : > { %v2601_v16 = vpop.f32.mrf.mxu2  ;;  %v3764_v28 = vor.u32 1.1754944e-38, %v3763_v53  ;;  %vm3762_vm1 = vcmp.eq.f32.partialorder %v3761_v50, 8.507059e+37 }
 0x329   : > { %v3741_v7 = vadd.f32 %v4796_v9, %v3740_v13  ;;  %v4587_v22 = vmul.f32 -1.442695, %v6415_v44  ;;  %v2651_v59 = vadd.f32 %v2601_v16, %v2330_v29  ;;  %v2283_v46 = vpop.f32.mrf.mxu1 }
 0x32a   : > { %v2331_v25 = vadd.f32 %v2283_v46, %v5698_v48  ;;  %v2928_v10 = vpop.f32.mrf.mxu3 }
 0x32b   : > { %v3745_v1 = vsel %vm3744_vm10, %v4796_v9, %v3741_v7  ;;  %4803 = vpow2.f32 %v4587_v22  ;;  %v2970_v49 = vadd.f32 %v2920_v35, %v2651_v59  ;;  %v3152_v62 = vpop.f32.mrf.mxu0 }
 0x32c   : > { %v4800_v5 = vpop.eup %4799  ;;  %v3750_v57 = vsel %vm3747_vm11, %v3749_v19, %v3745_v1 }
 0x32d   : > { %v4802_v26 = vpop.eup %4801  ;;  %v3955_v52 = vmul.f32 %v3750_v57, %v6374_v33  ;;  %v3753_v32 = vmul.f32 %v4800_v5, %v3380_v55  ;;  %v3199_v21 = vadd.f32 %v3149_v38, %v2970_v49  ;;  %vm3758_vm3 = vweird.f32 %v4800_v5 }
 0x32e   : > { %v3381_v51 = vadd.f32 1.0, %v4802_v26  ;;  %vm3759_vm13 = vmor %vm3757_vm12, %vm3758_vm3 }
 0x32f   : > { %3991 = vst [vmem:[%s5880_s5 + $0xb8] sm:$0xff] %v3955_v52  ;;  %v3754_v12 = vsub.f32 1.0, %v3753_v32  ;;  %v6424_v6 = vadd.f32 %v6252_v54, %v3199_v21 }
 0x330   : > { %4805 = vrcp.f32 %v3381_v51  ;;  %v2604_v36 = vpop.f32.mrf.mxu2  ;;  %v3776_v55 = vand.u32 2147483647, %v3381_v51  ;;  %v3778_v42 = vand.u32 2147483648, %v3381_v51  ;;  %vm3772_vm15 = vweird.f32 %v3381_v51 }
 0x331   : > { %v4804_v0 = vpop.eup %4803  ;;  %v3755_v30 = vmul.f32 %v4800_v5, %v3754_v12  ;;  %v4588_v43 = vmul.f32 -1.442695, %v6424_v6  ;;  %v2652_v33 = vadd.f32 %v2604_v36, %v2331_v25  ;;  %v2285_v34 = vpop.f32.mrf.mxu1 }
 0x332   : > { %v6428_v35 = vadd.f32 1.0, %v4804_v0  ;;  %v2332_v56 = vadd.f32 %v2285_v34, %v5713_v37  ;;  %vm3777_vm4 = vcmp.eq.f32.partialorder %v3776_v55, 8.507059e+37  ;;  %v2930_v0 = vpop.f32.mrf.mxu3 }
 0x333   : > { %v3756_v20 = vadd.f32 %v4800_v5, %v3755_v30  ;;  %4807 = vpow2.f32 %v4588_v43  ;;  %v2971_v40 = vadd.f32 %v2923_v18, %v2652_v33  ;;  %v3154_v48 = vpop.f32.mrf.mxu0  ;;  %v3779_v18 = vor.u32 1.1754944e-38, %v3778_v42 }
 0x334   : > { %4809 = vrcp.f32 %v6428_v35  ;;  %v3791_v16 = vand.u32 2147483647, %v6428_v35  ;;  %v3793_v7 = vand.u32 2147483648, %v6428_v35  ;;  %vm3787_vm2 = vweird.f32 %v6428_v35 }
 0x335   : > { %v3760_v58 = vsel %vm3759_vm13, %v4800_v5, %v3756_v20  ;;  %v3200_v3 = vadd.f32 %v3152_v62, %v2971_v40 }
 0x336   : > { %v4806_v61 = vpop.eup %4805  ;;  %v3765_v39 = vsel %vm3762_vm1, %v3764_v28, %v3760_v58  ;;  %v3794_v32 = vor.u32 1.1754944e-38, %v3793_v7  ;;  %vm3792_vm7 = vcmp.eq.f32.partialorder %v3791_v16, 8.507059e+37 }
 0x337   : > { %v3956_v8 = vmul.f32 %v3765_v39, %v6390_v17  ;;  %v3768_v9 = vmul.f32 %v4806_v61, %v3381_v51  ;;  %v6433_v23 = vadd.f32 %v6252_v54, %v3200_v3  ;;  %vm3773_vm14 = vweird.f32 %v4806_v61 }
 0x338   : > { %v2606_v47 = vpop.f32.mrf.mxu2  ;;  %vm3774_vm0 = vmor %vm3772_vm15, %vm3773_vm14 }
 0x339   : > { %v4808_v27 = vpop.eup %4807  ;;  %3992 = vst [vmem:[%s5880_s5 + $0xc0] sm:$0xff] %v3956_v8  ;;  %v3769_v31 = vsub.f32 1.0, %v3768_v9  ;;  %v4589_v11 = vmul.f32 -1.442695, %v6433_v23  ;;  %v2653_v38 = vadd.f32 %v2606_v47, %v2332_v56  ;;  %v2288_v63 = vpop.f32.mrf.mxu1 }
 0x33a   : > { %v4810_v41 = vpop.eup %4809  ;;  %v6438_v24 = vadd.f32 1.0, %v4808_v27  ;;  %v2333_v1 = vadd.f32 %v2288_v63, %v5719_v14  ;;  %v6589_v63 = vld [vmem:[#allocation10_spill] sm:$0xff] }
 0x33b   : > { %v3770_v17 = vmul.f32 %v4806_v61, %v3769_v31  ;;  %v3783_v60 = vmul.f32 %v4810_v41, %v6428_v35  ;;  %4811 = vpow2.f32 %v4589_v11  ;;  %v2972_v13 = vadd.f32 %v2925_v4, %v2653_v38  ;;  %v3157_v29 = vpop.f32.mrf.mxu0 }
 0x33c   : > { %4813 = vrcp.f32 %v6438_v24  ;;  %vm3788_vm5 = vweird.f32 %v4810_v41  ;;  %v3808_v30 = vand.u32 2147483648, %v6438_v24  ;;  %v3806_v4 = vand.u32 2147483647, %v6438_v24 }
 0x33d   : > { %v3771_v37 = vadd.f32 %v4806_v61, %v3770_v17  ;;  %v3784_v15 = vsub.f32 1.0, %v3783_v60  ;;  %v3201_v19 = vadd.f32 %v3154_v48, %v2972_v13  ;;  %vm3789_vm6 = vmor %vm3787_vm2, %vm3788_vm5  ;;  %vm3802_vm9 = vweird.f32 %v6438_v24  ;;  %v2933_v60 = vpop.f32.mrf.mxu3 }
 0x33e   : > { %v3809_v58 = vor.u32 1.1754944e-38, %v3808_v30  ;;  %vm3807_vm11 = vcmp.eq.f32.partialorder %v3806_v4, 8.507059e+37 }
 0x33f   : > { %v3775_v22 = vsel %vm3774_vm0, %v4806_v61, %v3771_v37  ;;  %v3785_v59 = vmul.f32 %v4810_v41, %v3784_v15  ;;  %v6448_v26 = vadd.f32 %v6252_v54, %v3201_v19 }
 0x340   : > { %v3780_v46 = vsel %vm3777_vm4, %v3779_v18, %v3775_v22  ;;  %v2609_v49 = vpop.f32.mrf.mxu2 }
 0x341   : > { %v4812_v62 = vpop.eup %4811  ;;  %v3957_v5 = vmul.f32 %v3780_v46, %v6406_v2  ;;  %v3786_v57 = vadd.f32 %v4810_v41, %v3785_v59  ;;  %v2654_v51 = vadd.f32 %v2609_v49, %v2333_v1  ;;  %v2290_v12 = vpop.f32.mrf.mxu1  ;;  %v4590_v2 = vmul.f32 -1.442695, %v6448_v26 }
 0x342   : > { %v4814_v52 = vpop.eup %4813  ;;  %v6450_v21 = vadd.f32 1.0, %v4812_v62  ;;  %v2334_v35 = vadd.f32 %v2290_v12, %v5734_v45 }
 0x343   : > { %3993 = vst [vmem:[%s5880_s5 + $0xc8] sm:$0xff] %v3957_v5  ;;  %v3790_v14 = vsel %vm3789_vm6, %v4810_v41, %v3786_v57  ;;  %v3798_v25 = vmul.f32 %v4814_v52, %v6438_v24  ;;  %v2973_v43 = vadd.f32 %v2928_v10, %v2654_v51  ;;  %vm3803_vm8 = vweird.f32 %v4814_v52  ;;  %v3159_v34 = vpop.f32.mrf.mxu0 }
 0x344   : > { %v3795_v50 = vsel %vm3792_vm7, %v3794_v32, %v3790_v14  ;;  %4815 = vrcp.f32 %v6450_v21  ;;  %vm3804_vm10 = vmor %vm3802_vm9, %vm3803_vm8  ;;  %v3821_v41 = vand.u32 2147483647, %v6450_v21  ;;  %v3823_v55 = vand.u32 2147483648, %v6450_v21 }
 0x345   : > { %v3958_v53 = vmul.f32 %v3795_v50, %v6415_v44  ;;  %v3799_v36 = vsub.f32 1.0, %v3798_v25  ;;  %4817 = vpow2.f32 %v4590_v2  ;;  %v3202_v20 = vadd.f32 %v3157_v29, %v2973_v43 }
 0x346   : > { %vm3817_vm12 = vweird.f32 %v6450_v21  ;;  %v3824_v29 = vor.u32 1.1754944e-38, %v3823_v55  ;;  %vm3822_vm1 = vcmp.eq.f32.partialorder %v3821_v41, 8.507059e+37 }
 0x347   : > { %3994 = vst [vmem:[%s5880_s5 + $0xd0] sm:$0xff] %v3958_v53  ;;  %v3800_v33 = vmul.f32 %v4814_v52, %v3799_v36  ;;  %v6463_v3 = vadd.f32 %v6252_v54, %v3202_v20 }
 0x348   : > { %v2611_v40 = vpop.f32.mrf.mxu2 }
 0x349   : > { %v3801_v48 = vadd.f32 %v4814_v52, %v3800_v33  ;;  %v2655_v44 = vadd.f32 %v2611_v40, %v2334_v35  ;;  %v2293_v61 = vpop.f32.mrf.mxu1  ;;  %v4591_v27 = vmul.f32 -1.442695, %v6463_v3 }
 0x34a   : > { %v4816_v28 = vpop.eup %4815  ;;  %v2335_v17 = vadd.f32 %v2293_v61, %v6589_v63 }
 0x34b   : > { %v4818_v39 = vpop.eup %4817  ;;  %v3805_v8 = vsel %vm3804_vm10, %v4814_v52, %v3801_v48  ;;  %v3813_v45 = vmul.f32 %v4816_v28, %v6450_v21  ;;  %v2974_v9 = vadd.f32 %v2930_v0, %v2655_v44  ;;  %vm3818_vm3 = vweird.f32 %v4816_v28  ;;  %v3162_v15 = vpop.f32.mrf.mxu0  ;;  %v6590_v52 = vld [vmem:[#allocation3_spill] sm:$0xff] }
 0x34c   : > { %v3810_v56 = vsel %vm3807_vm11, %v3809_v58, %v3805_v8  ;;  %v3385_v47 = vadd.f32 1.0, %v4818_v39  ;;  %vm3819_vm13 = vmor %vm3817_vm12, %vm3818_vm3  ;;  %v6492_v48 = vld [vmem:[%s6545_s2] ss:$0 sm:$0xff] }
 0x34d   : > { %v3959_v31 = vmul.f32 %v3810_v56, %v6424_v6  ;;  %v3814_v11 = vsub.f32 1.0, %v3813_v45  ;;  %v3203_v38 = vadd.f32 %v3159_v34, %v2974_v9 }
 0x34e   : > { %4819 = vrcp.f32 %v3385_v47  ;;  %v3836_v21 = vand.u32 2147483647, %v3385_v47  ;;  %v3838_v51 = vand.u32 2147483648, %v3385_v47  ;;  %vm3832_vm15 = vweird.f32 %v3385_v47 }
 0x34f   : > { %3995 = vst [vmem:[%s5880_s5 + $0xd8] sm:$0xff] %v3959_v31  ;;  %v3815_v42 = vmul.f32 %v4816_v28, %v3814_v11  ;;  %4821 = vpow2.f32 %v4591_v27  ;;  %v6472_v24 = vadd.f32 %v6252_v54, %v3203_v38 }
 0x350   : > { %v2614_v10 = vpop.f32.mrf.mxu2  ;;  %v3839_v43 = vor.u32 1.1754944e-38, %v3838_v51  ;;  %vm3837_vm4 = vcmp.eq.f32.partialorder %v3836_v21, 8.507059e+37 }
 0x351   : > { %v3816_v37 = vadd.f32 %v4816_v28, %v3815_v42  ;;  %v4592_v6 = vmul.f32 -1.442695, %v6472_v24  ;;  %v2656_v13 = vadd.f32 %v2614_v10, %v2335_v17  ;;  %v2295_v18 = vpop.f32.mrf.mxu1 }
 0x352   : > { %v2336_v32 = vadd.f32 %v2295_v18, %v6590_v52  ;;  %v6592_v18 = vld [vmem:[#allocation13_spill] sm:$0xff] }
 0x353   : > { %v3820_v16 = vsel %vm3819_vm13, %v4816_v28, %v3816_v37  ;;  %4823 = vpow2.f32 %v4592_v6  ;;  %v2975_v7 = vadd.f32 %v2933_v60, %v2656_v13  ;;  %v6591_v28 = vld [vmem:[#allocation12_spill] sm:$0xff] }
 0x354   : > { %v4820_v22 = vpop.eup %4819  ;;  %v3825_v59 = vsel %vm3822_vm1, %v3824_v29, %v3820_v16 }
 0x355   : > { %v4822_v19 = vpop.eup %4821  ;;  %v3960_v46 = vmul.f32 %v3825_v59, %v6433_v23  ;;  %v3828_v1 = vmul.f32 %v4820_v22, %v3385_v47  ;;  %v3204_v49 = vadd.f32 %v3162_v15, %v2975_v7  ;;  %vm3833_vm14 = vweird.f32 %v4820_v22  ;;  %v2935_v23 = vpop.f32.mrf.mxu3 }
 0x356   : > { %v3386_v62 = vadd.f32 1.0, %v4822_v19  ;;  %vm3834_vm0 = vmor %vm3832_vm15, %vm3833_vm14 }
 0x357   : > { %3996 = vst [vmem:[%s5880_s5 + $0xe0] sm:$0xff] %v3960_v46  ;;  %v3829_v5 = vsub.f32 1.0, %v3828_v1  ;;  %v6481_v57 = vadd.f32 %v6252_v54, %v3204_v49  ;;  %v3164_v54 = vpop.f32.mrf.mxu0 }
 0x358   : > { %4825 = vrcp.f32 %v3386_v62  ;;  %v2616_v12 = vpop.f32.mrf.mxu2  ;;  %v3853_v47 = vand.u32 2147483648, %v3386_v62  ;;  %vm3847_vm2 = vweird.f32 %v3386_v62 }
 0x359   : > { %v4824_v14 = vpop.eup %4823  ;;  %v3830_v25 = vmul.f32 %v4820_v22, %v3829_v5  ;;  %v4593_v2 = vmul.f32 -1.442695, %v6481_v57  ;;  %v2657_v50 = vadd.f32 %v2616_v12, %v2336_v32  ;;  %v2298_v30 = vpop.f32.mrf.mxu1 }
 0x35a   : > { %v6485_v53 = vadd.f32 1.0, %v4824_v14  ;;  %v2337_v58 = vadd.f32 %v2298_v30, %v6591_v28  ;;  %v3854_v60 = vor.u32 1.1754944e-38, %v3853_v47 }
 0x35b   : > { %v3831_v36 = vadd.f32 %v4820_v22, %v3830_v25  ;;  %4827 = vpow2.f32 %v4593_v2  ;;  %v2976_v0 = vadd.f32 %v2935_v23, %v2657_v50 }
 0x35c   : > { %4829 = vrcp.f32 %v6485_v53  ;;  %v3866_v10 = vand.u32 2147483647, %v6485_v53  ;;  %v3868_v37 = vand.u32 2147483648, %v6485_v53  ;;  %vm3862_vm9 = vweird.f32 %v6485_v53 }
 0x35d   : > { %v3835_v33 = vsel %vm3834_vm0, %v4820_v22, %v3831_v36  ;;  %v3205_v4 = vadd.f32 %v3164_v54, %v2976_v0  ;;  %v2938_v38 = vpop.f32.mrf.mxu3 }
 0x35e   : > { %v4826_v35 = vpop.eup %4825  ;;  %v3840_v34 = vsel %vm3837_vm4, %v3839_v43, %v3835_v33  ;;  %v3869_v49 = vor.u32 1.1754944e-38, %v3868_v37  ;;  %vm3867_vm11 = vcmp.eq.f32.partialorder %v3866_v10, 8.507059e+37 }
 0x35f   : > { %v3961_v20 = vmul.f32 %v3840_v34, %v6448_v26  ;;  %v3843_v40 = vmul.f32 %v4826_v35, %v3386_v62  ;;  %v6495_v44 = vadd.f32 %v6492_v48, %v3205_v4  ;;  %v3851_v26 = vand.u32 2147483647, %v3386_v62  ;;  %v3167_v42 = vpop.f32.mrf.mxu0 }
 0x360   : > { %v2619_v61 = vpop.f32.mrf.mxu2  ;;  %vm3848_vm5 = vweird.f32 %v4826_v35 }
 0x361   : > { %v4828_v39 = vpop.eup %4827  ;;  %3997 = vst [vmem:[%s5880_s5 + $0xe8] sm:$0xff] %v3961_v20  ;;  %v3844_v8 = vsub.f32 1.0, %v3843_v40  ;;  %v4594_v45 = vmul.f32 -1.442695, %v6495_v44  ;;  %v2658_v9 = vadd.f32 %v2619_v61, %v2337_v58  ;;  %v2300_v17 = vpop.f32.mrf.mxu1  ;;  %vm3849_vm6 = vmor %vm3847_vm2, %vm3848_vm5  ;;  %vm3852_vm7 = vcmp.eq.f32.partialorder %v3851_v26, 8.507059e+37 }
 0x362   : > { %v4830_v56 = vpop.eup %4829  ;;  %v6500_v27 = vadd.f32 1.0, %v4828_v39  ;;  %v2338_v16 = vadd.f32 %v2300_v17, %v6592_v18 }
 0x363   : > { %v3845_v31 = vmul.f32 %v4826_v35, %v3844_v8  ;;  %v3858_v11 = vmul.f32 %v4830_v56, %v6485_v53  ;;  %4831 = vpow2.f32 %v4594_v45  ;;  %v2977_v63 = vadd.f32 %v2938_v38, %v2658_v9 }
 0x364   : > { %4833 = vrcp.f32 %v6500_v27  ;;  %vm3863_vm8 = vweird.f32 %v4830_v56  ;;  %v3883_v25 = vand.u32 2147483648, %v6500_v27  ;;  %v3881_v50 = vand.u32 2147483647, %v6500_v27 }
 0x365   : > { %v3846_v41 = vadd.f32 %v4826_v35, %v3845_v31  ;;  %v3859_v55 = vsub.f32 1.0, %v3858_v11  ;;  %v3206_v13 = vadd.f32 %v3167_v42, %v2977_v63  ;;  %vm3864_vm10 = vmor %vm3862_vm9, %vm3863_vm8  ;;  %v2940_v14 = vpop.f32.mrf.mxu3  ;;  %vm3877_vm12 = vweird.f32 %v6500_v27 }
 0x366   : > { %vm3882_vm1 = vcmp.eq.f32.partialorder %v3881_v50, 8.507059e+37 }
 0x367   : > { %v3850_v6 = vsel %vm3849_vm6, %v4826_v35, %v3846_v41  ;;  %v3860_v15 = vmul.f32 %v4830_v56, %v3859_v55  ;;  %v6510_v46 = vadd.f32 %v6492_v48, %v3206_v13  ;;  %v3169_v53 = vpop.f32.mrf.mxu0 }
 0x368   : > { %v3855_v29 = vsel %vm3852_vm7, %v3854_v60, %v3850_v6  ;;  %v2621_v7 = vpop.f32.mrf.mxu2 }
 0x369   : > { %v4832_v22 = vpop.eup %4831  ;;  %v3962_v59 = vmul.f32 %v3855_v29, %v6463_v3  ;;  %v3861_v19 = vadd.f32 %v4830_v56, %v3860_v15  ;;  %v2659_v5 = vadd.f32 %v2621_v7, %v2338_v16  ;;  %v4595_v21 = vmul.f32 -1.442695, %v6510_v46 }
 0x36a   : > { %v4834_v1 = vpop.eup %4833  ;;  %v3389_v62 = vadd.f32 1.0, %v4832_v22 }
 0x36b   : > { %3998 = vst [vmem:[%s5880_s5 + $0xf0] sm:$0xff] %v3962_v59  ;;  %v3865_v52 = vsel %vm3864_vm10, %v4830_v56, %v3861_v19  ;;  %v3873_v32 = vmul.f32 %v4834_v1, %v6500_v27  ;;  %v2978_v2 = vadd.f32 %v2940_v14, %v2659_v5  ;;  %vm3878_vm3 = vweird.f32 %v4834_v1 }
 0x36c   : > { %v3870_v3 = vsel %vm3867_vm11, %v3869_v49, %v3865_v52  ;;  %4835 = vrcp.f32 %v3389_v62  ;;  %vm3879_vm13 = vmor %vm3877_vm12, %vm3878_vm3  ;;  %v3898_v58 = vand.u32 2147483648, %v3389_v62  ;;  %v3896_v39 = vand.u32 2147483647, %v3389_v62 }
 0x36d   : > { %v3963_v51 = vmul.f32 %v3870_v3, %v6472_v24  ;;  %v3874_v12 = vsub.f32 1.0, %v3873_v32  ;;  %4837 = vpow2.f32 %v4595_v21  ;;  %v3207_v36 = vadd.f32 %v3169_v53, %v2978_v2 }
 0x36e   : > { %v3884_v24 = vor.u32 1.1754944e-38, %v3883_v25  ;;  %vm3892_vm15 = vweird.f32 %v3389_v62  ;;  %vm3897_vm4 = vcmp.eq.f32.partialorder %v3896_v39, 8.507059e+37 }
 0x36f   : > { %3999 = vst [vmem:[%s5880_s5 + $0xf8] sm:$0xff] %v3963_v51  ;;  %v3875_v23 = vmul.f32 %v4834_v1, %v3874_v12  ;;  %v3247_v30 = vadd.f32 %v6492_v48, %v3207_v36  ;;  %v3899_v48 = vor.u32 1.1754944e-38, %v3898_v58 }
 0x371   : > { %v3876_v54 = vadd.f32 %v4834_v1, %v3875_v23  ;;  %v4596_v20 = vmul.f32 -1.442695, %v3247_v30 }
 0x372   : > { %v4836_v0 = vpop.eup %4835 }
 0x373   : > { %v4838_v43 = vpop.eup %4837  ;;  %v3880_v33 = vsel %vm3879_vm13, %v4834_v1, %v3876_v54  ;;  %v3888_v4 = vmul.f32 %v4836_v0, %v3389_v62  ;;  %vm3893_vm14 = vweird.f32 %v4836_v0 }
 0x374   : > { %v3885_v35 = vsel %vm3882_vm1, %v3884_v24, %v3880_v33  ;;  %v3390_v34 = vadd.f32 1.0, %v4838_v43  ;;  %vm3894_vm0 = vmor %vm3892_vm15, %vm3893_vm14 }
 0x375   : > { %v3964_v40 = vmul.f32 %v3885_v35, %v6481_v57  ;;  %v3889_v28 = vsub.f32 1.0, %v3888_v4 }
 0x376   : > { %4839 = vrcp.f32 %v3390_v34  ;;  %v3913_v11 = vand.u32 2147483648, %v3390_v34  ;;  %v3911_v41 = vand.u32 2147483647, %v3390_v34  ;;  %vm3907_vm2 = vweird.f32 %v3390_v34 }
 0x377   : > { %4000 = vst [vmem:[%s5880_s5 + $0x100] sm:$0xff] %v3964_v40  ;;  %v3890_v61 = vmul.f32 %v4836_v0, %v3889_v28  ;;  %4841 = vpow2.f32 %v4596_v20 }
 0x378   : > { %v3914_v42 = vor.u32 1.1754944e-38, %v3913_v11  ;;  %vm3912_vm7 = vcmp.eq.f32.partialorder %v3911_v41, 8.507059e+37 }
 0x379   : > { %v3891_v8 = vadd.f32 %v4836_v0, %v3890_v61 }
 0x37b   : > { %v3895_v45 = vsel %vm3894_vm0, %v4836_v0, %v3891_v8 }
 0x37c   : > { %v4840_v9 = vpop.eup %4839  ;;  %v3900_v56 = vsel %vm3897_vm4, %v3899_v48, %v3895_v45 }
 0x37d   : > { %v4842_v26 = vpop.eup %4841  ;;  %v3965_v57 = vmul.f32 %v3900_v56, %v6495_v44  ;;  %v3903_v47 = vmul.f32 %v4840_v9, %v3390_v34  ;;  %vm3908_vm5 = vweird.f32 %v4840_v9 }
 0x37e   : > { %v3391_v27 = vadd.f32 1.0, %v4842_v26  ;;  %vm3909_vm6 = vmor %vm3907_vm2, %vm3908_vm5 }
 0x37f   : > { %4001 = vst [vmem:[%s5880_s5 + $0x108] sm:$0xff] %v3965_v57  ;;  %v3904_v31 = vsub.f32 1.0, %v3903_v47 }
 0x380   : > { %4843 = vrcp.f32 %v3391_v27  ;;  %v3928_v6 = vand.u32 2147483648, %v3391_v27  ;;  %v3926_v13 = vand.u32 2147483647, %v3391_v27  ;;  %vm3922_vm9 = vweird.f32 %v3391_v27 }
 0x381   : > { %v3905_v38 = vmul.f32 %v4840_v9, %v3904_v31 }
 0x382   : > { %v3929_v18 = vor.u32 1.1754944e-38, %v3928_v6  ;;  %vm3927_vm11 = vcmp.eq.f32.partialorder %v3926_v13, 8.507059e+37 }
 0x383   : > { %v3906_v55 = vadd.f32 %v4840_v9, %v3905_v38 }
 0x385   : > { %v3910_v63 = vsel %vm3909_vm6, %v4840_v9, %v3906_v55 }
 0x386   : > { %v4844_v17 = vpop.eup %4843  ;;  %v3915_v60 = vsel %vm3912_vm7, %v3914_v42, %v3910_v63 }
 0x387   : > { %v3966_v44 = vmul.f32 %v3915_v60, %v6510_v46  ;;  %v3918_v10 = vmul.f32 %v4844_v17, %v3391_v27  ;;  %vm3923_vm8 = vweird.f32 %v4844_v17 }
 0x388   : > { %vm3924_vm10 = vmor %vm3922_vm9, %vm3923_vm8 }
 0x389   : > { %4002 = vst [vmem:[%s5880_s5 + $0x110] sm:$0xff] %v3966_v44  ;;  %v3919_v37 = vsub.f32 1.0, %v3918_v10 }
 0x38b   : > { %v3920_v15 = vmul.f32 %v4844_v17, %v3919_v37 }
 0x38d   : > { %v3921_v29 = vadd.f32 %v4844_v17, %v3920_v15 }
 0x38f   : > { %v3925_v16 = vsel %vm3924_vm10, %v4844_v17, %v3921_v29 }
 0x390   : > { %v3930_v7 = vsel %vm3927_vm11, %v3929_v18, %v3925_v16 }
 0x391   : > { %v3967_v22 = vmul.f32 %v3930_v7, %v3247_v30 }
 0x393   : > { %4003 = vst [vmem:[%s5880_s5 + $0x118] sm:$0x3f] %v3967_v22 }
 0x394 PF: > { %s13_s16 = sadd.s32 1, %s4896_s16   ;;  %s6593_s12 = smov %s4884_s13 }
 0x395   : > { %p10_p10 = scmp.ge.s32.totalorder %s13_s16, 4   ;;  %s6594_s13 = smov %s4953_s20 }
 0x396   : > { %s6595_s14 = smov %s4892_s15  ;;  %s6596_s15 = smov %s6598_s17 }
 0x397   :  { %12 = sbr.rel (!%p10_p10) target bundleno = 3 (0x3), region = 118 }

</bundles_post_ra>
